<compile_context>
chip_gen: v5e
topology: v5e:2x2
jax: 0.10.0
libtpu: 0.0.40
codegen_flags: <defaults>
</compile_context>

<pallas_src>
import functools

import jax
import jax.numpy as jnp
from jax.experimental import pallas as pl
from jax.experimental.pallas import tpu as pltpu


# ----------------------------- Pallas kernel --------------------------------

def _conv3x3_kernel(*refs, stride, th, wo, relu, skip):
    """Fused 3x3 conv (tap-folded matmul) + folded-BN bias + skip + ReLU.

    refs layout (inputs then output):
      x_ref   : (1, P, Hp, Wp, Cin)    phase-stacked padded input (bf16)
      w_ref   : (9*Cin, Cout_pad)      BN-scale-folded 3x3 weights (bf16)
      b_ref   : (1, Cout_pad)          folded bias (f32)
      [res_ref: (1, th, wo, Cout_pad)  residual, skip == "add"]
      [xs_ref : (1, th, wo, Cs),
       ws_ref : (Cs, Cout_pad)         fused 1x1 projection, skip == "proj"]
      o_ref   : (1, th, wo, Cout_pad)  output row-block
    """
    x_ref, w_ref, b_ref = refs[0], refs[1], refs[2]
    nskip = {"add": 1, "proj": 2, None: 0}[skip]
    o_ref = refs[3 + nskip]

    cin = x_ref.shape[-1]
    cpad = o_ref.shape[-1]
    row0 = pl.program_id(1) * th
    if th % 8 == 0:
        row0 = pl.multiple_of(row0, 8)

    # Fold the 9 taps into the contraction dim: concatenate the shifted slices
    # along channels (lane-aligned, Cin % 128 == 0) and do a single MXU matmul
    # with K = 9*Cin.  No accumulator passes over VMEM, full systolic K depth.
    taps = []
    for dh in range(3):
        for dw in range(3):
            if stride == 1:
                phase, roff, coff = 0, dh, dw
            else:  # stride 2: tap (dh, dw) lives in phase (dh%2, dw%2)
                phase, roff, coff = (dh % 2) * 2 + (dw % 2), dh // 2, dw // 2
            taps.append(x_ref[0, phase, pl.ds(row0 + roff, th),
                              pl.ds(coff, wo), :])
    lhs = jnp.concatenate(taps, axis=-1).reshape(th * wo, 9 * cin)
    acc = jnp.dot(lhs, w_ref[...], preferred_element_type=jnp.float32)
    acc = acc + b_ref[...]                                   # folded BN bias

    if skip == "add":        # residual already has cpad (lane-multiple) channels
        res_ref = refs[3]
        acc = acc + res_ref[...].reshape(th * wo, cpad).astype(jnp.float32)
    elif skip == "proj":     # fused 1x1 projection (also used for identity-pad)
        xs_ref, ws_ref = refs[3], refs[4]
        xs = xs_ref[...].reshape(th * wo, xs_ref.shape[-1])
        acc = acc + jnp.dot(xs, ws_ref[...], preferred_element_type=jnp.float32)
    if relu:
        acc = jnp.maximum(acc, 0.0)
    o_ref[...] = acc.reshape(1, th, wo, cpad).astype(o_ref.dtype)


# ------------------------------ host helpers ---------------------------------

def _round_up(n, m):
    return (n + m - 1) // m * m


def _vmem_caps():
    """(physical VMEM, per-call vmem_limit/tile budget), generation aware."""
    cap = 64 * 2 ** 20
    try:
        cap = int(pltpu.get_tpu_info().vmem_capacity_bytes)
    except Exception:
        pass
    limit = 40 * 2 ** 20 if cap <= 64 * 2 ** 20 else 96 * 2 ** 20
    return cap, limit


@functools.lru_cache(maxsize=None)
def _single_buffer_supported():
    """Probe (compile + run a tiny kernel) whether pipeline_mode=pl.Buffered(1)
    works on this JAX/TPU; fall back to default double buffering otherwise."""
    try:
        def k(x_ref, o_ref):
            o_ref[...] = x_ref[...] + 1.0
        fn = pl.pallas_call(
            k,
            out_shape=jax.ShapeDtypeStruct((16, 128), jnp.float32),
            grid=(2,),
            in_specs=[pl.BlockSpec((8, 128), lambda i: (0, 0),
                                   pipeline_mode=pl.Buffered(1))],
            out_specs=pl.BlockSpec((8, 128), lambda i: (i, 0)),
        )
        jax.block_until_ready(fn(jnp.zeros((8, 128), jnp.float32)))
        return True
    except Exception:
        return False


def _bspec(shape, index_map, nbuf=None):
    """BlockSpec; grid-invariant operands are single-buffered when supported."""
    if nbuf is not None and _single_buffer_supported():
        return pl.BlockSpec(shape, index_map, pipeline_mode=pl.Buffered(nbuf))
    return pl.BlockSpec(shape, index_map)


def _pick_row_tile(out_h, out_w, cin, cpad, c_skip, out_bytes,
                   fixed_bytes, budget):
    """Largest divisor of out_h (preferring multiples of 8) whose full VMEM
    footprint fits the generation-aware budget."""
    per_row = out_w * (
        cpad * out_bytes * 2      # output block, double-buffered
        + 9 * cin * 2             # bf16 tap slab (concat LHS)
        + cpad * 4                # f32 matmul result
        + c_skip * 2 * 2          # skip input block, double-buffered (bf16)
    )
    avail = max(budget - fixed_bytes, per_row)   # th = 1 always allowed
    cands = [d for d in range(1, out_h + 1)
             if out_h % d == 0 and d * per_row <= avail]
    aligned = [d for d in cands if d % 8 == 0]
    # TODO(synk): out_h with no good divisor degenerates to small th; a
    # remainder row-block (cdiv grid + masked store) would fix such shapes.
    return max(aligned) if aligned else max(cands)


def _phase_stack(x_nhwc, stride):
    """Pad (pad=1) and split into stride-phases: (N, P, Hp, Wp, C), P=1 or 4."""
    xp = jnp.pad(x_nhwc, ((0, 0), (1, 1), (1, 1), (0, 0)))
    if stride == 1:
        return xp[:, None]
    _, hp, wp, _ = xp.shape
    xp = jnp.pad(xp, ((0, 0), (0, hp % 2), (0, wp % 2), (0, 0)))
    phases = [xp[:, a::2, b::2, :] for a in (0, 1) for b in (0, 1)]
    return jnp.stack(phases, axis=1)


def _fold_bn(gamma, beta, mean, var, eps=1e-5):
    a = gamma / jnp.sqrt(var + eps)
    return a, beta - mean * a


def _prep_w3x3(w, scale, cin_pad, cout_pad):
    # (Cout, Cin, 3, 3) -> (9*cin_pad, cout_pad) bf16, BN scale folded in.
    # Row order (dh, dw, c) matches the kernel's tap-concat order.
    cout, cin = w.shape[0], w.shape[1]
    wm = jnp.transpose(w, (2, 3, 1, 0)) * scale.reshape(1, 1, 1, cout)
    wm = jnp.pad(wm, ((0, 0), (0, 0), (0, cin_pad - cin), (0, cout_pad - cout)))
    return wm.reshape(9 * cin_pad, cout_pad).astype(jnp.bfloat16)


def _prep_w1x1(w, scale, cout_pad):
    cout, cin = w.shape[0], w.shape[1]
    wm = jnp.transpose(w[:, :, 0, 0], (1, 0)) * scale.reshape(1, cout)
    wm = jnp.pad(wm, ((0, 0), (0, cout_pad - cout)))
    return wm.astype(jnp.bfloat16)


def _pad_bias(b, cout_pad):
    return jnp.pad(b.reshape(1, -1),
                   ((0, 0), (0, cout_pad - b.shape[0]))).astype(jnp.float32)


def _conv3x3_bn_act(xph, w, bias, *, stride, out_h, out_w, relu,
                    skip=None, res=None, xs=None, ws=None,
                    out_dtype=jnp.float32):
    n, p, hp, wp, cin = xph.shape
    k9, cpad = w.shape
    out_bytes = jnp.dtype(out_dtype).itemsize
    c_skip = 0
    if skip == "add":
        c_skip = res.shape[-1]
    elif skip == "proj":
        c_skip = xs.shape[-1]

    _, vmem_limit = _vmem_caps()
    # Fixed per-step footprint: resident image (x2 buffers), weights (budgeted
    # x2 conservatively even when single-buffered), plus slack for bias/ws and
    # Mosaic internal scratch.
    fixed = (p * hp * wp * cin * 2) * 2 + (k9 * cpad * 2) * 2 + 4 * 2 ** 20
    th = _pick_row_tile(out_h, out_w, cin, cpad, c_skip, out_bytes,
                        fixed, vmem_limit)
    grid = (n, out_h // th)

    in_specs = [
        pl.BlockSpec((1, p, hp, wp, cin), lambda b, r: (b, 0, 0, 0, 0)),  # image
        _bspec((k9, cpad), lambda b, r: (0, 0), nbuf=1),                  # weights
        _bspec((1, cpad), lambda b, r: (0, 0), nbuf=1),                   # bias
    ]
    args = [xph, w, bias]
    if skip == "add":
        in_specs.append(pl.BlockSpec((1, th, out_w, c_skip),
                                     lambda b, r: (b, r, 0, 0)))
        args.append(res)
    elif skip == "proj":
        in_specs.append(pl.BlockSpec((1, th, out_w, c_skip),
                                     lambda b, r: (b, r, 0, 0)))
        in_specs.append(_bspec((c_skip, cpad), lambda b, r: (0, 0), nbuf=1))
        args += [xs, ws]

    kernel = functools.partial(_conv3x3_kernel, stride=stride, th=th, wo=out_w,
                               relu=relu, skip=skip)
    return pl.pallas_call(
        kernel,
        out_shape=jax.ShapeDtypeStruct((n, out_h, out_w, cpad), out_dtype),
        grid=grid,
        in_specs=in_specs,
        out_specs=pl.BlockSpec((1, th, out_w, cpad), lambda b, r: (b, r, 0, 0)),
        compiler_params=pltpu.CompilerParams(
            dimension_semantics=("parallel", "parallel"),
            vmem_limit_bytes=vmem_limit,
        ),
    )(*args)


# ------------------------------ forward pass ---------------------------------

def residual_unit_forward(x_nchw, params, stride_one):
    """Pallas implementation of ResidualUnit.forward (eval-mode BatchNorm)."""
    x = jnp.transpose(x_nchw, (0, 2, 3, 1))            # NCHW -> NHWC
    n, h, w_sp, cin = x.shape
    cout = params["w1"].shape[0]
    cpad = _round_up(cout, 256 if cout >= 256 else 128)  # lane-dense / MXU-wide
    cin_pad = _round_up(cin, 128)                        # lane-aligned K
    ho = (h - 1) // stride_one + 1
    wo = (w_sp - 1) // stride_one + 1

    x_bf = x.astype(jnp.bfloat16)                        # skip paths: unpadded
    x_conv = x_bf if cin_pad == cin else jnp.pad(
        x_bf, ((0, 0), (0, 0), (0, 0), (0, cin_pad - cin)))

    # conv3x3(stride_one) + BN + ReLU
    s1, b1 = _fold_bn(params["g1"], params["be1"], params["m1"], params["v1"])
    y1 = _conv3x3_bn_act(
        _phase_stack(x_conv, stride_one),
        _prep_w3x3(params["w1"], s1, cin_pad, cpad),
        _pad_bias(b1, cpad),
        stride=stride_one, out_h=ho, out_w=wo, relu=True,
        out_dtype=jnp.bfloat16)

    # conv3x3(stride=1) + BN, fused with skip-add + ReLU.
    # TODO(synk): conv1 could write straight into a spatially padded buffer (or
    # conv1+conv2 could be fused per row block on 128-MiB-VMEM parts) to remove
    # this jnp.pad HBM pass over y1; kept as a wrapper pad for simplicity.
    s2, b2 = _fold_bn(params["g2"], params["be2"], params["m2"], params["v2"])
    w2 = _prep_w3x3(params["w2"], s2, cpad, cpad)
    y1p = _phase_stack(y1, 1)

    if stride_one == 2:
        ss, bs = _fold_bn(params["gs"], params["bes"], params["ms"], params["vs"])
        out = _conv3x3_bn_act(
            y1p, w2, _pad_bias(b2 + bs, cpad),
            stride=1, out_h=ho, out_w=wo, relu=True,
            skip="proj", xs=x_bf[:, ::2, ::2, :],
            ws=_prep_w1x1(params["ws"], ss, cpad),
            out_dtype=jnp.float32)
    elif cout == cpad:
        # Identity skip, channels already a lane multiple: plain fused add.
        out = _conv3x3_bn_act(
            y1p, w2, _pad_bias(b2, cpad),
            stride=1, out_h=ho, out_w=wo, relu=True,
            skip="add", res=x_bf,
            out_dtype=jnp.float32)
    else:
        # Identity skip with cout < cpad: fuse it as a 1x1 "projection" with a
        # zero-padded identity matrix — residual stays unpadded in HBM and the
        # in-kernel path stays lane-aligned (MXU), no lane-pad op needed.
        eye = jnp.pad(jnp.eye(cout, dtype=jnp.bfloat16),
                      ((0, 0), (0, cpad - cout)))
        out = _conv3x3_bn_act(
            y1p, w2, _pad_bias(b2, cpad),
            stride=1, out_h=ho, out_w=wo, relu=True,
            skip="proj", xs=x_bf, ws=eye,
            out_dtype=jnp.float32)

    return jnp.transpose(out[..., :cout], (0, 3, 1, 2))  # NHWC -> NCHW


# ------------------------------ reference ------------------------------------

def _reference_forward(x_nchw, params, stride_one):
    """Pure-XLA reference with the same bf16 quantization points as the kernels."""
    f32, bf16 = jnp.float32, jnp.bfloat16
    q = lambda t: t.astype(bf16).astype(f32)

    def conv_bn(inp, w, g, be, m, v, stride, pad):
        a = g / jnp.sqrt(v + 1e-5)
        b = be - m * a
        wq = q(jnp.transpose(w, (2, 3, 1, 0)) * a)      # HWIO, BN scale folded
        y = jax.lax.conv_general_dilated(
            inp, wq, (stride, stride), ((pad, pad), (pad, pad)),
            dimension_numbers=("NHWC", "HWIO", "NHWC"),
            precision=jax.lax.Precision.HIGHEST)
        return y + b

    x = q(jnp.transpose(x_nchw, (0, 2, 3, 1)))
    y1 = q(jnp.maximum(conv_bn(x, params["w1"], params["g1"], params["be1"],
                               params["m1"], params["v1"], stride_one, 1), 0.0))
    y2 = conv_bn(y1, params["w2"], params["g2"], params["be2"],
                 params["m2"], params["v2"], 1, 1)
    if stride_one == 2:
        skip = conv_bn(x, params["ws"], params["gs"], params["bes"],
                       params["ms"], params["vs"], 2, 0)
    else:
        skip = x
    out = jnp.maximum(y2 + skip, 0.0)
    return jnp.transpose(out, (0, 3, 1, 2))


def _make_params(key, in_channels, out_channels):
    # NOTE: PyTorch's __init__ would set the 2nd BN gamma to 0 (initial_zero=True)
    # and BN stats to (mean=0, var=1); random values are used here to exercise
    # the full fused compute path.  Forward-pass semantics are unchanged.
    ks = jax.random.split(key, 11)
    p = {
        "w1": jax.random.normal(ks[0], (out_channels, in_channels, 3, 3), jnp.float32) * 0.1,
        "g1": jax.random.uniform(ks[1], (out_channels,), jnp.float32, 0.5, 1.5),
        "be1": jax.random.normal(ks[2], (out_channels,), jnp.float32) * 0.1,
        "m1": jax.random.normal(ks[3], (out_channels,), jnp.float32) * 0.1,
        "v1": jax.random.uniform(ks[4], (out_channels,), jnp.float32, 0.5, 1.5),
        "w2": jax.random.normal(ks[5], (out_channels, out_channels, 3, 3), jnp.float32) * 0.1,
        "g2": jax.random.uniform(ks[6], (out_channels,), jnp.float32, 0.5, 1.5),
        "be2": jax.random.normal(ks[7], (out_channels,), jnp.float32) * 0.1,
        "m2": jax.random.normal(ks[8], (out_channels,), jnp.float32) * 0.1,
        "v2": jax.random.uniform(ks[9], (out_channels,), jnp.float32, 0.5, 1.5),
    }
    ks2 = jax.random.split(ks[10], 5)
    p.update({
        "ws": jax.random.normal(ks2[0], (out_channels, in_channels, 1, 1), jnp.float32) * 0.1,
        "gs": jax.random.uniform(ks2[1], (out_channels,), jnp.float32, 0.5, 1.5),
        "bes": jax.random.normal(ks2[2], (out_channels,), jnp.float32) * 0.1,
        "ms": jax.random.normal(ks2[3], (out_channels,), jnp.float32) * 0.1,
        "vs": jax.random.uniform(ks2[4], (out_channels,), jnp.float32, 0.5, 1.5),
    })
    return p


if __name__ == "__main__":
    key = jax.random.PRNGKey(0)
    k_x1, k_p1, k_x2, k_p2 = jax.random.split(key, 4)

    fwd = jax.jit(residual_unit_forward, static_argnums=2)
    ref = jax.jit(_reference_forward, static_argnums=2)

    # Case 1: stride_one=1 -> in_channels == out_channels, identity skip.
    out_ch = 4
    x1 = jax.random.normal(k_x1, (2, out_ch, 16, 16), jnp.float32)       # NCHW
    params1 = _make_params(k_p1, out_ch, out_ch)
    y1 = fwd(x1, params1, 1)
    jax.block_until_ready(y1)
    r1 = ref(x1, params1, 1)
    assert y1.shape == (2, out_ch, 16, 16)
    assert jnp.allclose(y1, r1, atol=1e-2, rtol=1e-2), float(jnp.max(jnp.abs(y1 - r1)))

    # Case 2: stride_one=2 -> in_channels = out_channels // 2, fused 1x1 projection skip.
    x2 = jax.random.normal(k_x2, (2, out_ch // 2, 16, 16), jnp.float32)  # NCHW
    params2 = _make_params(k_p2, out_ch // 2, out_ch)
    y2 = fwd(x2, params2, 2)
    jax.block_until_ready(y2)
    r2 = ref(x2, params2, 2)
    assert y2.shape == (2, out_ch, 8, 8)
    assert jnp.allclose(y2, r2, atol=1e-2, rtol=1e-2), float(jnp.max(jnp.abs(y2 - r2)))

    print("KERNEL_OK")
</pallas_src>

<mosaic_0001>
module attributes {stable_mosaic.version = 11 : i64} {
  func.func @_conv3x3_kernel(%arg0: i32, %arg1: i32, %arg2: memref<1x1x18x18x128xbf16, #tpu.memory_space<vmem>>, %arg3: memref<1152x128xbf16, #tpu.memory_space<vmem>>, %arg4: memref<1x128xf32, #tpu.memory_space<vmem>>, %arg5: memref<1x16x16x4xbf16, #tpu.memory_space<vmem>>, %arg6: memref<4x128xbf16, #tpu.memory_space<vmem>>, %arg7: memref<1x16x16x128xf32, #tpu.memory_space<vmem>>) attributes {dimension_semantics = [#tpu.dimension_semantics<parallel>, #tpu.dimension_semantics<parallel>], iteration_bounds = array<i64: 2, 1>, scalar_prefetch = 0 : i64, scratch_operands = 0 : i64, tpu.core_type = #tpu.core_type<tc>, window_params = [{transform_indices = @transform_0, window_bounds = array<i64: 1, 1, 18, 18, 128>}, {pipeline_mode = #tpu.pipeline_mode<synchronous>, transform_indices = @transform_1, window_bounds = array<i64: 1152, 128>}, {pipeline_mode = #tpu.pipeline_mode<synchronous>, transform_indices = @transform_2, window_bounds = array<i64: 1, 128>}, {transform_indices = @transform_3, window_bounds = array<i64: 1, 16, 16, 4>}, {pipeline_mode = #tpu.pipeline_mode<synchronous>, transform_indices = @transform_4, window_bounds = array<i64: 4, 128>}, {transform_indices = @transform_5, window_bounds = array<i64: 1, 16, 16, 128>}]} {
    %c16_i32 = arith.constant 16 : i32
    %0 = arith.muli %arg1, %c16_i32 : i32
    %1 = tpu.assume_multiple %0, 8 : i32
    %c0_i32 = arith.constant 0 : i32
    %2 = arith.addi %1, %c0_i32 : i32
    %c0 = arith.constant 0 : index
    %c0_0 = arith.constant 0 : index
    %3 = arith.index_cast %2 : i32 to index
    %c0_1 = arith.constant 0 : index
    %c0_2 = arith.constant 0 : index
    %4 = vector.load %arg2[%c0, %c0_0, %3, %c0_1, %c0_2] : memref<1x1x18x18x128xbf16, #tpu.memory_space<vmem>>, vector<1x1x16x16x128xbf16>
    %5 = vector.shape_cast %4 : vector<1x1x16x16x128xbf16> to vector<16x16x128xbf16>
    %c0_i32_3 = arith.constant 0 : i32
    %6 = arith.addi %1, %c0_i32_3 : i32
    %c0_4 = arith.constant 0 : index
    %c0_5 = arith.constant 0 : index
    %7 = arith.index_cast %6 : i32 to index
    %c1 = arith.constant 1 : index
    %c0_6 = arith.constant 0 : index
    %8 = vector.load %arg2[%c0_4, %c0_5, %7, %c1, %c0_6] : memref<1x1x18x18x128xbf16, #tpu.memory_space<vmem>>, vector<1x1x16x16x128xbf16>
    %9 = vector.shape_cast %8 : vector<1x1x16x16x128xbf16> to vector<16x16x128xbf16>
    %c0_i32_7 = arith.constant 0 : i32
    %10 = arith.addi %1, %c0_i32_7 : i32
    %c0_8 = arith.constant 0 : index
    %c0_9 = arith.constant 0 : index
    %11 = arith.index_cast %10 : i32 to index
    %c2 = arith.constant 2 : index
    %c0_10 = arith.constant 0 : index
    %12 = vector.load %arg2[%c0_8, %c0_9, %11, %c2, %c0_10] : memref<1x1x18x18x128xbf16, #tpu.memory_space<vmem>>, vector<1x1x16x16x128xbf16>
    %13 = vector.shape_cast %12 : vector<1x1x16x16x128xbf16> to vector<16x16x128xbf16>
    %c1_i32 = arith.constant 1 : i32
    %14 = arith.addi %1, %c1_i32 : i32
    %c0_11 = arith.constant 0 : index
    %c0_12 = arith.constant 0 : index
    %15 = arith.index_cast %14 : i32 to index
    %c0_13 = arith.constant 0 : index
    %c0_14 = arith.constant 0 : index
    %16 = vector.load %arg2[%c0_11, %c0_12, %15, %c0_13, %c0_14] : memref<1x1x18x18x128xbf16, #tpu.memory_space<vmem>>, vector<1x1x16x16x128xbf16>
    %17 = vector.shape_cast %16 : vector<1x1x16x16x128xbf16> to vector<16x16x128xbf16>
    %c1_i32_15 = arith.constant 1 : i32
    %18 = arith.addi %1, %c1_i32_15 : i32
    %c0_16 = arith.constant 0 : index
    %c0_17 = arith.constant 0 : index
    %19 = arith.index_cast %18 : i32 to index
    %c1_18 = arith.constant 1 : index
    %c0_19 = arith.constant 0 : index
    %20 = vector.load %arg2[%c0_16, %c0_17, %19, %c1_18, %c0_19] : memref<1x1x18x18x128xbf16, #tpu.memory_space<vmem>>, vector<1x1x16x16x128xbf16>
    %21 = vector.shape_cast %20 : vector<1x1x16x16x128xbf16> to vector<16x16x128xbf16>
    %c1_i32_20 = arith.constant 1 : i32
    %22 = arith.addi %1, %c1_i32_20 : i32
    %c0_21 = arith.constant 0 : index
    %c0_22 = arith.constant 0 : index
    %23 = arith.index_cast %22 : i32 to index
    %c2_23 = arith.constant 2 : index
    %c0_24 = arith.constant 0 : index
    %24 = vector.load %arg2[%c0_21, %c0_22, %23, %c2_23, %c0_24] : memref<1x1x18x18x128xbf16, #tpu.memory_space<vmem>>, vector<1x1x16x16x128xbf16>
    %25 = vector.shape_cast %24 : vector<1x1x16x16x128xbf16> to vector<16x16x128xbf16>
    %c2_i32 = arith.constant 2 : i32
    %26 = arith.addi %1, %c2_i32 : i32
    %c0_25 = arith.constant 0 : index
    %c0_26 = arith.constant 0 : index
    %27 = arith.index_cast %26 : i32 to index
    %c0_27 = arith.constant 0 : index
    %c0_28 = arith.constant 0 : index
    %28 = vector.load %arg2[%c0_25, %c0_26, %27, %c0_27, %c0_28] : memref<1x1x18x18x128xbf16, #tpu.memory_space<vmem>>, vector<1x1x16x16x128xbf16>
    %29 = vector.shape_cast %28 : vector<1x1x16x16x128xbf16> to vector<16x16x128xbf16>
    %c2_i32_29 = arith.constant 2 : i32
    %30 = arith.addi %1, %c2_i32_29 : i32
    %c0_30 = arith.constant 0 : index
    %c0_31 = arith.constant 0 : index
    %31 = arith.index_cast %30 : i32 to index
    %c1_32 = arith.constant 1 : index
    %c0_33 = arith.constant 0 : index
    %32 = vector.load %arg2[%c0_30, %c0_31, %31, %c1_32, %c0_33] : memref<1x1x18x18x128xbf16, #tpu.memory_space<vmem>>, vector<1x1x16x16x128xbf16>
    %33 = vector.shape_cast %32 : vector<1x1x16x16x128xbf16> to vector<16x16x128xbf16>
    %c2_i32_34 = arith.constant 2 : i32
    %34 = arith.addi %1, %c2_i32_34 : i32
    %c0_35 = arith.constant 0 : index
    %c0_36 = arith.constant 0 : index
    %35 = arith.index_cast %34 : i32 to index
    %c2_37 = arith.constant 2 : index
    %c0_38 = arith.constant 0 : index
    %36 = vector.load %arg2[%c0_35, %c0_36, %35, %c2_37, %c0_38] : memref<1x1x18x18x128xbf16, #tpu.memory_space<vmem>>, vector<1x1x16x16x128xbf16>
    %37 = vector.shape_cast %36 : vector<1x1x16x16x128xbf16> to vector<16x16x128xbf16>
    %38 = tpu.concatenate %5, %9, %13, %17, %21, %25, %29, %33, %37 in 2 : vector<16x16x128xbf16>, vector<16x16x128xbf16>, vector<16x16x128xbf16>, vector<16x16x128xbf16>, vector<16x16x128xbf16>, vector<16x16x128xbf16>, vector<16x16x128xbf16>, vector<16x16x128xbf16>, vector<16x16x128xbf16> -> vector<16x16x1152xbf16>
    %39 = vector.shape_cast %38 : vector<16x16x1152xbf16> to vector<256x1152xbf16>
    %c0_39 = arith.constant 0 : index
    %c0_40 = arith.constant 0 : index
    %40 = vector.load %arg3[%c0_39, %c0_40] : memref<1152x128xbf16, #tpu.memory_space<vmem>>, vector<1152x128xbf16>
    %cst = arith.constant dense<0.000000e+00> : vector<256x128xf32>
    %41 = tpu.matmul %39, %40, %cst {dimension_numbers = #tpu.dot_dimension_numbers<[1], [0], [0], [1], [0, 0, 1, 1], [], []>} : vector<256x1152xbf16>, vector<1152x128xbf16>, vector<256x128xf32> -> vector<256x128xf32>
    %c0_41 = arith.constant 0 : index
    %c0_42 = arith.constant 0 : index
    %42 = vector.load %arg4[%c0_41, %c0_42] : memref<1x128xf32, #tpu.memory_space<vmem>>, vector<1x128xf32>
    %43 = vector.broadcast %42 : vector<1x128xf32> to vector<256x128xf32>
    %44 = arith.addf %41, %43 : vector<256x128xf32>
    %c0_43 = arith.constant 0 : index
    %c0_44 = arith.constant 0 : index
    %c0_45 = arith.constant 0 : index
    %c0_46 = arith.constant 0 : index
    %45 = vector.load %arg5[%c0_43, %c0_44, %c0_45, %c0_46] : memref<1x16x16x4xbf16, #tpu.memory_space<vmem>>, vector<1x16x16x4xbf16>
    %46 = vector.shape_cast %45 : vector<1x16x16x4xbf16> to vector<256x4xbf16>
    %c0_47 = arith.constant 0 : index
    %c0_48 = arith.constant 0 : index
    %47 = vector.load %arg6[%c0_47, %c0_48] : memref<4x128xbf16, #tpu.memory_space<vmem>>, vector<4x128xbf16>
    %cst_49 = arith.constant dense<0.000000e+00> : vector<256x128xf32>
    %48 = tpu.matmul %46, %47, %cst_49 {dimension_numbers = #tpu.dot_dimension_numbers<[1], [0], [0], [1], [0, 0, 1, 1], [], []>} : vector<256x4xbf16>, vector<4x128xbf16>, vector<256x128xf32> -> vector<256x128xf32>
    %49 = arith.addf %44, %48 : vector<256x128xf32>
    %cst_50 = arith.constant 0.000000e+00 : f32
    %50 = vector.broadcast %cst_50 : f32 to vector<256x128xf32>
    %51 = arith.maximumf %49, %50 : vector<256x128xf32>
    %52 = vector.shape_cast %51 : vector<256x128xf32> to vector<1x16x16x128xf32>
    %c0_51 = arith.constant 0 : index
    %c0_52 = arith.constant 0 : index
    %c0_53 = arith.constant 0 : index
    %c0_54 = arith.constant 0 : index
    %53 = vector.load %arg7[%c0_51, %c0_52, %c0_53, %c0_54] : memref<1x16x16x128xf32, #tpu.memory_space<vmem>>, vector<1x16x16x128xf32>
    tpu.vector_store %arg7[%c0_51, %c0_52, %c0_53, %c0_54], %52 {strides = array<i32>} : memref<1x16x16x128xf32, #tpu.memory_space<vmem>>, vector<1x16x16x128xf32>,
    return
  }
  func.func @transform_0(%arg0: i32, %arg1: i32) -> (i32, i32, i32, i32, i32) {
    %c0_i32 = arith.constant 0 : i32
    %c0_i32_0 = arith.constant 0 : i32
    %c0_i32_1 = arith.constant 0 : i32
    %c0_i32_2 = arith.constant 0 : i32
    %c0_i32_3 = arith.constant 0 : i32
    return %arg0, %c0_i32, %c0_i32_0, %c0_i32_1, %c0_i32_2 : i32, i32, i32, i32, i32
  }
  func.func @transform_1(%arg0: i32, %arg1: i32) -> (i32, i32) {
    %c0_i32 = arith.constant 0 : i32
    %c0_i32_0 = arith.constant 0 : i32
    %c0_i32_1 = arith.constant 0 : i32
    return %c0_i32, %c0_i32_0 : i32, i32
  }
  func.func @transform_2(%arg0: i32, %arg1: i32) -> (i32, i32) {
    %c0_i32 = arith.constant 0 : i32
    %c0_i32_0 = arith.constant 0 : i32
    %c0_i32_1 = arith.constant 0 : i32
    return %c0_i32, %c0_i32_0 : i32, i32
  }
  func.func @transform_3(%arg0: i32, %arg1: i32) -> (i32, i32, i32, i32) {
    %c0_i32 = arith.constant 0 : i32
    %c0_i32_0 = arith.constant 0 : i32
    %c0_i32_1 = arith.constant 0 : i32
    return %arg0, %arg1, %c0_i32, %c0_i32_0 : i32, i32, i32, i32
  }
  func.func @transform_4(%arg0: i32, %arg1: i32) -> (i32, i32) {
    %c0_i32 = arith.constant 0 : i32
    %c0_i32_0 = arith.constant 0 : i32
    %c0_i32_1 = arith.constant 0 : i32
    return %c0_i32, %c0_i32_0 : i32, i32
  }
  func.func @transform_5(%arg0: i32, %arg1: i32) -> (i32, i32, i32, i32) {
    %c0_i32 = arith.constant 0 : i32
    %c0_i32_0 = arith.constant 0 : i32
    %c0_i32_1 = arith.constant 0 : i32
    return %arg0, %arg1, %c0_i32, %c0_i32_0 : i32, i32, i32, i32
  }
}

module attributes {stable_mosaic.version = 11 : i64} {
  func.func @_conv3x3_kernel(%arg0: i32, %arg1: i32, %arg2: memref<1x1x18x18x128xbf16, #tpu.memory_space<vmem>>, %arg3: memref<1152x128xbf16, #tpu.memory_space<vmem>>, %arg4: memref<1x128xf32, #tpu.memory_space<vmem>>, %arg5: memref<1x16x16x128xbf16, #tpu.memory_space<vmem>>) attributes {dimension_semantics = [#tpu.dimension_semantics<parallel>, #tpu.dimension_semantics<parallel>], iteration_bounds = array<i64: 2, 1>, scalar_prefetch = 0 : i64, scratch_operands = 0 : i64, tpu.core_type = #tpu.core_type<tc>, window_params = [{transform_indices = @transform_0, window_bounds = array<i64: 1, 1, 18, 18, 128>}, {pipeline_mode = #tpu.pipeline_mode<synchronous>, transform_indices = @transform_1, window_bounds = array<i64: 1152, 128>}, {pipeline_mode = #tpu.pipeline_mode<synchronous>, transform_indices = @transform_2, window_bounds = array<i64: 1, 128>}, {transform_indices = @transform_3, window_bounds = array<i64: 1, 16, 16, 128>}]} {
    %c16_i32 = arith.constant 16 : i32
    %0 = arith.muli %arg1, %c16_i32 : i32
    %1 = tpu.assume_multiple %0, 8 : i32
    %c0_i32 = arith.constant 0 : i32
    %2 = arith.addi %1, %c0_i32 : i32
    %c0 = arith.constant 0 : index
    %c0_0 = arith.constant 0 : index
    %3 = arith.index_cast %2 : i32 to index
    %c0_1 = arith.constant 0 : index
    %c0_2 = arith.constant 0 : index
    %4 = vector.load %arg2[%c0, %c0_0, %3, %c0_1, %c0_2] : memref<1x1x18x18x128xbf16, #tpu.memory_space<vmem>>, vector<1x1x16x16x128xbf16>
    %5 = vector.shape_cast %4 : vector<1x1x16x16x128xbf16> to vector<16x16x128xbf16>
    %c0_i32_3 = arith.constant 0 : i32
    %6 = arith.addi %1, %c0_i32_3 : i32
    %c0_4 = arith.constant 0 : index
    %c0_5 = arith.constant 0 : index
    %7 = arith.index_cast %6 : i32 to index
    %c1 = arith.constant 1 : index
    %c0_6 = arith.constant 0 : index
    %8 = vector.load %arg2[%c0_4, %c0_5, %7, %c1, %c0_6] : memref<1x1x18x18x128xbf16, #tpu.memory_space<vmem>>, vector<1x1x16x16x128xbf16>
    %9 = vector.shape_cast %8 : vector<1x1x16x16x128xbf16> to vector<16x16x128xbf16>
    %c0_i32_7 = arith.constant 0 : i32
    %10 = arith.addi %1, %c0_i32_7 : i32
    %c0_8 = arith.constant 0 : index
    %c0_9 = arith.constant 0 : index
    %11 = arith.index_cast %10 : i32 to index
    %c2 = arith.constant 2 : index
    %c0_10 = arith.constant 0 : index
    %12 = vector.load %arg2[%c0_8, %c0_9, %11, %c2, %c0_10] : memref<1x1x18x18x128xbf16, #tpu.memory_space<vmem>>, vector<1x1x16x16x128xbf16>
    %13 = vector.shape_cast %12 : vector<1x1x16x16x128xbf16> to vector<16x16x128xbf16>
    %c1_i32 = arith.constant 1 : i32
    %14 = arith.addi %1, %c1_i32 : i32
    %c0_11 = arith.constant 0 : index
    %c0_12 = arith.constant 0 : index
    %15 = arith.index_cast %14 : i32 to index
    %c0_13 = arith.constant 0 : index
    %c0_14 = arith.constant 0 : index
    %16 = vector.load %arg2[%c0_11, %c0_12, %15, %c0_13, %c0_14] : memref<1x1x18x18x128xbf16, #tpu.memory_space<vmem>>, vector<1x1x16x16x128xbf16>
    %17 = vector.shape_cast %16 : vector<1x1x16x16x128xbf16> to vector<16x16x128xbf16>
    %c1_i32_15 = arith.constant 1 : i32
    %18 = arith.addi %1, %c1_i32_15 : i32
    %c0_16 = arith.constant 0 : index
    %c0_17 = arith.constant 0 : index
    %19 = arith.index_cast %18 : i32 to index
    %c1_18 = arith.constant 1 : index
    %c0_19 = arith.constant 0 : index
    %20 = vector.load %arg2[%c0_16, %c0_17, %19, %c1_18, %c0_19] : memref<1x1x18x18x128xbf16, #tpu.memory_space<vmem>>, vector<1x1x16x16x128xbf16>
    %21 = vector.shape_cast %20 : vector<1x1x16x16x128xbf16> to vector<16x16x128xbf16>
    %c1_i32_20 = arith.constant 1 : i32
    %22 = arith.addi %1, %c1_i32_20 : i32
    %c0_21 = arith.constant 0 : index
    %c0_22 = arith.constant 0 : index
    %23 = arith.index_cast %22 : i32 to index
    %c2_23 = arith.constant 2 : index
    %c0_24 = arith.constant 0 : index
    %24 = vector.load %arg2[%c0_21, %c0_22, %23, %c2_23, %c0_24] : memref<1x1x18x18x128xbf16, #tpu.memory_space<vmem>>, vector<1x1x16x16x128xbf16>
    %25 = vector.shape_cast %24 : vector<1x1x16x16x128xbf16> to vector<16x16x128xbf16>
    %c2_i32 = arith.constant 2 : i32
    %26 = arith.addi %1, %c2_i32 : i32
    %c0_25 = arith.constant 0 : index
    %c0_26 = arith.constant 0 : index
    %27 = arith.index_cast %26 : i32 to index
    %c0_27 = arith.constant 0 : index
    %c0_28 = arith.constant 0 : index
    %28 = vector.load %arg2[%c0_25, %c0_26, %27, %c0_27, %c0_28] : memref<1x1x18x18x128xbf16, #tpu.memory_space<vmem>>, vector<1x1x16x16x128xbf16>
    %29 = vector.shape_cast %28 : vector<1x1x16x16x128xbf16> to vector<16x16x128xbf16>
    %c2_i32_29 = arith.constant 2 : i32
    %30 = arith.addi %1, %c2_i32_29 : i32
    %c0_30 = arith.constant 0 : index
    %c0_31 = arith.constant 0 : index
    %31 = arith.index_cast %30 : i32 to index
    %c1_32 = arith.constant 1 : index
    %c0_33 = arith.constant 0 : index
    %32 = vector.load %arg2[%c0_30, %c0_31, %31, %c1_32, %c0_33] : memref<1x1x18x18x128xbf16, #tpu.memory_space<vmem>>, vector<1x1x16x16x128xbf16>
    %33 = vector.shape_cast %32 : vector<1x1x16x16x128xbf16> to vector<16x16x128xbf16>
    %c2_i32_34 = arith.constant 2 : i32
    %34 = arith.addi %1, %c2_i32_34 : i32
    %c0_35 = arith.constant 0 : index
    %c0_36 = arith.constant 0 : index
    %35 = arith.index_cast %34 : i32 to index
    %c2_37 = arith.constant 2 : index
    %c0_38 = arith.constant 0 : index
    %36 = vector.load %arg2[%c0_35, %c0_36, %35, %c2_37, %c0_38] : memref<1x1x18x18x128xbf16, #tpu.memory_space<vmem>>, vector<1x1x16x16x128xbf16>
    %37 = vector.shape_cast %36 : vector<1x1x16x16x128xbf16> to vector<16x16x128xbf16>
    %38 = tpu.concatenate %5, %9, %13, %17, %21, %25, %29, %33, %37 in 2 : vector<16x16x128xbf16>, vector<16x16x128xbf16>, vector<16x16x128xbf16>, vector<16x16x128xbf16>, vector<16x16x128xbf16>, vector<16x16x128xbf16>, vector<16x16x128xbf16>, vector<16x16x128xbf16>, vector<16x16x128xbf16> -> vector<16x16x1152xbf16>
    %39 = vector.shape_cast %38 : vector<16x16x1152xbf16> to vector<256x1152xbf16>
    %c0_39 = arith.constant 0 : index
    %c0_40 = arith.constant 0 : index
    %40 = vector.load %arg3[%c0_39, %c0_40] : memref<1152x128xbf16, #tpu.memory_space<vmem>>, vector<1152x128xbf16>
    %cst = arith.constant dense<0.000000e+00> : vector<256x128xf32>
    %41 = tpu.matmul %39, %40, %cst {dimension_numbers = #tpu.dot_dimension_numbers<[1], [0], [0], [1], [0, 0, 1, 1], [], []>} : vector<256x1152xbf16>, vector<1152x128xbf16>, vector<256x128xf32> -> vector<256x128xf32>
    %c0_41 = arith.constant 0 : index
    %c0_42 = arith.constant 0 : index
    %42 = vector.load %arg4[%c0_41, %c0_42] : memref<1x128xf32, #tpu.memory_space<vmem>>, vector<1x128xf32>
    %43 = vector.broadcast %42 : vector<1x128xf32> to vector<256x128xf32>
    %44 = arith.addf %41, %43 : vector<256x128xf32>
    %cst_43 = arith.constant 0.000000e+00 : f32
    %45 = vector.broadcast %cst_43 : f32 to vector<256x128xf32>
    %46 = arith.maximumf %44, %45 : vector<256x128xf32>
    %47 = vector.shape_cast %46 : vector<256x128xf32> to vector<1x16x16x128xf32>
    %48 = arith.truncf %47 : vector<1x16x16x128xf32> to vector<1x16x16x128xbf16>
    %c0_44 = arith.constant 0 : index
    %c0_45 = arith.constant 0 : index
    %c0_46 = arith.constant 0 : index
    %c0_47 = arith.constant 0 : index
    %49 = vector.load %arg5[%c0_44, %c0_45, %c0_46, %c0_47] : memref<1x16x16x128xbf16, #tpu.memory_space<vmem>>, vector<1x16x16x128xbf16>
    tpu.vector_store %arg5[%c0_44, %c0_45, %c0_46, %c0_47], %48 {strides = array<i32>} : memref<1x16x16x128xbf16, #tpu.memory_space<vmem>>, vector<1x16x16x128xbf16>,
    return
  }
  func.func @transform_0(%arg0: i32, %arg1: i32) -> (i32, i32, i32, i32, i32) {
    %c0_i32 = arith.constant 0 : i32
    %c0_i32_0 = arith.constant 0 : i32
    %c0_i32_1 = arith.constant 0 : i32
    %c0_i32_2 = arith.constant 0 : i32
    %c0_i32_3 = arith.constant 0 : i32
    return %arg0, %c0_i32, %c0_i32_0, %c0_i32_1, %c0_i32_2 : i32, i32, i32, i32, i32
  }
  func.func @transform_1(%arg0: i32, %arg1: i32) -> (i32, i32) {
    %c0_i32 = arith.constant 0 : i32
    %c0_i32_0 = arith.constant 0 : i32
    %c0_i32_1 = arith.constant 0 : i32
    return %c0_i32, %c0_i32_0 : i32, i32
  }
  func.func @transform_2(%arg0: i32, %arg1: i32) -> (i32, i32) {
    %c0_i32 = arith.constant 0 : i32
    %c0_i32_0 = arith.constant 0 : i32
    %c0_i32_1 = arith.constant 0 : i32
    return %c0_i32, %c0_i32_0 : i32, i32
  }
  func.func @transform_3(%arg0: i32, %arg1: i32) -> (i32, i32, i32, i32) {
    %c0_i32 = arith.constant 0 : i32
    %c0_i32_0 = arith.constant 0 : i32
    %c0_i32_1 = arith.constant 0 : i32
    return %arg0, %arg1, %c0_i32, %c0_i32_0 : i32, i32, i32, i32
  }
}

</mosaic_0001>

<bundles_post_ra>
// kernel: residual_unit_forward.2
= control target key start
LH: loop header
LB: loop body
LE: loop exit
PB: predicated region body
PF: predicated region fallthrough
CT: control target
= control target key end

     0   :  { %s4321_s12 = smov 0   ;;  %s4323_s13 = smov 0   ;;  %s5364_s0 = inlined_call_operand.vmem [shape: bf16[2,1,18,18,128], index: 0, kind: input, shape index: {}]   ;;  %s5365_s1 = inlined_call_operand.vmem [shape: bf16[1152,128], index: 1, kind: input, shape index: {}]   ;;  %s5366_s2 = inlined_call_operand.vmem [shape: f32[1,128], index: 2, kind: input, shape index: {}]   ;;  %s5367_s3 = inlined_call_operand.vmem [shape: bf16[2,16,16,128], index: 3, kind: output, shape index: {}]  }
   0x1   :  { %s4325_s14 = smov 0  }
   0x2 LB: > { %s25_s15 = sadd.s32 1, %s4295_s13  ;;  %p3372_p0 = scmp.ge.s32.totalorder %s4299_s14, 1  ;;  %s4299_s14 = sphi %s4325_s14, %s13_s14   ;;  %s4295_s13 = sphi %s4323_s13, %s5426_s13   ;;  %s4291_s12 = sphi %s4321_s12, %s5425_s12  }
   0x3   : > { %p27_p1 = scmp.ge.s32.totalorder %s25_s15, 2  ;;  %p151_p2 = scmp.lt.s32.totalorder %s4299_s14, 3 }
   0x5   : > { %s5428_s15 = smov (%p27_p1, %s25_s15), 0  ;;  %p152_p3 = pnand %p3372_p0, %p151_p2 }
   0x7   : > { %155 = sbr.rel (%p152_p3) target bundleno = 755 (0x2f3), region = 32 }
   0xc   : > { %v3802_v0 = vld [vmem:[%s5365_s1 + $0x38] sm:$0xff]  ;;  %v3801_v1 = vld [vmem:[%s5365_s1 + $0x30] sm:$0xff]  ;;  %v3800_v2 = vld [vmem:[%s5365_s1 + $0x28] sm:$0xff]  ;;  %p180_p4 = scmp.lt.s32.totalorder %s4291_s12, 1  ;;  %vm544_vm0 = vsmask.f32 7424 }
   0xd   : > { %4153 = vmatpush.bf16.msra.mxu1 %v3802_v0  ;;  %4154 = vmatpush.bf16.msra.mxu2 %v3802_v0  ;;  %v3799_v3 = vld [vmem:[%s5365_s1 + $0x20] sm:$0xff]  ;;  %v3798_v4 = vld [vmem:[%s5365_s1 + $0x18] sm:$0xff]  ;;  %v3797_v5 = vld [vmem:[%s5365_s1 + $0x10] sm:$0xff]  ;;  %vm801_vm1 = vcmask 1046528  }
   0xe   : > { %4155 = vmatpush.bf16.msra.mxu3 %v3802_v0  ;;  %2374 = vmatpush.bf16.msra.mxu0 %v3802_v0  ;;  %s5430_s12 = smov (!%p180_p4, %s4291_s12), 1  ;;  %v3796_v6 = vld [vmem:[%s5365_s1 + $0x8] sm:$0xff]  ;;  %v3795_v7 = vld [vmem:[%s5365_s1] sm:$0xff]  ;;  %v3818_v8 = vld [vmem:[%s5365_s1 + $0xb8] sm:$0xff] }
   0xf   : > { %s4177_s30 = smul.u32 216, %s5430_s12  ;;  %v3826_v9 = vld [vmem:[%s5365_s1 + $0xf8] sm:$0xff]  ;;  %v3817_v16 = vld [vmem:[%s5365_s1 + $0xb0] sm:$0xff]  ;;  %v3816_v20 = vld [vmem:[%s5365_s1 + $0xa8] sm:$0xff]  ;;  %s3794_s6 = sshll.u32 %s5430_s12, 7 }
  0x10   : > { %v3810_v12 = vld [vmem:[%s5365_s1 + $0x78] sm:$0xff]  ;;  %v3825_v17 = vld [vmem:[%s5365_s1 + $0xf0] sm:$0xff]  ;;  %v3824_v21 = vld [vmem:[%s5365_s1 + $0xe8] sm:$0xff]  ;;  %s5235_s10 = scalar_lea.vmem %s5367_s3, %s3794_s6 }
  0x11   : > { %4156 = vmatpush.bf16.msra.mxu1 %v3801_v1  ;;  %4157 = vmatpush.bf16.msra.mxu2 %v3801_v1  ;;  %s4373_s8 = scalar_lea.vmem %s5364_s0, %s4177_s30  ;;  %v3834_v15 = vld [vmem:[%s5365_s1 + $0x138] sm:$0xff]  ;;  %v3809_v18 = vld [vmem:[%s5365_s1 + $0x70] sm:$0xff]  ;;  %v3808_v30 = vld [vmem:[%s5365_s1 + $0x68] sm:$0xff] }
  0x12   : > { %4158 = vmatpush.bf16.msra.mxu3 %v3801_v1  ;;  %2375 = vmatpush.bf16.msra.mxu0 %v3801_v1  ;;  %v4382_v10 = vld [vmem:[%s4373_s8 + $0x30] sm:$0xff]   ;;  %v4385_v11 = vld [vmem:[%s4373_s8 + $0x60] sm:$0xff]   ;;  %v3832_v31 = vld [vmem:[%s5365_s1 + $0x128] sm:$0xff] }
  0x13   : > { %v4048_v13 = vld [vmem:[%s4373_s8 + $0x90] sm:$0xff]   ;;  %v4392_v14 = vld [vmem:[%s4373_s8] sm:$0xff]   ;;  %v3814_v36 = vld [vmem:[%s5365_s1 + $0x98] sm:$0xff] }
  0x14   : > { %v3833_v19 = vld [vmem:[%s5365_s1 + $0x130] sm:$0xff]  ;;  %v4419_v22 = vld [vmem:[%s4373_s8 + $0x3c] sm:$0xff]   ;;  %v3812_v44 = vld [vmem:[%s5365_s1 + $0x88] sm:$0xff] }
  0x15   : > { %4159 = vmatpush.bf16.msra.mxu1 %v3800_v2  ;;  %4160 = vmatpush.bf16.msra.mxu2 %v3800_v2  ;;  %v4422_v23 = vld [vmem:[%s4373_s8 + $0x3c] sm:$0xf0]  ;;  %v4425_v24 = vld [vmem:[%s4373_s8 + $0x6c] sm:$0xff]   ;;  %v3822_v37 = vld [vmem:[%s5365_s1 + $0xd8] sm:$0xff] }
  0x16   : > { %4161 = vmatpush.bf16.msra.mxu3 %v3800_v2  ;;  %2376 = vmatpush.bf16.msra.mxu0 %v3800_v2  ;;  %v4428_v25 = vld [vmem:[%s4373_s8 + $0x6c] sm:$0xf0]  ;;  %v4431_v26 = vld [vmem:[%s4373_s8 + $0x9c] sm:$0xff]   ;;  %v3820_v45 = vld [vmem:[%s5365_s1 + $0xc8] sm:$0xff] }
  0x17   : > { %v4434_v27 = vld [vmem:[%s4373_s8 + $0x9c] sm:$0xf0]  ;;  %v4437_v28 = vld [vmem:[%s4373_s8 + $0xc] sm:$0xff]   ;;  %v3806_v38 = vld [vmem:[%s5365_s1 + $0x58] sm:$0xff] }
  0x18   : > { %v4440_v29 = vld [vmem:[%s4373_s8 + $0xc] sm:$0xf0]  ;;  %v3815_v32 = vld [vmem:[%s5365_s1 + $0xa0] sm:$0xff]  ;;  %v3830_v39 = vld [vmem:[%s5365_s1 + $0x118] sm:$0xff] }
  0x19   : > { %4162 = vmatpush.bf16.msra.mxu1 %v3799_v3  ;;  %4163 = vmatpush.bf16.msra.mxu2 %v3799_v3  ;;  %v3823_v33 = vld [vmem:[%s5365_s1 + $0xe0] sm:$0xff]  ;;  %v3813_v40 = vld [vmem:[%s5365_s1 + $0x90] sm:$0xff]  ;;  %v3804_v46 = vld [vmem:[%s5365_s1 + $0x48] sm:$0xff] }
  0x1a   : > { %4164 = vmatpush.bf16.msra.mxu3 %v3799_v3  ;;  %2377 = vmatpush.bf16.msra.mxu0 %v3799_v3  ;;  %v3807_v34 = vld [vmem:[%s5365_s1 + $0x60] sm:$0xff]  ;;  %v3821_v41 = vld [vmem:[%s5365_s1 + $0xd0] sm:$0xff]  ;;  %v3828_v47 = vld [vmem:[%s5365_s1 + $0x108] sm:$0xff] }
  0x1b   : > { %v3831_v35 = vld [vmem:[%s5365_s1 + $0x120] sm:$0xff]  ;;  %v3805_v42 = vld [vmem:[%s5365_s1 + $0x50] sm:$0xff]  ;;  %v4513_v52 = vld [vmem:[%s4373_s8 + $0x48] sm:$0xff]  }
  0x1c   : > { %v3829_v43 = vld [vmem:[%s5365_s1 + $0x110] sm:$0xff]  ;;  %v3811_v48 = vld [vmem:[%s5365_s1 + $0x80] sm:$0xff]  ;;  %v4516_v53 = vld [vmem:[%s4373_s8 + $0x78] sm:$0xff]  }
  0x1d   : > { %4165 = vmatpush.bf16.msra.mxu1 %v3798_v4  ;;  %4166 = vmatpush.bf16.msra.mxu2 %v3798_v4  ;;  %v3819_v49 = vld [vmem:[%s5365_s1 + $0xc0] sm:$0xff]  ;;  %v4049_v54 = vld [vmem:[%s4373_s8 + $0xa8] sm:$0xff]   ;;  %v4520_v55 = vld [vmem:[%s4373_s8 + $0x18] sm:$0xff]  }
  0x1e   : > { %4167 = vmatpush.bf16.msra.mxu3 %v3798_v4  ;;  %2378 = vmatpush.bf16.msra.mxu0 %v3798_v4  ;;  %v3803_v50 = vld [vmem:[%s5365_s1 + $0x40] sm:$0xff]  ;;  %v3850_v56 = vld [vmem:[%s5365_s1 + $0x1b8] sm:$0xff]  ;;  %v4547_v63 = vld [vmem:[%s4373_s8 + $0x84] sm:$0xf0] }
  0x1f   : > { %v3827_v51 = vld [vmem:[%s5365_s1 + $0x100] sm:$0xff]  ;;  %v3858_v57 = vld [vmem:[%s5365_s1 + $0x1f8] sm:$0xff]  ;;  %v4559_v3 = vld [vmem:[%s4373_s8 + $0x24] sm:$0xf0] }
  0x20   : > { %v3842_v58 = vld [vmem:[%s5365_s1 + $0x178] sm:$0xff]  ;;  %v4544_v62 = vld [vmem:[%s4373_s8 + $0x84] sm:$0xff]   ;;  %v3376_v4 = vld [vmem:[%s4373_s8 + $0xc] sm:$0xff]  }
  0x21   : > { %4168 = vmatpush.bf16.msra.mxu1 %v3797_v5  ;;  %4169 = vmatpush.bf16.msra.mxu2 %v3797_v5  ;;  %v3866_v59 = vld [vmem:[%s5365_s1 + $0x238] sm:$0xff]  ;;  %v4556_v2 = vld [vmem:[%s4373_s8 + $0x24] sm:$0xff]  }
  0x22   : > { %4170 = vmatpush.bf16.msra.mxu3 %v3797_v5  ;;  %2379 = vmatpush.bf16.msra.mxu0 %v3797_v5  ;;  %v4538_v60 = vld [vmem:[%s4373_s8 + $0x54] sm:$0xff]   ;;  %v4563_v5 = vld [vmem:[%s4373_s8 + $0xc] sm:$0xf0] }
  0x23   : > { %v4541_v61 = vld [vmem:[%s4373_s8 + $0x54] sm:$0xf0] }
  0x24   : > { %v4550_v0 = vld [vmem:[%s4373_s8 + $0xb4] sm:$0xff]  }
  0x25   : > { %4171 = vmatpush.bf16.msra.mxu1 %v3796_v6  ;;  %4172 = vmatpush.bf16.msra.mxu2 %v3796_v6  ;;  %v4553_v1 = vld [vmem:[%s4373_s8 + $0xb4] sm:$0xf0] }
  0x26   : > { %4173 = vmatpush.bf16.msra.mxu3 %v3796_v6  ;;  %2380 = vmatpush.bf16.msra.mxu0 %v3796_v6  ;;  %v232_v6 = vld [vmem:[%s4373_s8 + $0x8] sm:$0x1] }
  0x29   : > { %4174 = vmatpush.bf16.msra.mxu1 %v3795_v7  ;;  %4175 = vmatpush.bf16.msra.mxu2 %v3795_v7 }
  0x2a   : > { %4176 = vmatpush.bf16.msra.mxu3 %v3795_v7  ;;  %2381 = vmatpush.bf16.msra.mxu0 %v3795_v7  ;;  %v3408_v7 = vld [vmem:[%s4373_s8 + $0x14] sm:$0x1] }
  0x2c   : > { %2402 = vmatmul.bf16.vlgmr.msra.gmra.mxu1 %v4382_v10  ;;  %2422 = vmatmul.bf16.vlgmr.msra.gmra.mxu2 %v4385_v11 }
  0x2d   : > { %2552 = vmatpush.bf16.msrb.mxu2 %v3818_v8  ;;  %2442 = vmatmul.bf16.vlgmr.msra.gmra.mxu3 %v4048_v13  ;;  %v512_v8 = vunpack.c.l.b16 %v232_v6 }
  0x2e   : > { %2641 = vmatpush.bf16.msrb.mxu3 %v3826_v9  ;;  %2382 = vmatmul.bf16.vlgmr.msra.gmra.mxu0 %v4392_v14  ;;  %v978_v9 = vunpack.c.l.b16 %v3408_v7  ;;  %v570_v7 = vshrl.u32 %v4520_v55, 16 }
  0x2f   : > { %2463 = vmatpush.bf16.msrb.mxu1 %v3810_v12  ;;  %2730 = vmatpush.bf16.msrb.mxu0 %v3834_v15  ;;  %v548_v12 = vshll.u32 %v4392_v14, 16  ;;  %v528_v13 = vpack.c.b16 %v512_v8, %v512_v8  ;;  %v4066_v15 = vld [vmem:[%s4373_s8] sm:$0xf0] }
  0x31   : > { %2553 = vmatpush.bf16.msrb.mxu2 %v3817_v16  ;;  %v4067_v16 = vld [vmem:[%s4373_s8] sm:$0xe] }
  0x32   : > { %2642 = vmatpush.bf16.msrb.mxu3 %v3825_v17  ;;  %v1013_v17 = vshll.u32 %v3376_v4, 16 }
  0x33   : > { %2464 = vmatpush.bf16.msrb.mxu1 %v3809_v18  ;;  %2731 = vmatpush.bf16.msrb.mxu0 %v3833_v19  ;;  %v4574_v18 = vpack.c.b16 %v978_v9, %v978_v9  ;;  %v546_v19 = vshrl.u32 %v4392_v14, 16 }
  0x35   : > { %2554 = vmatpush.bf16.msrb.mxu2 %v3816_v20  ;;  %v550_v20 = vrot.slane %v548_v12, 1  ;;  %v3380_v12 = vld [vmem:[%s4373_s8 + $0x24] sm:$0xff]  }
  0x36   : > { %2643 = vmatpush.bf16.msrb.mxu3 %v3824_v21  ;;  %v553_v21 = vshll.u32 %v528_v13, 16 }
  0x37   : > { %2465 = vmatpush.bf16.msrb.mxu1 %v3808_v30  ;;  %2732 = vmatpush.bf16.msrb.mxu0 %v3832_v31  ;;  %v4068_v30 = vor.u32 %v4067_v16, %v4066_v15  ;;  %v1011_v31 = vshrl.u32 %v3376_v4, 16 }
  0x39   : > { %2555 = vmatpush.bf16.msrb.mxu2 %v3815_v32  ;;  %v1015_v32 = vrot.slane %v1013_v17, 1 }
  0x3a   : > { %2644 = vmatpush.bf16.msrb.mxu3 %v3823_v33  ;;  %v1018_v33 = vshll.u32 %v4574_v18, 16 }
  0x3b   : > { %2466 = vmatpush.bf16.msrb.mxu1 %v3807_v34  ;;  %2733 = vmatpush.bf16.msrb.mxu0 %v3831_v35  ;;  %v551_v34 = vor.u32 %v550_v20, %v546_v19  ;;  %v555_v35 = vrot.slane %v553_v21, 1  ;;  %v234_v21 = vld [vmem:[%s4373_s8 + $0x20] sm:$0x1] }
  0x3c   : > { %2407 = vmatmul.bf16.gmra.mxu1 %v4419_v22  ;;  %2427 = vmatmul.bf16.gmra.mxu2 %v4425_v24 }
  0x3d   : > { %2556 = vmatpush.bf16.msrb.mxu2 %v3814_v36  ;;  %2447 = vmatmul.bf16.gmra.mxu3 %v4431_v26  ;;  %v802_v36 = vrot.slane %v4068_v30, 1  ;;  %v556_v14 = vsel %vm544_vm0, %v551_v34, %v555_v35  ;;  %v3410_v30 = vld [vmem:[%s4373_s8 + $0x2c] sm:$0x1] }
  0x3e   : > { %2645 = vmatpush.bf16.msrb.mxu3 %v3822_v37  ;;  %2387 = vmatmul.bf16.gmra.mxu0 %v4437_v28  ;;  %v803_v37 = vrot.slane %v528_v13, 1  ;;  %v4606_v13 = vld [vmem:[%s4373_s8 + $0x24] sm:$0xf0]  ;;  %v980_v34 = vunpack.c.l.b16 %v3410_v30 }
  0x3f   : > { %2467 = vmatpush.bf16.msrb.mxu1 %v3806_v38  ;;  %2734 = vmatpush.bf16.msrb.mxu0 %v3830_v39  ;;  %v1016_v38 = vor.u32 %v1015_v32, %v1011_v31  ;;  %v1020_v39 = vrot.slane %v1018_v33, 1  ;;  %v514_v32 = vunpack.c.l.b16 %v234_v21 }
  0x41   : > { %2557 = vmatpush.bf16.msrb.mxu2 %v3813_v40  ;;  %v233_v40 = vld [vmem:[%s4373_s8 + $0x14] sm:$0x1]  ;;  %v530_v35 = vpack.c.b16 %v514_v32, %v514_v32 }
  0x42   : > { %2646 = vmatpush.bf16.msrb.mxu3 %v3821_v41  ;;  %v3409_v41 = vld [vmem:[%s4373_s8 + $0x20] sm:$0x1] }
  0x43   : > { %2468 = vmatpush.bf16.msrb.mxu1 %v3805_v42  ;;  %2735 = vmatpush.bf16.msrb.mxu0 %v3829_v43  ;;  %v804_v42 = vsel %vm801_vm1, %v802_v36, %v803_v37  ;;  %v513_v43 = vunpack.c.l.b16 %v233_v40  ;;  %v4069_v36 = vld [vmem:[%s4373_s8 + $0x18] sm:$0xf0]  ;;  %v4070_v37 = vld [vmem:[%s4373_s8 + $0x18] sm:$0xe]  ;;  %v577_v40 = vshll.u32 %v530_v35, 16 }
  0x45   : > { %2558 = vmatpush.bf16.msrb.mxu2 %v3812_v44  ;;  %v1021_v44 = vsel %vm544_vm0, %v1016_v38, %v1020_v39  ;;  %v4616_v38 = vpack.c.b16 %v980_v34, %v980_v34  ;;  %v1037_v39 = vshll.u32 %v3380_v12, 16 }
  0x46   : > { %2647 = vmatpush.bf16.msrb.mxu3 %v3820_v45  ;;  %v4206_v45 = vld [vmem:[%s4373_s8 + $0xc] sm:$0xe] }
  0x47   : > { %2469 = vmatpush.bf16.msrb.mxu1 %v3804_v46  ;;  %2736 = vmatpush.bf16.msrb.mxu0 %v3828_v47  ;;  %v979_v46 = vunpack.c.l.b16 %v3409_v41  ;;  %v529_v47 = vpack.c.b16 %v513_v43, %v513_v43  ;;  %v4207_v6 = vor.u32 %v4206_v45, %v4440_v29  ;;  %v4071_v41 = vor.u32 %v4070_v37, %v4069_v36  ;;  %v236_v37 = vld [vmem:[%s4373_s8 + $0x38] sm:$0x1] }
  0x48   : > { %v1042_v43 = vshll.u32 %v4616_v38, 16 }
  0x49   : > { %2559 = vmatpush.bf16.msrb.mxu2 %v3811_v48  ;;  %v560_v48 = vshll.u32 %v4437_v28, 16  ;;  %v805_v17 = vrot.slane %v4207_v6, 1  ;;  %v806_v19 = vrot.slane %v529_v47, 1  ;;  %v808_v45 = vrot.slane %v4071_v41, 1 }
  0x4a   : > { %2648 = vmatpush.bf16.msrb.mxu3 %v3819_v49  ;;  %v3849_v49 = vld [vmem:[%s5365_s1 + $0x1b0] sm:$0xff]  ;;  %v584_v6 = vshll.u32 %v4556_v2, 16 }
  0x4b   : > { %2470 = vmatpush.bf16.msrb.mxu1 %v3803_v50  ;;  %2737 = vmatpush.bf16.msrb.mxu0 %v3827_v51  ;;  %v3857_v50 = vld [vmem:[%s5365_s1 + $0x1f0] sm:$0xff]  ;;  %v807_v31 = vsel %vm801_vm1, %v805_v17, %v806_v19 }
  0x4c   : > { %2412 = vmatmul.bf16.gmra.mxu1 %v4513_v52  ;;  %2432 = vmatmul.bf16.gmra.mxu2 %v4516_v53  ;;  %v3841_v51 = vld [vmem:[%s5365_s1 + $0x170] sm:$0xff] }
  0x4d   : > { %2452 = vmatmul.bf16.gmra.mxu3 %v4049_v54  ;;  %2908 = vmatpush.bf16.msra.mxu2 %v3850_v56  ;;  %v572_v54 = vshll.u32 %v4520_v55, 16  ;;  %v4595_v56 = vpack.c.b16 %v979_v46, %v979_v46  ;;  %v809_v46 = vrot.slane %v530_v35, 1 }
  0x4e   : > { %2392 = vmatmul.bf16.gmra.mxu0 %v4520_v55  ;;  %2997 = vmatpush.bf16.msra.mxu3 %v3858_v57  ;;  %v3865_v57 = vld [vmem:[%s5365_s1 + $0x230] sm:$0xff] }
  0x4f   : > { %2819 = vmatpush.bf16.msra.mxu1 %v3842_v58  ;;  %3086 = vmatpush.bf16.msra.mxu0 %v3866_v59  ;;  %v558_v58 = vshrl.u32 %v4437_v28, 16  ;;  %v562_v59 = vrot.slane %v560_v48, 1  ;;  %v574_v8 = vrot.slane %v572_v54, 1  ;;  %v1030_v9 = vshll.u32 %v4595_v56, 16  ;;  %v235_v48 = vld [vmem:[%s4373_s8 + $0x2c] sm:$0x1] }
  0x50   : > { %v515_v54 = vunpack.c.l.b16 %v235_v48 }
  0x51   : > { %2909 = vmatpush.bf16.msra.mxu2 %v3849_v49  ;;  %v563_v15 = vor.u32 %v562_v59, %v558_v58  ;;  %v1028_v28 = vor.u32 %v574_v8, %v570_v7  ;;  %v1032_v20 = vrot.slane %v1030_v9, 1  ;;  %v3411_v49 = vld [vmem:[%s4373_s8 + $0x38] sm:$0x1]  ;;  %v4209_v58 = vld [vmem:[%s4373_s8 + $0x24] sm:$0xe]  ;;  %v3848_v7 = vld [vmem:[%s5365_s1 + $0x1a8] sm:$0xff] }
  0x52   : > { %2998 = vmatpush.bf16.msra.mxu3 %v3857_v50  ;;  %v981_v59 = vunpack.c.l.b16 %v3411_v49  ;;  %v3856_v8 = vld [vmem:[%s5365_s1 + $0x1e8] sm:$0xff]  ;;  %v596_v9 = vshll.u32 %v4382_v10, 16  ;;  %v4210_v19 = vor.u32 %v4209_v58, %v4559_v3 }
  0x53   : > { %2820 = vmatpush.bf16.msra.mxu1 %v3841_v51  ;;  %3087 = vmatpush.bf16.msra.mxu0 %v3865_v57  ;;  %v1033_v33 = vsel %vm544_vm0, %v1028_v28, %v1032_v20  ;;  %v810_v51 = vsel %vm801_vm1, %v808_v45, %v809_v46  ;;  %v594_v20 = vshrl.u32 %v4382_v10, 16  ;;  %v4072_v45 = vld [vmem:[%s4373_s8 + $0x30] sm:$0xf0]  ;;  %v4073_v46 = vld [vmem:[%s4373_s8 + $0x30] sm:$0xe] }
  0x54   : > { %v598_v21 = vrot.slane %v596_v9, 1  ;;  %v4074_v49 = vor.u32 %v4073_v46, %v4072_v45  ;;  %v618_v45 = vshrl.u32 %v4513_v52, 16 }
  0x55   : > { %2910 = vmatpush.bf16.msra.mxu2 %v3848_v7  ;;  %v237_v7 = vld [vmem:[%s4373_s8 + $0x44] sm:$0x1] }
  0x56   : > { %2999 = vmatpush.bf16.msra.mxu3 %v3856_v8  ;;  %v1052_v35 = vor.u32 %v598_v21, %v594_v20  ;;  %v814_v58 = vrot.slane %v4074_v49, 1  ;;  %v3413_v8 = vld [vmem:[%s4373_s8 + $0x50] sm:$0x1]  ;;  %v4212_v21 = vld [vmem:[%s4373_s8 + $0x3c] sm:$0xe]  ;;  %v4705_v49 = vld [vmem:[%s4373_s8 + $0x54] sm:$0xff]  }
  0x5c   : > { %2417 = vmatmul.bf16.gmra.mxu1 %v4538_v60  ;;  %2437 = vmatmul.bf16.gmra.mxu2 %v4544_v62 }
  0x5d   : > { %2457 = vmatmul.bf16.gmra.mxu3 %v4550_v0 }
  0x5e   : > { %2397 = vmatmul.bf16.gmra.mxu0 %v4556_v2 }
  0x6c   : > { %2471 = vmatmul.bf16.vlgmr.msrb.gmra.mxu1 %v556_v14  ;;  %2560 = vmatmul.bf16.vlgmr.msrb.gmra.mxu2 %v804_v42  ;;  %v1035_v14 = vshrl.u32 %v3380_v12, 16  ;;  %v1039_v42 = vrot.slane %v1037_v39, 1  ;;  %v3412_v39 = vld [vmem:[%s4373_s8 + $0x44] sm:$0x1] }
  0x6d   : > { %2649 = vmatmul.bf16.vlgmr.msrb.gmra.mxu3 %v3376_v4  ;;  %v565_v4 = vshll.u32 %v529_v47, 16  ;;  %v1044_v47 = vrot.slane %v1042_v43, 1  ;;  %v982_v43 = vunpack.c.l.b16 %v3412_v39  ;;  %v606_v39 = vshrl.u32 %v4419_v22, 16 }
  0x6e   : > { %2738 = vmatmul.bf16.vlgmr.msrb.gmra.mxu0 %v1021_v44  ;;  %v579_v44 = vrot.slane %v577_v40, 1 }
  0x6f   : > { %v567_v16 = vrot.slane %v565_v4, 1  ;;  %v531_v4 = vpack.c.b16 %v515_v54, %v515_v54 }
  0x70   : > { %v580_v50 = vsel %vm544_vm0, %v1028_v28, %v579_v44  ;;  %v3840_v28 = vld [vmem:[%s5365_s1 + $0x168] sm:$0xff] }
  0x71   : > { %v568_v29 = vsel %vm544_vm0, %v563_v15, %v567_v16  ;;  %v4633_v15 = vpack.c.b16 %v981_v59, %v981_v59  ;;  %v586_v16 = vrot.slane %v584_v6, 1  ;;  %v589_v17 = vshll.u32 %v531_v4, 16  ;;  %2821 = vmatpush.bf16.msra.mxu1 %v3840_v28 }
  0x72   : > { %v812_v34 = vrot.slane %v531_v4, 1 }
  0x73   : > { %5375 = vst [vmem:[#allocation2_spill] sm:$0xff] %v4633_v15  ;;  %v1054_v30 = vshll.u32 %v4633_v15, 16  ;;  %v591_v32 = vrot.slane %v589_v17, 1  ;;  %v517_v17 = vunpack.c.l.b16 %v237_v7 }
  0x75   : > { %v1056_v36 = vrot.slane %v1054_v30, 1  ;;  %v983_v30 = vunpack.c.l.b16 %v3413_v8  ;;  %v3414_v8 = vld [vmem:[%s4373_s8 + $0x5c] sm:$0x1] }
  0x7c   : > { %2476 = vmatmul.bf16.gmra.mxu1 %v568_v29  ;;  %2565 = vmatmul.bf16.gmra.mxu2 %v807_v31  ;;  %v3384_v29 = vld [vmem:[%s4373_s8 + $0x3c] sm:$0xff]  }
  0x7d   : > { %2654 = vmatmul.bf16.gmra.mxu3 %v4520_v55  ;;  %v1040_v55 = vor.u32 %v1039_v42, %v1035_v14  ;;  %v4644_v31 = vld [vmem:[%s4373_s8 + $0x3c] sm:$0xf0]  ;;  %v516_v14 = vunpack.c.l.b16 %v236_v37  ;;  %v1057_v42 = vsel %vm544_vm0, %v1052_v35, %v1056_v36 }
  0x7e   : > { %2743 = vmatmul.bf16.gmra.mxu0 %v1033_v33  ;;  %5376 = vst [vmem:[#allocation3_spill] sm:$0xff] %v4644_v31  ;;  %v811_v33 = vrot.slane %v4210_v19, 1 }
  0x7f   : > { %v1045_v57 = vsel %vm544_vm0, %v1040_v55, %v1044_v47  ;;  %v532_v44 = vpack.c.b16 %v516_v14, %v516_v14  ;;  %v4657_v55 = vpack.c.b16 %v982_v43, %v982_v43  ;;  %v1061_v47 = vshll.u32 %v3384_v29, 16 }
  0x80   : > { %v813_v41 = vsel %vm801_vm1, %v811_v33, %v812_v34  ;;  %v3855_v33 = vld [vmem:[%s5365_s1 + $0x1e0] sm:$0xff]  ;;  %v620_v34 = vshll.u32 %v4513_v52, 16  ;;  %v4213_v43 = vor.u32 %v4212_v21, %v4422_v23 }
  0x81   : > { %5377 = vst [vmem:[#allocation4_spill] sm:$0xff] %v4657_v55  ;;  %v601_v48 = vshll.u32 %v532_v44, 16  ;;  %v1066_v54 = vshll.u32 %v4657_v55, 16  ;;  %v815_v59 = vrot.slane %v532_v44, 1  ;;  %3000 = vmatpush.bf16.msra.mxu3 %v3855_v33  ;;  %v3839_v44 = vld [vmem:[%s5365_s1 + $0x160] sm:$0xff]  ;;  %v984_v33 = vunpack.c.l.b16 %v3414_v8 }
  0x82   : > { %v622_v46 = vrot.slane %v620_v34, 1  ;;  %2822 = vmatpush.bf16.msra.mxu1 %v3839_v44  ;;  %v3863_v23 = vld [vmem:[%s5365_s1 + $0x220] sm:$0xff]  ;;  %v3418_v55 = vld [vmem:[%s4373_s8 + $0x8c] sm:$0x1] }
  0x83   : > { %v1068_v6 = vrot.slane %v1066_v54, 1 }
  0x8c   : > { %2481 = vmatmul.bf16.gmra.mxu1 %v580_v50  ;;  %2570 = vmatmul.bf16.gmra.mxu2 %v810_v51  ;;  %v1059_v50 = vshrl.u32 %v3384_v29, 16  ;;  %v1063_v51 = vrot.slane %v1061_v47, 1 }
  0x8d   : > { %2659 = vmatmul.bf16.gmra.mxu3 %v3380_v12  ;;  %v582_v12 = vshrl.u32 %v4556_v2, 16  ;;  %v3864_v2 = vld [vmem:[%s5365_s1 + $0x228] sm:$0xff] }
  0x8e   : > { %2748 = vmatmul.bf16.gmra.mxu0 %v1045_v57  ;;  %v603_v57 = vrot.slane %v601_v48, 1  ;;  %v1064_v4 = vor.u32 %v1063_v51, %v1059_v50  ;;  %v4708_v50 = vld [vmem:[%s4373_s8 + $0x54] sm:$0xf0] }
  0x8f   : > { %v587_v3 = vor.u32 %v586_v16, %v582_v12  ;;  %3088 = vmatpush.bf16.msra.mxu0 %v3864_v2  ;;  %v816_v16 = vsel %vm801_vm1, %v814_v58, %v815_v59  ;;  %v533_v2 = vpack.c.b16 %v517_v17, %v517_v17  ;;  %5380 = vst [vmem:[#allocation7_spill] sm:$0xff] %v4708_v50 }
  0x90   : > { %v604_v12 = vsel %vm544_vm0, %v1052_v35, %v603_v57  ;;  %v1069_v20 = vsel %vm544_vm0, %v1064_v4, %v1068_v6  ;;  %v4684_v35 = vpack.c.b16 %v983_v30, %v983_v30  ;;  %v817_v57 = vrot.slane %v4213_v43, 1  ;;  %v238_v6 = vld [vmem:[%s4373_s8 + $0x50] sm:$0x1] }
  0x91   : > { %v592_v40 = vsel %vm544_vm0, %v587_v3, %v591_v32  ;;  %v608_v3 = vshll.u32 %v4419_v22, 16  ;;  %v3847_v32 = vld [vmem:[%s5365_s1 + $0x1a0] sm:$0xff]  ;;  %v818_v58 = vrot.slane %v533_v2, 1  ;;  %v1076_v59 = vor.u32 %v622_v46, %v618_v45 }
  0x92   : > { %5378 = vst [vmem:[#allocation5_spill] sm:$0xff] %v4684_v35  ;;  %2911 = vmatpush.bf16.msra.mxu2 %v3847_v32  ;;  %v1078_v48 = vshll.u32 %v4684_v35, 16  ;;  %v518_v30 = vunpack.c.l.b16 %v238_v6 }
  0x93   : > { %v610_v14 = vrot.slane %v608_v3, 1  ;;  %3089 = vmatpush.bf16.msra.mxu0 %v3863_v23  ;;  %v819_v21 = vsel %vm801_vm1, %v817_v57, %v818_v58 }
  0x94   : > { %v1080_v4 = vrot.slane %v1078_v48, 1  ;;  %v534_v34 = vpack.c.b16 %v518_v30, %v518_v30 }
  0x95   : > { %v611_v51 = vor.u32 %v610_v14, %v606_v39  ;;  %v4732_v39 = vpack.c.b16 %v984_v33, %v984_v33 }
  0x96   : > { %v1081_v32 = vsel %vm544_vm0, %v1076_v59, %v1080_v4  ;;  %v821_v6 = vrot.slane %v534_v34, 1 }
  0x97   : > { %5382 = vst [vmem:[#allocation9_spill] sm:$0xff] %v4732_v39  ;;  %v1090_v57 = vshll.u32 %v4732_v39, 16  ;;  %v3416_v39 = vld [vmem:[%s4373_s8 + $0x74] sm:$0x1] }
  0x99   : > { %v1092_v8 = vrot.slane %v1090_v57, 1  ;;  %v3854_v57 = vld [vmem:[%s5365_s1 + $0x1d8] sm:$0xff] }
  0x9a   : > { %3001 = vmatpush.bf16.msra.mxu3 %v3854_v57 }
  0x9c   : > { %2486 = vmatmul.bf16.gmra.mxu1 %v592_v40  ;;  %2575 = vmatmul.bf16.gmra.mxu2 %v813_v41 }
  0x9d   : > { %2664 = vmatmul.bf16.gmra.mxu3 %v4382_v10  ;;  %v4663_v10 = vld [vmem:[%s5366_s2] ss:$0 sm:$0xff] }
  0x9e   : > { %2753 = vmatmul.bf16.gmra.mxu0 %v1057_v42  ;;  %v613_v42 = vshll.u32 %v533_v2, 16 }
  0xa0   : > { %v615_v54 = vrot.slane %v613_v42, 1 }
  0xa9   : > { %v2403_v9 = vpop.f32.mrf.mxu1 }
  0xaa   : > { %v4670_v19 = vadd.f32 %v4663_v10, %v2403_v9 }
  0xab   : > { %v4672_v28 = vpop.f32.mrf.mxu0 }
  0xac   : > { %2491 = vmatmul.bf16.gmra.mxu1 %v604_v12  ;;  %2580 = vmatmul.bf16.gmra.mxu2 %v816_v16 }
  0xad   : > { %2669 = vmatmul.bf16.gmra.mxu3 %v3384_v29 }
  0xae   : > { %2758 = vmatmul.bf16.gmra.mxu0 %v1069_v20  ;;  %v616_v20 = vsel %vm544_vm0, %v611_v51, %v615_v54  ;;  %v1083_v51 = vshrl.u32 %v4705_v49, 16 }
  0xaf   : > { %v2423_v36 = vpop.f32.mrf.mxu2 }
  0xb0   : > { %v4687_v29 = vadd.f32 %v4663_v10, %v2423_v36  ;;  %v2443_v37 = vpop.f32.mrf.mxu3  ;;  %v4075_v36 = vld [vmem:[%s4373_s8 + $0x48] sm:$0xf0] }
  0xb1   : > { %v4691_v40 = vadd.f32 %v4663_v10, %v2443_v37  ;;  %v2405_v41 = vpop.f32.mrf.mxu1  ;;  %v4076_v37 = vld [vmem:[%s4373_s8 + $0x48] sm:$0xe] }
  0xb2   : > { %v4699_v47 = vadd.f32 %v4663_v10, %v2405_v41  ;;  %v1085_v41 = vshll.u32 %v4705_v49, 16  ;;  %v4077_v46 = vor.u32 %v4076_v37, %v4075_v36 }
  0xb3   : > { %5379 = vst [vmem:[#allocation6_spill] sm:$0xff] %v4691_v40  ;;  %v4701_v22 = vpop.f32.mrf.mxu0 }
  0xb4   : > { %v1087_v54 = vrot.slane %v1085_v41, 1  ;;  %v820_v4 = vrot.slane %v4077_v46, 1  ;;  %v4053_v46 = vld [vmem:[%s4373_s8 + $0x60] sm:$0xff]  }
  0xb6   : > { %v822_v37 = vsel %vm801_vm1, %v820_v4, %v821_v6 }
  0xb7   : > { %v2425_v7 = vpop.f32.mrf.mxu2 }
  0xb8   : > { %v4716_v9 = vadd.f32 %v4663_v10, %v2425_v7  ;;  %v2445_v12 = vpop.f32.mrf.mxu3  ;;  %v1088_v7 = vor.u32 %v1087_v54, %v1083_v51  ;;  %v3846_v54 = vld [vmem:[%s5365_s1 + $0x198] sm:$0xff] }
  0xb9   : > { %v4719_v16 = vadd.f32 %v4663_v10, %v2445_v12  ;;  %v2408_v17 = vpop.f32.mrf.mxu1  ;;  %v239_v12 = vld [vmem:[%s4373_s8 + $0x5c] sm:$0x1]  ;;  %2912 = vmatpush.bf16.msra.mxu2 %v3846_v54 }
  0xba   : > { %v4724_v2 = vadd.f32 %v4663_v10, %v2408_v17 }
  0xbb   : > { %5381 = vst [vmem:[#allocation8_spill] sm:$0xff] %v4719_v16  ;;  %v4726_v3 = vpop.f32.mrf.mxu0 }
  0xbc   : > { %2496 = vmatmul.bf16.gmra.mxu1 %v616_v20  ;;  %2585 = vmatmul.bf16.gmra.mxu2 %v819_v21  ;;  %v3415_v20 = vld [vmem:[%s4373_s8 + $0x68] sm:$0x1] }
  0xbd   : > { %2674 = vmatmul.bf16.gmra.mxu3 %v4513_v52  ;;  %v625_v52 = vshll.u32 %v534_v34, 16  ;;  %v519_v34 = vunpack.c.l.b16 %v239_v12 }
  0xbe   : > { %2763 = vmatmul.bf16.gmra.mxu0 %v1081_v32 }
  0xbf   : > { %v2428_v14 = vpop.f32.mrf.mxu2  ;;  %v627_v58 = vrot.slane %v625_v52, 1  ;;  %v985_v52 = vunpack.c.l.b16 %v3415_v20  ;;  %v535_v51 = vpack.c.b16 %v519_v34, %v519_v34  ;;  %v1095_v34 = vshrl.u32 %v4053_v46, 16 }
  0xc0   : > { %v4736_v42 = vadd.f32 %v4663_v10, %v2428_v14  ;;  %v2448_v43 = vpop.f32.mrf.mxu3 }
  0xc1   : > { %v4739_v44 = vadd.f32 %v4663_v10, %v2448_v43  ;;  %v2410_v45 = vpop.f32.mrf.mxu1  ;;  %v628_v36 = vsel %vm544_vm0, %v1076_v59, %v627_v58  ;;  %v1093_v43 = vsel %vm544_vm0, %v1088_v7, %v1092_v8  ;;  %v632_v59 = vshll.u32 %v4538_v60, 16 }
  0xc2   : > { %v4742_v48 = vadd.f32 %v4663_v10, %v2410_v45  ;;  %v4215_v45 = vld [vmem:[%s4373_s8 + $0x54] sm:$0xe]  ;;  %v1097_v58 = vshll.u32 %v4053_v46, 16  ;;  %v4774_v4 = vpack.c.b16 %v985_v52, %v985_v52  ;;  %v630_v8 = vshrl.u32 %v4538_v60, 16  ;;  %v3838_v60 = vld [vmem:[%s5365_s1 + $0x158] sm:$0xff] }
  0xc3   : > { %5383 = vst [vmem:[#allocation10_spill] sm:$0xff] %v4739_v44  ;;  %v4744_v23 = vpop.f32.mrf.mxu0  ;;  %v634_v20 = vrot.slane %v632_v59, 1  ;;  %v3862_v59 = vld [vmem:[%s5365_s1 + $0x218] sm:$0xff]  ;;  %2823 = vmatpush.bf16.msra.mxu1 %v3838_v60 }
  0xc4   : > { %5385 = vst [vmem:[#allocation12_spill] sm:$0xff] %v4774_v4  ;;  %v1102_v52 = vshll.u32 %v4774_v4, 16  ;;  %3090 = vmatpush.bf16.msra.mxu0 %v3862_v59  ;;  %v240_v4 = vld [vmem:[%s4373_s8 + $0x68] sm:$0x1]  ;;  %v4079_v59 = vld [vmem:[%s4373_s8 + $0x60] sm:$0xe] }
  0xc5   : > { %v635_v54 = vor.u32 %v634_v20, %v630_v8 }
  0xc7   : > { %v2430_v17 = vpop.f32.mrf.mxu2 }
  0xc8   : > { %v4751_v21 = vadd.f32 %v4663_v10, %v2430_v17  ;;  %v2450_v30 = vpop.f32.mrf.mxu3 }
  0xc9   : > { %v4754_v32 = vadd.f32 %v4663_v10, %v2450_v30  ;;  %v2413_v33 = vpop.f32.mrf.mxu1  ;;  %v637_v30 = vshll.u32 %v535_v51, 16 }
  0xca   : > { %v4759_v41 = vadd.f32 %v4663_v10, %v2413_v33  ;;  %v4216_v33 = vor.u32 %v4215_v45, %v4541_v61  ;;  %v4797_v61 = vld [vmem:[%s4373_s8 + $0x6c] sm:$0xff]  }
  0xcb   : > { %5384 = vst [vmem:[#allocation11_spill] sm:$0xff] %v4754_v32  ;;  %v4761_v14 = vpop.f32.mrf.mxu0  ;;  %v4800_v45 = vld [vmem:[%s4373_s8 + $0x6c] sm:$0xf0]  ;;  %v639_v57 = vrot.slane %v637_v30, 1 }
  0xcc   : > { %2501 = vmatmul.bf16.gmra.mxu1 %v628_v36  ;;  %2590 = vmatmul.bf16.gmra.mxu2 %v822_v37  ;;  %5387 = vst [vmem:[#allocation14_spill] sm:$0xff] %v4800_v45 }
  0xcd   : > { %2679 = vmatmul.bf16.gmra.mxu3 %v4705_v49  ;;  %v640_v8 = vsel %vm544_vm0, %v635_v54, %v639_v57  ;;  %v1109_v54 = vshll.u32 %v4797_v61, 16 }
  0xce   : > { %2768 = vmatmul.bf16.gmra.mxu0 %v1093_v43  ;;  %v1099_v43 = vrot.slane %v1097_v58, 1  ;;  %v823_v58 = vrot.slane %v4216_v33, 1 }
  0xcf   : > { %v2433_v6 = vpop.f32.mrf.mxu2 }
  0xd0   : > { %v4777_v49 = vadd.f32 %v4663_v10, %v2433_v6  ;;  %v2453_v7 = vpop.f32.mrf.mxu3  ;;  %v824_v6 = vrot.slane %v535_v51, 1  ;;  %v520_v51 = vunpack.c.l.b16 %v240_v4 }
  0xd1   : > { %v4781_v12 = vadd.f32 %v4663_v10, %v2453_v7  ;;  %v2415_v17 = vpop.f32.mrf.mxu1  ;;  %v1100_v7 = vor.u32 %v1099_v43, %v1095_v34  ;;  %v986_v34 = vunpack.c.l.b16 %v3416_v39 }
  0xd2   : > { %v4785_v36 = vadd.f32 %v4663_v10, %v2415_v17  ;;  %v1104_v17 = vrot.slane %v1102_v52, 1  ;;  %v825_v20 = vsel %vm801_vm1, %v823_v58, %v824_v6  ;;  %v536_v43 = vpack.c.b16 %v520_v51, %v520_v51  ;;  %v4078_v52 = vld [vmem:[%s4373_s8 + $0x60] sm:$0xf0] }
  0xd3   : > { %5386 = vst [vmem:[#allocation13_spill] sm:$0xff] %v4781_v12  ;;  %v4787_v37 = vpop.f32.mrf.mxu0  ;;  %v4822_v4 = vpack.c.b16 %v986_v34, %v986_v34  ;;  %v642_v58 = vshrl.u32 %v4385_v11, 16 }
  0xd5   : > { %5389 = vst [vmem:[#allocation16_spill] sm:$0xff] %v4822_v4  ;;  %v1114_v34 = vshll.u32 %v4822_v4, 16  ;;  %v4218_v4 = vld [vmem:[%s4373_s8 + $0x6c] sm:$0xe] }
  0xd7   : > { %v2435_v12 = vpop.f32.mrf.mxu2  ;;  %v1116_v35 = vrot.slane %v1114_v34, 1 }
  0xd8   : > { %v4805_v32 = vadd.f32 %v4663_v10, %v2435_v12  ;;  %v2455_v50 = vpop.f32.mrf.mxu3  ;;  %v1105_v12 = vsel %vm544_vm0, %v1100_v7, %v1104_v17 }
  0xd9   : > { %v4808_v44 = vadd.f32 %v4663_v10, %v2455_v50  ;;  %v2418_v60 = vpop.f32.mrf.mxu1  ;;  %v644_v50 = vshll.u32 %v4385_v11, 16  ;;  %v1107_v11 = vshrl.u32 %v4797_v61, 16 }
  0xda   : > { %v4813_v30 = vadd.f32 %v4663_v10, %v2418_v60  ;;  %v649_v60 = vshll.u32 %v536_v43, 16 }
  0xdb   : > { %5388 = vst [vmem:[#allocation15_spill] sm:$0xff] %v4808_v44  ;;  %v4815_v33 = vpop.f32.mrf.mxu0  ;;  %v646_v7 = vrot.slane %v644_v50, 1  ;;  %v827_v44 = vrot.slane %v536_v43, 1 }
  0xdc   : > { %2506 = vmatmul.bf16.gmra.mxu1 %v640_v8  ;;  %2595 = vmatmul.bf16.gmra.mxu2 %v825_v20  ;;  %v4080_v8 = vor.u32 %v4079_v59, %v4078_v52  ;;  %v651_v45 = vrot.slane %v649_v60, 1  ;;  %v3417_v52 = vld [vmem:[%s4373_s8 + $0x80] sm:$0x1] }
  0xdd   : > { %2684 = vmatmul.bf16.gmra.mxu3 %v4053_v46 }
  0xde   : > { %2773 = vmatmul.bf16.gmra.mxu0 %v1105_v12  ;;  %v1111_v12 = vrot.slane %v1109_v54, 1  ;;  %v826_v50 = vrot.slane %v4080_v8, 1  ;;  %v987_v8 = vunpack.c.l.b16 %v3417_v52 }
  0xdf   : > { %v2438_v57 = vpop.f32.mrf.mxu2 }
  0xe0   : > { %v4826_v6 = vadd.f32 %v4663_v10, %v2438_v57  ;;  %v2458_v39 = vpop.f32.mrf.mxu3  ;;  %v647_v57 = vor.u32 %v646_v7, %v642_v58  ;;  %v828_v60 = vsel %vm801_vm1, %v826_v50, %v827_v44  ;;  %v3845_v44 = vld [vmem:[%s5365_s1 + $0x190] sm:$0xff] }
  0xe1   : > { %v4829_v17 = vadd.f32 %v4663_v10, %v2458_v39  ;;  %v2420_v46 = vpop.f32.mrf.mxu1  ;;  %v241_v39 = vld [vmem:[%s4373_s8 + $0x74] sm:$0x1]  ;;  %2913 = vmatpush.bf16.msra.mxu2 %v3845_v44 }
  0xe2   : > { %5390 = vst [vmem:[#allocation17_spill] sm:$0xff] %v4826_v6  ;;  %v4832_v20 = vadd.f32 %v4663_v10, %v2420_v46  ;;  %v2384_v46 = vadd.f32 %v4663_v10, %v4672_v28  ;;  %v521_v40 = vunpack.c.l.b16 %v241_v39  ;;  %v652_v43 = vsel %vm544_vm0, %v647_v57, %v651_v45  ;;  %v4054_v28 = vld [vmem:[%s4373_s8 + $0x78] sm:$0xff]  }
  0xe3   : > { %5391 = vst [vmem:[#allocation18_spill] sm:$0xff] %v4829_v17  ;;  %v4834_v51 = vpop.f32.mrf.mxu0  ;;  %v1112_v17 = vor.u32 %v1111_v12, %v1107_v11  ;;  %v2386_v45 = vadd.f32 %v4663_v10, %v4701_v22  ;;  %v654_v57 = vshrl.u32 %v4425_v24, 16 }
  0xe4   : > { %v537_v39 = vpack.c.b16 %v521_v40, %v521_v40 }
  0xe5   : > { %v1117_v34 = vsel %vm544_vm0, %v1112_v17, %v1116_v35  ;;  %v3853_v35 = vld [vmem:[%s5365_s1 + $0x1d0] sm:$0xff] }
  0xe6   : > { %3002 = vmatpush.bf16.msra.mxu3 %v3853_v35  ;;  %v661_v52 = vshll.u32 %v537_v39, 16 }
  0xe7   : > { %v2440_v59 = vpop.f32.mrf.mxu2 }
  0xe8   : > { %v4843_v16 = vadd.f32 %v4663_v10, %v2440_v59  ;;  %v2460_v54 = vpop.f32.mrf.mxu3  ;;  %v656_v59 = vshll.u32 %v4425_v24, 16  ;;  %v3861_v24 = vld [vmem:[%s5365_s1 + $0x210] sm:$0xff] }
  0xe9   : > { %v4846_v58 = vadd.f32 %v4663_v10, %v2460_v54  ;;  %v2472_v7 = vpop.f32.mrf.mxu1  ;;  %v1121_v54 = vshll.u32 %v4054_v28, 16  ;;  %3091 = vmatpush.bf16.msra.mxu0 %v3861_v24 }
  0xea   : > { %5392 = vst [vmem:[#allocation19_spill] sm:$0xff] %v4843_v16  ;;  %v2473_v11 = vadd.f32 %v2472_v7, %v2384_v46  ;;  %v658_v50 = vrot.slane %v656_v59, 1  ;;  %v4219_v7 = vor.u32 %v4218_v4, %v4428_v25  ;;  %v4875_v59 = vld [vmem:[%s4373_s8 + $0x84] sm:$0xff]   ;;  %v2389_v16 = vadd.f32 %v4663_v10, %v4726_v3 }
  0xeb   : > { %5393 = vst [vmem:[#allocation20_spill] sm:$0xff] %v4846_v58  ;;  %v2739_v12 = vpop.f32.mrf.mxu0  ;;  %v4855_v58 = vpack.c.b16 %v987_v8, %v987_v8  ;;  %v4878_v25 = vld [vmem:[%s4373_s8 + $0x84] sm:$0xf0]  ;;  %v668_v3 = vshll.u32 %v4516_v53, 16 }
  0xec   : > { %2511 = vmatmul.bf16.gmra.mxu1 %v652_v43  ;;  %2600 = vmatmul.bf16.gmra.mxu2 %v828_v60  ;;  %v1119_v43 = vshrl.u32 %v4054_v28, 16  ;;  %v1123_v60 = vrot.slane %v1121_v54, 1  ;;  %v659_v4 = vor.u32 %v658_v50, %v654_v57  ;;  %v663_v54 = vrot.slane %v661_v52, 1 }
  0xed   : > { %2689 = vmatmul.bf16.gmra.mxu3 %v4797_v61  ;;  %5394 = vst [vmem:[#allocation21_spill] sm:$0xff] %v4855_v58  ;;  %v1126_v8 = vshll.u32 %v4855_v58, 16 }
  0xee   : > { %2778 = vmatmul.bf16.gmra.mxu0 %v1117_v34  ;;  %v664_v57 = vsel %vm544_vm0, %v659_v4, %v663_v54 }
  0xef   : > { %v2561_v17 = vpop.f32.mrf.mxu2 }
  0xf0   : > { %v2562_v40 = vadd.f32 %v2561_v17, %v2473_v11  ;;  %v2650_v61 = vpop.f32.mrf.mxu3  ;;  %v3837_v11 = vld [vmem:[%s5365_s1 + $0x150] sm:$0xff]  ;;  %v830_v17 = vrot.slane %v537_v39, 1 }
  0xf1   : > { %v2474_v46 = vpop.f32.mrf.mxu1  ;;  %2824 = vmatpush.bf16.msra.mxu1 %v3837_v11  ;;  %v1133_v11 = vshll.u32 %v4875_v59, 16 }
  0xf2   : > { %v2651_v34 = vadd.f32 %v2650_v61, %v2562_v40  ;;  %v2475_v22 = vadd.f32 %v2474_v46, %v2386_v45  ;;  %v829_v45 = vrot.slane %v4219_v7, 1  ;;  %v1124_v40 = vor.u32 %v1123_v60, %v1119_v43  ;;  %v242_v46 = vld [vmem:[%s4373_s8 + $0x80] sm:$0x1] }
  0xf3   : > { %v2741_v44 = vpop.f32.mrf.mxu0  ;;  %v1128_v61 = vrot.slane %v1126_v8, 1  ;;  %v522_v39 = vunpack.c.l.b16 %v242_v46  ;;  %v988_v60 = vunpack.c.l.b16 %v3418_v55  ;;  %v1135_v46 = vrot.slane %v1133_v11, 1 }
  0xf4   : > { %v4880_v35 = vadd.f32 %v2739_v12, %v2651_v34  ;;  %v831_v12 = vsel %vm801_vm1, %v829_v45, %v830_v17  ;;  %v4081_v34 = vld [vmem:[%s4373_s8 + $0x78] sm:$0xf0]  ;;  %v1131_v45 = vshrl.u32 %v4875_v59, 16 }
  0xf5   : > { %v1129_v50 = vsel %vm544_vm0, %v1124_v40, %v1128_v61  ;;  %v4895_v24 = vpack.c.b16 %v988_v60, %v988_v60 }
  0xf7   : > { %v2563_v58 = vpop.f32.mrf.mxu2 }
  0xf8   : > { %v2564_v31 = vadd.f32 %v2563_v58, %v2475_v22  ;;  %v2652_v6 = vpop.f32.mrf.mxu3  ;;  %v538_v58 = vpack.c.b16 %v522_v39, %v522_v39  ;;  %v4082_v22 = vld [vmem:[%s4373_s8 + $0x78] sm:$0xe] }
  0xf9   : > { %v2477_v15 = vpop.f32.mrf.mxu1  ;;  %v4083_v54 = vor.u32 %v4082_v22, %v4081_v34  ;;  %v2394_v22 = vadd.f32 %v4663_v10, %v4761_v14 }
  0xfa   : > { %v2653_v52 = vadd.f32 %v2652_v6, %v2564_v31  ;;  %v2478_v7 = vadd.f32 %v2477_v15, %v2389_v16  ;;  %v666_v15 = vshrl.u32 %v4516_v53, 16  ;;  %v2391_v31 = vadd.f32 %v4663_v10, %v4744_v23 }
  0xfb   : > { %v2744_v43 = vpop.f32.mrf.mxu0  ;;  %v670_v6 = vrot.slane %v668_v3, 1  ;;  %v833_v39 = vrot.slane %v538_v58, 1  ;;  %v3419_v3 = vld [vmem:[%s4373_s8 + $0x98] sm:$0x1] }
  0xfc   : > { %2516 = vmatmul.bf16.gmra.mxu1 %v664_v57  ;;  %2605 = vmatmul.bf16.gmra.mxu2 %v831_v12  ;;  %v4889_v8 = vadd.f32 %v2741_v44, %v2653_v52  ;;  %v1138_v57 = vshll.u32 %v4895_v24, 16  ;;  %v243_v52 = vld [vmem:[%s4373_s8 + $0x8c] sm:$0x1] }
  0xfd   : > { %2694 = vmatmul.bf16.gmra.mxu3 %v4054_v28  ;;  %v673_v28 = vshll.u32 %v538_v58, 16  ;;  %v671_v12 = vor.u32 %v670_v6, %v666_v15 }
  0xfe   : > { %2783 = vmatmul.bf16.gmra.mxu0 %v1129_v50  ;;  %v832_v50 = vrot.slane %v4083_v54, 1  ;;  %v1140_v60 = vrot.slane %v1138_v57, 1  ;;  %v4221_v54 = vld [vmem:[%s4373_s8 + $0x84] sm:$0xe] }
  0xff   : > { %v2566_v4 = vpop.f32.mrf.mxu2  ;;  %v675_v23 = vrot.slane %v673_v28, 1 }
 0x100   : > { %v2567_v55 = vadd.f32 %v2566_v4, %v2478_v7  ;;  %v2655_v16 = vpop.f32.mrf.mxu3  ;;  %v1136_v7 = vor.u32 %v1135_v46, %v1131_v45  ;;  %v834_v15 = vsel %vm801_vm1, %v832_v50, %v833_v39  ;;  %v4055_v45 = vld [vmem:[%s4373_s8 + $0x90] sm:$0xff]   ;;  %v2396_v50 = vadd.f32 %v4663_v10, %v4787_v37 }
 0x101   : > { %v2479_v44 = vpop.f32.mrf.mxu1  ;;  %v1145_v46 = vshll.u32 %v4055_v45, 16 }
 0x102   : > { %v2656_v17 = vadd.f32 %v2655_v16, %v2567_v55  ;;  %v2480_v40 = vadd.f32 %v2479_v44, %v2391_v31  ;;  %v523_v31 = vunpack.c.l.b16 %v243_v52  ;;  %v989_v16 = vunpack.c.l.b16 %v3419_v3 }
 0x103   : > { %v2746_v61 = vpop.f32.mrf.mxu0  ;;  %v1141_v28 = vsel %vm544_vm0, %v1136_v7, %v1140_v60  ;;  %v678_v52 = vshrl.u32 %v4544_v62, 16 }
 0x104   : > { %v4902_v53 = vadd.f32 %v2744_v43, %v2656_v17  ;;  %v676_v43 = vsel %vm544_vm0, %v671_v12, %v675_v23  ;;  %v680_v17 = vshll.u32 %v4544_v62, 16  ;;  %v539_v14 = vpack.c.b16 %v523_v31, %v523_v31  ;;  %v3844_v12 = vld [vmem:[%s5365_s1 + $0x188] sm:$0xff] }
 0x105   : > { %v4917_v57 = vpack.c.b16 %v989_v16, %v989_v16  ;;  %v3852_v23 = vld [vmem:[%s5365_s1 + $0x1c8] sm:$0xff]  ;;  %2914 = vmatpush.bf16.msra.mxu2 %v3844_v12  ;;  %v244_v12 = vld [vmem:[%s4373_s8 + $0x98] sm:$0x1] }
 0x106   : > { %3003 = vmatpush.bf16.msra.mxu3 %v3852_v23  ;;  %v682_v7 = vrot.slane %v680_v17, 1  ;;  %v685_v60 = vshll.u32 %v539_v14, 16  ;;  %v3860_v62 = vld [vmem:[%s5365_s1 + $0x208] sm:$0xff] }
 0x107   : > { %v2568_v34 = vpop.f32.mrf.mxu2  ;;  %3092 = vmatpush.bf16.msra.mxu0 %v3860_v62  ;;  %v4085_v62 = vld [vmem:[%s4373_s8 + $0x90] sm:$0xe] }
 0x108   : > { %v2569_v4 = vadd.f32 %v2568_v34, %v2480_v40  ;;  %v2657_v11 = vpop.f32.mrf.mxu3  ;;  %v4222_v34 = vor.u32 %v4221_v54, %v4547_v63  ;;  %v4940_v63 = vld [vmem:[%s4373_s8 + $0x9c] sm:$0xf0]  ;;  %v683_v16 = vor.u32 %v682_v7, %v678_v52  ;;  %v836_v54 = vrot.slane %v539_v14, 1 }
 0x109   : > { %v2482_v55 = vpop.f32.mrf.mxu1  ;;  %v524_v7 = vunpack.c.l.b16 %v244_v12 }
 0x10a   : > { %v2658_v58 = vadd.f32 %v2657_v11, %v2569_v4  ;;  %v2483_v6 = vadd.f32 %v2482_v55, %v2394_v22  ;;  %v1143_v22 = vshrl.u32 %v4055_v45, 16  ;;  %v1147_v4 = vrot.slane %v1145_v46, 1 }
 0x10b   : > { %v2749_v44 = vpop.f32.mrf.mxu0  ;;  %v1150_v11 = vshll.u32 %v4917_v57, 16 }
 0x10c   : > { %2521 = vmatmul.bf16.gmra.mxu1 %v676_v43  ;;  %2610 = vmatmul.bf16.gmra.mxu2 %v834_v15  ;;  %v4914_v40 = vadd.f32 %v2746_v61, %v2658_v58  ;;  %v3836_v43 = vld [vmem:[%s5365_s1 + $0x148] sm:$0xff]  ;;  %v4937_v15 = vld [vmem:[%s4373_s8 + $0x9c] sm:$0xff]   ;;  %v687_v58 = vrot.slane %v685_v60, 1  ;;  %v1148_v17 = vor.u32 %v1147_v4, %v1143_v22 }
 0x10d   : > { %2699 = vmatmul.bf16.gmra.mxu3 %v4875_v59  ;;  %2825 = vmatpush.bf16.msra.mxu1 %v3836_v43  ;;  %v1152_v46 = vrot.slane %v1150_v11, 1  ;;  %v4084_v43 = vld [vmem:[%s4373_s8 + $0x90] sm:$0xf0] }
 0x10e   : > { %2788 = vmatmul.bf16.gmra.mxu0 %v1141_v28  ;;  %v835_v28 = vrot.slane %v4222_v34, 1  ;;  %v688_v52 = vsel %vm544_vm0, %v683_v16, %v687_v58  ;;  %v1157_v16 = vshll.u32 %v4937_v15, 16 }
 0x10f   : > { %v2571_v39 = vpop.f32.mrf.mxu2  ;;  %v1153_v14 = vsel %vm544_vm0, %v1148_v17, %v1152_v46  ;;  %v2401_v17 = vadd.f32 %v4663_v10, %v4834_v51 }
 0x110   : > { %v2572_v59 = vadd.f32 %v2571_v39, %v2483_v6  ;;  %v2660_v61 = vpop.f32.mrf.mxu3  ;;  %v2399_v39 = vadd.f32 %v4663_v10, %v4815_v33  ;;  %v4203_v33 = vld [vmem:[%s4373_s8 + $0x90] sm:$0xff]  }
 0x111   : > { %v2484_v3 = vpop.f32.mrf.mxu1 }
 0x112   : > { %v2661_v31 = vadd.f32 %v2660_v61, %v2572_v59  ;;  %v2485_v37 = vadd.f32 %v2484_v3, %v2396_v50  ;;  %v3420_v50 = vld [vmem:[%s4373_s8 + $0xa4] sm:$0x1] }
 0x113   : > { %v2751_v55 = vpop.f32.mrf.mxu0  ;;  %v990_v4 = vunpack.c.l.b16 %v3420_v50 }
 0x114   : > { %v4942_v6 = vadd.f32 %v2749_v44, %v2661_v31  ;;  %v837_v44 = vsel %vm801_vm1, %v835_v28, %v836_v54  ;;  %v692_v31 = vshll.u32 %v4203_v33, 16  ;;  %v690_v54 = vshrl.u32 %v4203_v33, 16 }
 0x115   : > { %v4957_v58 = vpack.c.b16 %v990_v4, %v990_v4 }
 0x117   : > { %v2573_v23 = vpop.f32.mrf.mxu2 }
 0x118   : > { %v2574_v59 = vadd.f32 %v2573_v23, %v2485_v37  ;;  %v2662_v61 = vpop.f32.mrf.mxu3  ;;  %v540_v37 = vpack.c.b16 %v524_v7, %v524_v7 }
 0x119   : > { %v2487_v3 = vpop.f32.mrf.mxu1 }
 0x11a   : > { %v2663_v60 = vadd.f32 %v2662_v61, %v2574_v59  ;;  %v2488_v34 = vadd.f32 %v2487_v3, %v2399_v39  ;;  %v697_v50 = vshll.u32 %v540_v37, 16  ;;  %v1155_v39 = vshrl.u32 %v4937_v15, 16 }
 0x11b   : > { %v2754_v22 = vpop.f32.mrf.mxu0 }
 0x11c   : > { %2526 = vmatmul.bf16.gmra.mxu1 %v688_v52  ;;  %2615 = vmatmul.bf16.gmra.mxu2 %v837_v44  ;;  %v4951_v11 = vadd.f32 %v2751_v55, %v2663_v60  ;;  %v694_v55 = vrot.slane %v692_v31, 1  ;;  %v1159_v52 = vrot.slane %v1157_v16, 1  ;;  %v1162_v44 = vshll.u32 %v4957_v58, 16  ;;  %v3421_v31 = vld [vmem:[%s4373_s8 + $0xb0] sm:$0x1] }
 0x11d   : > { %2704 = vmatmul.bf16.gmra.mxu3 %v4055_v45  ;;  %v4086_v45 = vor.u32 %v4085_v62, %v4084_v43  ;;  %v699_v10 = vrot.slane %v697_v50, 1  ;;  %v839_v60 = vrot.slane %v540_v37, 1  ;;  %v4224_v50 = vld [vmem:[%s4373_s8 + $0x9c] sm:$0xe] }
 0x11e   : > { %2793 = vmatmul.bf16.gmra.mxu0 %v1153_v14  ;;  %v695_v7 = vor.u32 %v694_v55, %v690_v54  ;;  %v1160_v4 = vor.u32 %v1159_v52, %v1155_v39  ;;  %v1164_v33 = vrot.slane %v1162_v44, 1  ;;  %v704_v39 = vshll.u32 %v4431_v26, 16 }
 0x11f   : > { %v2576_v28 = vpop.f32.mrf.mxu2  ;;  %v838_v51 = vrot.slane %v4086_v45, 1  ;;  %v4056_v45 = vld [vmem:[%s4373_s8 + $0xa8] sm:$0xff]  }
 0x120   : > { %v2577_v46 = vadd.f32 %v2576_v28, %v2488_v34  ;;  %v2665_v12 = vpop.f32.mrf.mxu3  ;;  %v245_v34 = vld [vmem:[%s4373_s8 + $0xa4] sm:$0x1]  ;;  %v700_v16 = vsel %vm544_vm0, %v695_v7, %v699_v10  ;;  %v1169_v52 = vshll.u32 %v4056_v45, 16 }
 0x121   : > { %v2489_v23 = vpop.f32.mrf.mxu1  ;;  %v3851_v7 = vld [vmem:[%s5365_s1 + $0x1c0] sm:$0xff] }
 0x122   : > { %v2666_v59 = vadd.f32 %v2665_v12, %v2577_v46  ;;  %v2490_v61 = vadd.f32 %v2489_v23, %v2401_v17  ;;  %v525_v17 = vunpack.c.l.b16 %v245_v34  ;;  %v991_v12 = vunpack.c.l.b16 %v3421_v31  ;;  %3004 = vmatpush.bf16.msra.mxu3 %v3851_v7  ;;  %v3422_v7 = vld [vmem:[%s4373_s8 + $0xbc] sm:$0x1] }
 0x123   : > { %v2756_v3 = vpop.f32.mrf.mxu0  ;;  %v1165_v23 = vsel %vm544_vm0, %v1160_v4, %v1164_v33  ;;  %v4225_v33 = vor.u32 %v4224_v50, %v4434_v27  ;;  %v1167_v31 = vshrl.u32 %v4056_v45, 16  ;;  %v4999_v27 = vld [vmem:[%s4373_s8 + $0xb4] sm:$0xf0] }
 0x124   : > { %v4963_v14 = vadd.f32 %v2754_v22, %v2666_v59  ;;  %v840_v22 = vsel %vm801_vm1, %v838_v51, %v839_v60  ;;  %v541_v59 = vpack.c.b16 %v525_v17, %v525_v17  ;;  %v4977_v44 = vpack.c.b16 %v991_v12, %v991_v12 }
 0x125   : > { %v706_v60 = vrot.slane %v704_v39, 1 }
 0x126   : > { %v709_v34 = vshll.u32 %v541_v59, 16 }
 0x127   : > { %v2578_v43 = vpop.f32.mrf.mxu2 }
 0x128   : > { %v2579_v62 = vadd.f32 %v2578_v43, %v2490_v61  ;;  %v2667_v28 = vpop.f32.mrf.mxu3  ;;  %v1171_v43 = vrot.slane %v1169_v52, 1  ;;  %v246_v52 = vld [vmem:[%s4373_s8 + $0xb0] sm:$0x1] }
 0x129   : > { %v2492_v46 = vpop.f32.mrf.mxu1 }
 0x12a   : > { %v2668_v54 = vadd.f32 %v2667_v28, %v2579_v62  ;;  %v2493_v55 = vadd.f32 %v2492_v46, %v4670_v19  ;;  %v3843_v19 = vld [vmem:[%s5365_s1 + $0x180] sm:$0xff]  ;;  %v1174_v62 = vshll.u32 %v4977_v44, 16  ;;  %v1172_v50 = vor.u32 %v1171_v43, %v1167_v31 }
 0x12b   : > { %v2759_v37 = vpop.f32.mrf.mxu0  ;;  %2915 = vmatpush.bf16.msra.mxu2 %v3843_v19  ;;  %v992_v31 = vunpack.c.l.b16 %v3422_v7 }
 0x12c   : > { %2531 = vmatmul.bf16.gmra.mxu1 %v700_v16  ;;  %2620 = vmatmul.bf16.gmra.mxu2 %v840_v22  ;;  %v4974_v61 = vadd.f32 %v2756_v3, %v2668_v54  ;;  %v3835_v16 = vld [vmem:[%s5365_s1 + $0x140] sm:$0xff]  ;;  %v4996_v22 = vld [vmem:[%s4373_s8 + $0xb4] sm:$0xff]   ;;  %v711_v54 = vrot.slane %v709_v34, 1  ;;  %v1176_v39 = vrot.slane %v1174_v62, 1  ;;  %v4204_v62 = vld [vmem:[%s4373_s8 + $0xa8] sm:$0xff]  }
 0x12d   : > { %2709 = vmatmul.bf16.gmra.mxu3 %v4937_v15  ;;  %v702_v15 = vshrl.u32 %v4431_v26, 16  ;;  %v3859_v26 = vld [vmem:[%s5365_s1 + $0x200] sm:$0xff]  ;;  %2826 = vmatpush.bf16.msra.mxu1 %v3835_v16  ;;  %v4087_v16 = vld [vmem:[%s4373_s8 + $0xa8] sm:$0xf0] }
 0x12e   : > { %2798 = vmatmul.bf16.gmra.mxu0 %v1165_v23  ;;  %v842_v23 = vrot.slane %v541_v59, 1 }
 0x12f   : > { %v2581_v10 = vpop.f32.mrf.mxu2  ;;  %v707_v12 = vor.u32 %v706_v60, %v702_v15  ;;  %3093 = vmatpush.bf16.msra.mxu0 %v3859_v26  ;;  %v526_v60 = vunpack.c.l.b16 %v246_v52  ;;  %v4088_v26 = vld [vmem:[%s4373_s8 + $0xa8] sm:$0xe] }
 0x130   : > { %v2582_v3 = vadd.f32 %v2581_v10, %v2493_v55  ;;  %v2670_v51 = vpop.f32.mrf.mxu3 }
 0x131   : > { %v2494_v4 = vpop.f32.mrf.mxu1 }
 0x132   : > { %v2671_v28 = vadd.f32 %v2670_v51, %v2582_v3  ;;  %v2495_v17 = vadd.f32 %v2494_v4, %v4699_v47  ;;  %v841_v47 = vrot.slane %v4225_v33, 1  ;;  %v712_v4 = vsel %vm544_vm0, %v707_v12, %v711_v54 }
 0x133   : > { %v2761_v46 = vpop.f32.mrf.mxu0  ;;  %v1181_v12 = vshll.u32 %v4996_v22, 16  ;;  %v5015_v54 = vpack.c.b16 %v992_v31, %v992_v31 }
 0x134   : > { %v5001_v55 = vadd.f32 %v2759_v37, %v2671_v28  ;;  %v843_v15 = vsel %vm801_vm1, %v841_v47, %v842_v23  ;;  %v1177_v37 = vsel %vm544_vm0, %v1172_v50, %v1176_v39  ;;  %v716_v28 = vshll.u32 %v4204_v62, 16 }
 0x135   : > { %v714_v23 = vshrl.u32 %v4204_v62, 16 }
 0x136   : > { %v718_v39 = vrot.slane %v716_v28, 1  ;;  %v247_v28 = vld [vmem:[%s4373_s8 + $0xbc] sm:$0x1] }
 0x137   : > { %v2583_v19 = vpop.f32.mrf.mxu2 }
 0x138   : > { %v2584_v10 = vadd.f32 %v2583_v19, %v2495_v17  ;;  %v2672_v3 = vpop.f32.mrf.mxu3  ;;  %v542_v17 = vpack.c.b16 %v526_v60, %v526_v60  ;;  %v4089_v19 = vor.u32 %v4088_v26, %v4087_v16  ;;  %v3423_v26 = vld [vmem:[%s4373_s8 + $0xc8] sm:$0x1] }
 0x139   : > { %v2497_v51 = vpop.f32.mrf.mxu1 }
 0x13a   : > { %v2673_v34 = vadd.f32 %v2672_v3, %v2584_v10  ;;  %v2498_v59 = vadd.f32 %v2497_v51, %v4724_v2  ;;  %v1183_v51 = vrot.slane %v1181_v12, 1 }
 0x13b   : > { %v2764_v33 = vpop.f32.mrf.mxu0 }
 0x13c   : > { %2536 = vmatmul.bf16.gmra.mxu1 %v712_v4  ;;  %2625 = vmatmul.bf16.gmra.mxu2 %v843_v15  ;;  %v5009_v43 = vadd.f32 %v2761_v46, %v2673_v34  ;;  %v721_v46 = vshll.u32 %v542_v17, 16  ;;  %v1186_v4 = vshll.u32 %v5015_v54, 16  ;;  %v844_v34 = vrot.slane %v4089_v19, 1 }
 0x13d   : > { %2714 = vmatmul.bf16.gmra.mxu3 %v4056_v45  ;;  %v1179_v45 = vshrl.u32 %v4996_v22, 16  ;;  %v993_v19 = vunpack.c.l.b16 %v3423_v26 }
 0x13e   : > { %2803 = vmatmul.bf16.gmra.mxu0 %v1177_v37  ;;  %v719_v37 = vor.u32 %v718_v39, %v714_v23  ;;  %v723_v60 = vrot.slane %v721_v46, 1  ;;  %v1188_v62 = vrot.slane %v1186_v4, 1  ;;  %v4227_v46 = vld [vmem:[%s4373_s8 + $0xb4] sm:$0xe] }
 0x13f   : > { %v2586_v47 = vpop.f32.mrf.mxu2  ;;  %v1184_v31 = vor.u32 %v1183_v51, %v1179_v45  ;;  %v4057_v45 = vld [vmem:[%s4373_s8 + $0xc0] sm:$0xff]  }
 0x140   : > { %v2587_v2 = vadd.f32 %v2586_v47, %v2498_v59  ;;  %v2675_v50 = vpop.f32.mrf.mxu3  ;;  %v845_v59 = vrot.slane %v542_v17, 1  ;;  %v724_v12 = vsel %vm544_vm0, %v719_v37, %v723_v60  ;;  %v1193_v4 = vshll.u32 %v4057_v45, 16 }
 0x141   : > { %v2499_v52 = vpop.f32.mrf.mxu1  ;;  %v1189_v17 = vsel %vm544_vm0, %v1184_v31, %v1188_v62  ;;  %v5034_v37 = vpack.c.b16 %v993_v19, %v993_v19 }
 0x142   : > { %v2676_v7 = vadd.f32 %v2675_v50, %v2587_v2  ;;  %v2500_v10 = vadd.f32 %v2499_v52, %v4742_v48  ;;  %v846_v50 = vsel %vm801_vm1, %v844_v34, %v845_v59  ;;  %v726_v59 = vshrl.u32 %v4550_v0, 16 }
 0x143   : > { %v2766_v3 = vpop.f32.mrf.mxu0 }
 0x144   : > { %v5020_v15 = vadd.f32 %v2764_v33, %v2676_v7  ;;  %v527_v33 = vunpack.c.l.b16 %v247_v28 }
 0x146   : > { %v543_v51 = vpack.c.b16 %v527_v33, %v527_v33 }
 0x147   : > { %v2588_v16 = vpop.f32.mrf.mxu2 }
 0x148   : > { %v2589_v47 = vadd.f32 %v2588_v16, %v2500_v10  ;;  %v2677_v2 = vpop.f32.mrf.mxu3  ;;  %v728_v10 = vshll.u32 %v4550_v0, 16  ;;  %v733_v28 = vshll.u32 %v543_v51, 16  ;;  %v1191_v16 = vshrl.u32 %v4057_v45, 16 }
 0x149   : > { %v2502_v48 = vpop.f32.mrf.mxu1 }
 0x14a   : > { %v2678_v52 = vadd.f32 %v2677_v2, %v2589_v47  ;;  %v2503_v23 = vadd.f32 %v2502_v48, %v4759_v41  ;;  %v730_v62 = vrot.slane %v728_v10, 1  ;;  %v1195_v2 = vrot.slane %v1193_v4, 1 }
 0x14b   : > { %v2769_v39 = vpop.f32.mrf.mxu0  ;;  %v1198_v48 = vshll.u32 %v5034_v37, 16  ;;  %v735_v33 = vrot.slane %v733_v28, 1 }
 0x14c   : > { %2541 = vmatmul.bf16.gmra.mxu1 %v724_v12  ;;  %2630 = vmatmul.bf16.gmra.mxu2 %v846_v50  ;;  %v5030_v7 = vadd.f32 %v2766_v3, %v2678_v52  ;;  %v4228_v3 = vor.u32 %v4227_v46, %v4553_v1  ;;  %v731_v50 = vor.u32 %v730_v62, %v726_v59  ;;  %v848_v52 = vrot.slane %v543_v51, 1  ;;  %v3472_v1 = vld [vmem:[%s4373_s8 + $0x20] sm:$0x1] }
 0x14d   : > { %2719 = vmatmul.bf16.gmra.mxu3 %v4996_v22  ;;  %v1442_v62 = vunpack.c.l.b16 %v3472_v1  ;;  %v5056_v1 = vld [vmem:[%s4373_s8 + $0x24] sm:$0xff]  }
 0x14e   : > { %2808 = vmatmul.bf16.gmra.mxu0 %v1189_v17  ;;  %v847_v0 = vrot.slane %v4228_v3, 1  ;;  %v1200_v17 = vrot.slane %v1198_v48, 1 }
 0x14f   : > { %v2591_v41 = vpop.f32.mrf.mxu2 }
 0x150   : > { %v2592_v60 = vadd.f32 %v2591_v41, %v2503_v23  ;;  %v2680_v34 = vpop.f32.mrf.mxu3  ;;  %v1196_v23 = vor.u32 %v1195_v2, %v1191_v16  ;;  %v849_v4 = vsel %vm801_vm1, %v847_v0, %v848_v52  ;;  %v1458_v16 = vpack.c.b16 %v1442_v62, %v1442_v62  ;;  %v4115_v2 = vld [vmem:[%s4373_s8 + $0x18] sm:$0xe] }
 0x151   : > { %v2504_v31 = vpop.f32.mrf.mxu1 }
 0x152   : > { %v2681_v26 = vadd.f32 %v2680_v34, %v2592_v60  ;;  %v2505_v22 = vadd.f32 %v2504_v31, %v4785_v36  ;;  %v736_v36 = vsel %vm544_vm0, %v731_v50, %v735_v33  ;;  %v4230_v60 = vld [vmem:[%s4373_s8 + $0xc] sm:$0xe]  ;;  %v1201_v51 = vsel %vm544_vm0, %v1196_v23, %v1200_v17  ;;  %v4058_v31 = vld [vmem:[%s4373_s8 + $0x18] sm:$0xff]  }
 0x153   : > { %v2771_v47 = vpop.f32.mrf.mxu0  ;;  %v1477_v3 = vshll.u32 %v4058_v31, 16  ;;  %v4231_v50 = vor.u32 %v4230_v60, %v4563_v5  ;;  %v1475_v0 = vshrl.u32 %v4058_v31, 16  ;;  %v1482_v17 = vshll.u32 %v1458_v16, 16 }
 0x154   : > { %v5040_v12 = vadd.f32 %v2769_v39, %v2681_v26 }
 0x155   : > { %v1479_v52 = vrot.slane %v1477_v3, 1  ;;  %v1484_v5 = vrot.slane %v1482_v17, 1 }
 0x157   : > { %v2593_v19 = vpop.f32.mrf.mxu2 }
 0x158   : > { %v2594_v46 = vadd.f32 %v2593_v19, %v2505_v22  ;;  %v2682_v10 = vpop.f32.mrf.mxu3  ;;  %v4114_v22 = vld [vmem:[%s4373_s8 + $0x18] sm:$0xf0] }
 0x159   : > { %v2507_v41 = vpop.f32.mrf.mxu1  ;;  %v4116_v19 = vor.u32 %v4115_v2, %v4114_v22 }
 0x15a   : > { %v2683_v39 = vadd.f32 %v2682_v10, %v2594_v46  ;;  %v2508_v34 = vadd.f32 %v2507_v41, %v4813_v30  ;;  %v4232_v46 = vld [vmem:[%s4373_s8 + $0x24] sm:$0xf0]  ;;  %v1266_v41 = vrot.slane %v4231_v50, 1  ;;  %v4233_v50 = vld [vmem:[%s4373_s8 + $0x24] sm:$0xe] }
 0x15b   : > { %v2774_v59 = vpop.f32.mrf.mxu0  ;;  %v1730_v60 = vrot.slane %v4116_v19, 1 }
 0x15c   : > { %2546 = vmatmul.bf16.gmra.mxu1 %v736_v36  ;;  %2635 = vmatmul.bf16.gmra.mxu2 %v849_v4  ;;  %v5049_v28 = vadd.f32 %v2771_v47, %v2683_v39  ;;  %v1267_v36 = vrot.slane %v4574_v18, 1  ;;  %v1480_v4 = vor.u32 %v1479_v52, %v1475_v0  ;;  %v1731_v39 = vrot.slane %v1458_v16, 1  ;;  %v4090_v52 = vld [vmem:[%s4373_s8 + $0x18] sm:$0xf0] }
 0x15d   : > { %2724 = vmatmul.bf16.gmra.mxu3 %v4057_v45 }
 0x15e   : > { %2813 = vmatmul.bf16.gmra.mxu0 %v1201_v51  ;;  %v1485_v18 = vsel %vm544_vm0, %v1480_v4, %v1484_v5 }
 0x15f   : > { %v2596_v26 = vpop.f32.mrf.mxu2 }
 0x160   : > { %v2597_v48 = vadd.f32 %v2596_v26, %v2508_v34  ;;  %v2685_v30 = vpop.f32.mrf.mxu3  ;;  %v3473_v34 = vld [vmem:[%s4373_s8 + $0x2c] sm:$0x1]  ;;  %v1268_v26 = vsel %vm801_vm1, %v1266_v41, %v1267_v36  ;;  %v1487_v36 = vshrl.u32 %v5056_v1, 16 }
 0x161   : > { %v2509_v33 = vpop.f32.mrf.mxu1  ;;  %v1443_v22 = vunpack.c.l.b16 %v3473_v34 }
 0x162   : > { %v2686_v23 = vadd.f32 %v2685_v30, %v2597_v48  ;;  %v2510_v47 = vadd.f32 %v2509_v33, %v4832_v20  ;;  %v1732_v30 = vsel %vm801_vm1, %v1730_v60, %v1731_v39  ;;  %v1489_v33 = vshll.u32 %v5056_v1, 16 }
 0x163   : > { %v2776_v45 = vpop.f32.mrf.mxu0  ;;  %v1459_v0 = vpack.c.b16 %v1443_v22, %v1443_v22  ;;  %v4234_v39 = vor.u32 %v4233_v50, %v4232_v46 }
 0x164   : > { %v5059_v10 = vadd.f32 %v2774_v59, %v2686_v23  ;;  %v4091_v23 = vld [vmem:[%s4373_s8 + $0x18] sm:$0xe]  ;;  %v1491_v4 = vrot.slane %v1489_v33, 1 }
 0x165   : > { %v4092_v41 = vor.u32 %v4091_v23, %v4090_v52  ;;  %v1494_v5 = vshll.u32 %v1459_v0, 16  ;;  %v1734_v22 = vrot.slane %v1459_v0, 1  ;;  %v4236_v23 = vld [vmem:[%s4373_s8 + $0x24] sm:$0xe] }
 0x167   : > { %v2598_v51 = vpop.f32.mrf.mxu2 }
 0x168   : > { %v2599_v62 = vadd.f32 %v2598_v51, %v2510_v47  ;;  %v2687_v20 = vpop.f32.mrf.mxu3  ;;  %v1269_v51 = vrot.slane %v4092_v41, 1 }
 0x169   : > { %v2512_v3 = vpop.f32.mrf.mxu1 }
 0x16a   : > { %v2688_v59 = vadd.f32 %v2687_v20, %v2599_v62  ;;  %v2513_v2 = vadd.f32 %v2512_v3, %v4687_v29  ;;  %v1270_v62 = vrot.slane %v4595_v56, 1  ;;  %v1492_v20 = vor.u32 %v1491_v4, %v1487_v36  ;;  %v4117_v36 = vld [vmem:[%s4373_s8 + $0x30] sm:$0xf0] }
 0x16b   : > { %v2779_v48 = vpop.f32.mrf.mxu0  ;;  %v1496_v3 = vrot.slane %v1494_v5, 1 }
 0x16c   : > { %2827 = vmatmul.bf16.vlgmr.msra.gmra.mxu1 %v1268_v26  ;;  %2916 = vmatmul.bf16.vlgmr.msra.gmra.mxu2 %v4058_v31  ;;  %v5068_v16 = vadd.f32 %v2776_v45, %v2688_v59  ;;  %v1733_v26 = vrot.slane %v4234_v39, 1 }
 0x16d   : > { %3005 = vmatmul.bf16.vlgmr.msra.gmra.mxu3 %v1485_v18  ;;  %v1497_v46 = vsel %vm544_vm0, %v1492_v20, %v1496_v3 }
 0x16e   : > { %3094 = vmatmul.bf16.vlgmr.msra.gmra.mxu0 %v1732_v30  ;;  %v1735_v52 = vsel %vm801_vm1, %v1733_v26, %v1734_v22  ;;  %v5093_v26 = vld [vmem:[%s4373_s8 + $0x3c] sm:$0xff]  }
 0x16f   : > { %v2601_v47 = vpop.f32.mrf.mxu2  ;;  %v4238_v22 = vld [vmem:[%s4373_s8 + $0x3c] sm:$0xf0] }
 0x170   : > { %v2602_v17 = vadd.f32 %v2601_v47, %v2513_v2  ;;  %v2690_v29 = vpop.f32.mrf.mxu3  ;;  %v3474_v2 = vld [vmem:[%s4373_s8 + $0x38] sm:$0x1]  ;;  %v4059_v47 = vld [vmem:[%s4373_s8 + $0x30] sm:$0xff]  }
 0x171   : > { %v2514_v19 = vpop.f32.mrf.mxu1  ;;  %v1444_v0 = vunpack.c.l.b16 %v3474_v2  ;;  %v1499_v39 = vshrl.u32 %v4059_v47, 16 }
 0x172   : > { %v2691_v31 = vadd.f32 %v2690_v29, %v2602_v17  ;;  %v2515_v45 = vadd.f32 %v2514_v19, %v4716_v9  ;;  %v1271_v9 = vsel %vm801_vm1, %v1269_v51, %v1270_v62  ;;  %v1501_v29 = vshll.u32 %v4059_v47, 16 }
 0x173   : > { %v2781_v60 = vpop.f32.mrf.mxu0  ;;  %v1460_v19 = vpack.c.b16 %v1444_v0, %v1444_v0 }
 0x174   : > { %v5075_v34 = vadd.f32 %v2779_v48, %v2691_v31  ;;  %v1503_v51 = vrot.slane %v1501_v29, 1 }
 0x175   : > { %v1506_v20 = vshll.u32 %v1460_v19, 16 }
 0x177   : > { %v2603_v59 = vpop.f32.mrf.mxu2 }
 0x178   : > { %v2604_v18 = vadd.f32 %v2603_v59, %v2515_v45  ;;  %v2692_v30 = vpop.f32.mrf.mxu3  ;;  %v4237_v45 = vor.u32 %v4236_v23, %v4606_v13  ;;  %v1508_v13 = vrot.slane %v1506_v20, 1  ;;  %v1511_v20 = vshrl.u32 %v5093_v26, 16 }
 0x179   : > { %v2517_v33 = vpop.f32.mrf.mxu1 }
 0x17a   : > { %v2693_v48 = vadd.f32 %v2692_v30, %v2604_v18  ;;  %v2518_v56 = vadd.f32 %v2517_v33, %v4736_v42  ;;  %v4118_v42 = vld [vmem:[%s4373_s8 + $0x30] sm:$0xe]  ;;  %v1272_v2 = vrot.slane %v4237_v45, 1  ;;  %v1273_v18 = vrot.slane %v4616_v38, 1 }
 0x17b   : > { %v2784_v50 = vpop.f32.mrf.mxu0  ;;  %v4119_v3 = vor.u32 %v4118_v42, %v4117_v36  ;;  %v1504_v30 = vor.u32 %v1503_v51, %v1499_v39  ;;  %v4239_v42 = vld [vmem:[%s4373_s8 + $0x3c] sm:$0xe]  ;;  %v4094_v45 = vld [vmem:[%s4373_s8 + $0x30] sm:$0xe] }
 0x17c   : > { %2832 = vmatmul.bf16.gmra.mxu1 %v1271_v9  ;;  %2921 = vmatmul.bf16.gmra.mxu2 %v5056_v1  ;;  %v5086_v17 = vadd.f32 %v2781_v60, %v2693_v48  ;;  %v1737_v9 = vrot.slane %v1460_v19, 1  ;;  %v1274_v23 = vsel %vm801_vm1, %v1272_v2, %v1273_v18 }
 0x17d   : > { %3010 = vmatmul.bf16.gmra.mxu3 %v1497_v46  ;;  %v1736_v33 = vrot.slane %v4119_v3, 1  ;;  %v3475_v46 = vld [vmem:[%s4373_s8 + $0x44] sm:$0x1]  ;;  %v1509_v38 = vsel %vm544_vm0, %v1504_v30, %v1508_v13  ;;  %v4240_v30 = vor.u32 %v4239_v42, %v4238_v22 }
 0x17e   : > { %3099 = vmatmul.bf16.gmra.mxu0 %v1735_v52  ;;  %v1445_v0 = vunpack.c.l.b16 %v3475_v46 }
 0x17f   : > { %v2606_v41 = vpop.f32.mrf.mxu2  ;;  %v1738_v36 = vsel %vm801_vm1, %v1736_v33, %v1737_v9  ;;  %v5395_v9 = vld [vmem:[#allocation2_spill] sm:$0xff] }
 0x180   : > { %v2607_v4 = vadd.f32 %v2606_v41, %v2518_v56  ;;  %v2695_v5 = vpop.f32.mrf.mxu3  ;;  %v1276_v46 = vrot.slane %v5395_v9, 1 }
 0x181   : > { %v2519_v31 = vpop.f32.mrf.mxu1 }
 0x182   : > { %v2696_v1 = vadd.f32 %v2695_v5, %v2607_v4  ;;  %v2520_v60 = vadd.f32 %v2519_v31, %v4751_v21  ;;  %v1513_v4 = vshll.u32 %v5093_v26, 16  ;;  %v1461_v5 = vpack.c.b16 %v1445_v0, %v1445_v0  ;;  %v4093_v31 = vld [vmem:[%s4373_s8 + $0x30] sm:$0xf0]  ;;  %v3476_v0 = vld [vmem:[%s4373_s8 + $0x50] sm:$0x1] }
 0x183   : > { %v2786_v62 = vpop.f32.mrf.mxu0 }
 0x184   : > { %v5096_v59 = vadd.f32 %v2784_v50, %v2696_v1  ;;  %v1515_v3 = vrot.slane %v1513_v4, 1  ;;  %v1518_v2 = vshll.u32 %v1461_v5, 16 }
 0x187   : > { %v2608_v48 = vpop.f32.mrf.mxu2 }
 0x188   : > { %v2609_v56 = vadd.f32 %v2608_v48, %v2520_v60  ;;  %v2697_v21 = vpop.f32.mrf.mxu3  ;;  %v4095_v60 = vor.u32 %v4094_v45, %v4093_v31  ;;  %v1516_v48 = vor.u32 %v1515_v3, %v1511_v20  ;;  %v4242_v45 = vld [vmem:[%s4373_s8 + $0x3c] sm:$0xe]  ;;  %v4120_v20 = vld [vmem:[%s4373_s8 + $0x48] sm:$0xf0]  ;;  %v4121_v3 = vld [vmem:[%s4373_s8 + $0x48] sm:$0xe] }
 0x189   : > { %v2522_v52 = vpop.f32.mrf.mxu1 }
 0x18a   : > { %v2698_v50 = vadd.f32 %v2697_v21, %v2609_v56  ;;  %v2523_v29 = vadd.f32 %v2522_v52, %v4777_v49  ;;  %v1275_v33 = vrot.slane %v4095_v60, 1  ;;  %v1520_v56 = vrot.slane %v1518_v2, 1 }
 0x18b   : > { %v2789_v41 = vpop.f32.mrf.mxu0  ;;  %v1739_v21 = vrot.slane %v4240_v30, 1  ;;  %v1740_v52 = vrot.slane %v1461_v5, 1  ;;  %v1446_v5 = vunpack.c.l.b16 %v3476_v0  ;;  %v5397_v30 = vld [vmem:[#allocation3_spill] sm:$0xff]  ;;  %v4244_v0 = vld [vmem:[%s4373_s8 + $0x54] sm:$0xf0] }
 0x18c   : > { %2837 = vmatmul.bf16.gmra.mxu1 %v1274_v23  ;;  %2926 = vmatmul.bf16.gmra.mxu2 %v4059_v47  ;;  %v5105_v19 = vadd.f32 %v2786_v62, %v2698_v50  ;;  %v1521_v22 = vsel %vm544_vm0, %v1516_v48, %v1520_v56 }
 0x18d   : > { %3015 = vmatmul.bf16.gmra.mxu3 %v1509_v38  ;;  %v1741_v31 = vsel %vm801_vm1, %v1739_v21, %v1740_v52  ;;  %v4122_v52 = vor.u32 %v4121_v3, %v4120_v20 }
 0x18e   : > { %3104 = vmatmul.bf16.gmra.mxu0 %v1738_v36  ;;  %v5396_v36 = vld [vmem:[#allocation17_spill] sm:$0xff] }
 0x18f   : > { %v2611_v39 = vpop.f32.mrf.mxu2 }
 0x190   : > { %v2612_v51 = vadd.f32 %v2611_v39, %v2523_v29  ;;  %v2700_v49 = vpop.f32.mrf.mxu3  ;;  %v4060_v39 = vld [vmem:[%s4373_s8 + $0x48] sm:$0xff]  }
 0x191   : > { %v2524_v1 = vpop.f32.mrf.mxu1  ;;  %v1523_v9 = vshrl.u32 %v4060_v39, 16 }
 0x192   : > { %v2701_v47 = vadd.f32 %v2700_v49, %v2612_v51  ;;  %v2525_v62 = vadd.f32 %v2524_v1, %v4805_v32  ;;  %v1277_v32 = vsel %vm801_vm1, %v1275_v33, %v1276_v46  ;;  %v1525_v49 = vshll.u32 %v4060_v39, 16 }
 0x193   : > { %v2791_v18 = vpop.f32.mrf.mxu0  ;;  %v1462_v1 = vpack.c.b16 %v1446_v5, %v1446_v5  ;;  %v4243_v33 = vor.u32 %v4242_v45, %v5397_v30 }
 0x194   : > { %v5112_v13 = vadd.f32 %v2789_v41, %v2701_v47  ;;  %v1527_v46 = vrot.slane %v1525_v49, 1 }
 0x195   : > { %v1530_v21 = vshll.u32 %v1462_v1, 16 }
 0x197   : > { %v2613_v23 = vpop.f32.mrf.mxu2 }
 0x198   : > { %v2614_v50 = vadd.f32 %v2613_v23, %v2525_v62  ;;  %v2702_v29 = vpop.f32.mrf.mxu3  ;;  %v5130_v23 = vld [vmem:[%s4373_s8 + $0x54] sm:$0xff]  }
 0x199   : > { %v2527_v38 = vpop.f32.mrf.mxu1 }
 0x19a   : > { %v2703_v41 = vadd.f32 %v2702_v29, %v2614_v50  ;;  %v2528_v42 = vadd.f32 %v2527_v38, %v5396_v36  ;;  %v1278_v29 = vrot.slane %v4243_v33, 1  ;;  %v5399_v38 = vld [vmem:[#allocation4_spill] sm:$0xff]  ;;  %v1742_v36 = vrot.slane %v4122_v52, 1 }
 0x19b   : > { %v2794_v4 = vpop.f32.mrf.mxu0 }
 0x19c   : > { %2842 = vmatmul.bf16.gmra.mxu1 %v1277_v32  ;;  %2931 = vmatmul.bf16.gmra.mxu2 %v5093_v26  ;;  %v5123_v51 = vadd.f32 %v2791_v18, %v2703_v41  ;;  %v5398_v18 = vld [vmem:[#allocation19_spill] sm:$0xff]  ;;  %v1279_v32 = vrot.slane %v5399_v38, 1  ;;  %v1532_v41 = vrot.slane %v1530_v21, 1 }
 0x19d   : > { %3020 = vmatmul.bf16.gmra.mxu3 %v1521_v22  ;;  %v1528_v22 = vor.u32 %v1527_v46, %v1523_v9  ;;  %v4245_v9 = vld [vmem:[%s4373_s8 + $0x54] sm:$0xe]  ;;  %v1537_v46 = vshll.u32 %v5130_v23, 16 }
 0x19e   : > { %3109 = vmatmul.bf16.gmra.mxu0 %v1741_v31  ;;  %v3477_v31 = vld [vmem:[%s4373_s8 + $0x5c] sm:$0x1]  ;;  %v1280_v20 = vsel %vm801_vm1, %v1278_v29, %v1279_v32 }
 0x19f   : > { %v2616_v60 = vpop.f32.mrf.mxu2  ;;  %v1447_v3 = vunpack.c.l.b16 %v3477_v31  ;;  %v1533_v30 = vsel %vm544_vm0, %v1528_v22, %v1532_v41  ;;  %v1535_v22 = vshrl.u32 %v5130_v23, 16  ;;  %v1539_v41 = vrot.slane %v1537_v46, 1 }
 0x1a0   : > { %v2617_v2 = vadd.f32 %v2616_v60, %v2528_v42  ;;  %v2705_v47 = vpop.f32.mrf.mxu3  ;;  %v1743_v42 = vrot.slane %v1462_v1, 1 }
 0x1a1   : > { %v2529_v62 = vpop.f32.mrf.mxu1 }
 0x1a2   : > { %v2706_v26 = vadd.f32 %v2705_v47, %v2617_v2  ;;  %v2530_v48 = vadd.f32 %v2529_v62, %v5398_v18  ;;  %v5400_v2 = vld [vmem:[#allocation6_spill] sm:$0xff]  ;;  %v1744_v33 = vsel %vm801_vm1, %v1742_v36, %v1743_v42  ;;  %v4096_v18 = vld [vmem:[%s4373_s8 + $0x48] sm:$0xf0] }
 0x1a3   : > { %v2796_v56 = vpop.f32.mrf.mxu0 }
 0x1a4   : > { %v5133_v50 = vadd.f32 %v2794_v4, %v2706_v26  ;;  %v1463_v26 = vpack.c.b16 %v1447_v3, %v1447_v3  ;;  %v1540_v3 = vor.u32 %v1539_v41, %v1535_v22  ;;  %v4061_v22 = vld [vmem:[%s4373_s8 + $0x60] sm:$0xff]  }
 0x1a6   : > { %v1542_v36 = vshll.u32 %v1463_v26, 16 }
 0x1a7   : > { %v2618_v45 = vpop.f32.mrf.mxu2 }
 0x1a8   : > { %v2619_v5 = vadd.f32 %v2618_v45, %v2530_v48  ;;  %v2707_v49 = vpop.f32.mrf.mxu3  ;;  %v4097_v48 = vld [vmem:[%s4373_s8 + $0x48] sm:$0xe]  ;;  %v4246_v45 = vor.u32 %v4245_v9, %v4244_v0  ;;  %v5403_v9 = vld [vmem:[#allocation10_spill] sm:$0xff] }
 0x1a9   : > { %v2532_v60 = vpop.f32.mrf.mxu1  ;;  %v4098_v32 = vor.u32 %v4097_v48, %v4096_v18 }
 0x1aa   : > { %v2708_v4 = vadd.f32 %v2707_v49, %v2619_v5  ;;  %v2533_v47 = vadd.f32 %v2532_v60, %v5400_v2  ;;  %v5402_v60 = vld [vmem:[#allocation5_spill] sm:$0xff]  ;;  %v1745_v2 = vrot.slane %v4246_v45, 1  ;;  %v4124_v45 = vld [vmem:[%s4373_s8 + $0x60] sm:$0xe] }
 0x1ab   : > { %v2799_v62 = vpop.f32.mrf.mxu0  ;;  %v1281_v49 = vrot.slane %v4098_v32, 1  ;;  %v4248_v32 = vld [vmem:[%s4373_s8 + $0x54] sm:$0xe] }
 0x1ac   : > { %2847 = vmatmul.bf16.gmra.mxu1 %v1280_v20  ;;  %2936 = vmatmul.bf16.gmra.mxu2 %v4060_v39  ;;  %v5142_v1 = vadd.f32 %v2796_v56, %v2708_v4  ;;  %v5401_v56 = vld [vmem:[#allocation8_spill] sm:$0xff]  ;;  %v1282_v20 = vrot.slane %v5402_v60, 1  ;;  %v1544_v4 = vrot.slane %v1542_v36, 1  ;;  %v1549_v36 = vshll.u32 %v4061_v22, 16 }
 0x1ad   : > { %3025 = vmatmul.bf16.gmra.mxu3 %v1533_v30 }
 0x1ae   : > { %3114 = vmatmul.bf16.gmra.mxu0 %v1744_v33  ;;  %v3478_v33 = vld [vmem:[%s4373_s8 + $0x68] sm:$0x1]  ;;  %v1545_v0 = vsel %vm544_vm0, %v1540_v3, %v1544_v4 }
 0x1af   : > { %v2621_v21 = vpop.f32.mrf.mxu2  ;;  %v5404_v3 = vld [vmem:[#allocation7_spill] sm:$0xff] }
 0x1b0   : > { %v2622_v52 = vadd.f32 %v2621_v21, %v2533_v47  ;;  %v2710_v29 = vpop.f32.mrf.mxu3  ;;  %v1746_v47 = vrot.slane %v1463_v26, 1  ;;  %v1283_v21 = vsel %vm801_vm1, %v1281_v49, %v1282_v20  ;;  %v1448_v26 = vunpack.c.l.b16 %v3478_v33 }
 0x1b1   : > { %v2534_v38 = vpop.f32.mrf.mxu1  ;;  %v4249_v4 = vor.u32 %v4248_v32, %v5404_v3 }
 0x1b2   : > { %v2711_v39 = vadd.f32 %v2710_v29, %v2622_v52  ;;  %v2535_v42 = vadd.f32 %v2534_v38, %v5401_v56  ;;  %v1747_v38 = vsel %vm801_vm1, %v1745_v2, %v1746_v47  ;;  %v1547_v2 = vshrl.u32 %v4061_v22, 16 }
 0x1b3   : > { %v2801_v31 = vpop.f32.mrf.mxu0  ;;  %v1551_v47 = vrot.slane %v1549_v36, 1  ;;  %v3479_v36 = vld [vmem:[%s4373_s8 + $0x74] sm:$0x1] }
 0x1b4   : > { %v5149_v5 = vadd.f32 %v2799_v62, %v2711_v39  ;;  %v1464_v39 = vpack.c.b16 %v1448_v26, %v1448_v26 }
 0x1b7   : > { %v2623_v30 = vpop.f32.mrf.mxu2 }
 0x1b8   : > { %v2624_v46 = vadd.f32 %v2623_v30, %v2535_v42  ;;  %v2712_v18 = vpop.f32.mrf.mxu3  ;;  %v4123_v42 = vld [vmem:[%s4373_s8 + $0x60] sm:$0xf0] }
 0x1b9   : > { %v2537_v48 = vpop.f32.mrf.mxu1 }
 0x1ba   : > { %v2713_v62 = vadd.f32 %v2712_v18, %v2624_v46  ;;  %v2538_v52 = vadd.f32 %v2537_v48, %v5403_v9  ;;  %v1554_v46 = vshll.u32 %v1464_v39, 16  ;;  %v4125_v18 = vor.u32 %v4124_v45, %v4123_v42  ;;  %v5167_v48 = vld [vmem:[%s4373_s8 + $0x6c] sm:$0xff]   ;;  %v5407_v9 = vld [vmem:[#allocation9_spill] sm:$0xff] }
 0x1bb   : > { %v2804_v29 = vpop.f32.mrf.mxu0  ;;  %v1449_v45 = vunpack.c.l.b16 %v3479_v36 }
 0x1bc   : > { %2852 = vmatmul.bf16.gmra.mxu1 %v1283_v21  ;;  %2941 = vmatmul.bf16.gmra.mxu2 %v5130_v23  ;;  %v5160_v41 = vadd.f32 %v2801_v31, %v2713_v62  ;;  %v5405_v31 = vld [vmem:[#allocation11_spill] sm:$0xff]  ;;  %v4250_v21 = vld [vmem:[%s4373_s8 + $0x6c] sm:$0xf0]  ;;  %v1284_v62 = vrot.slane %v4249_v4, 1  ;;  %v1556_v32 = vrot.slane %v1554_v46, 1  ;;  %v1748_v26 = vrot.slane %v4125_v18, 1 }
 0x1bd   : > { %3030 = vmatmul.bf16.gmra.mxu3 %v1545_v0  ;;  %v4251_v46 = vld [vmem:[%s4373_s8 + $0x6c] sm:$0xe]  ;;  %v1465_v18 = vpack.c.b16 %v1449_v45, %v1449_v45 }
 0x1be   : > { %3119 = vmatmul.bf16.gmra.mxu0 %v1747_v38  ;;  %v1552_v38 = vor.u32 %v1551_v47, %v1547_v2 }
 0x1bf   : > { %v2626_v56 = vpop.f32.mrf.mxu2 }
 0x1c0   : > { %v2627_v49 = vadd.f32 %v2626_v56, %v2538_v52  ;;  %v2715_v60 = vpop.f32.mrf.mxu3  ;;  %v1285_v52 = vrot.slane %v5407_v9, 1  ;;  %v1749_v56 = vrot.slane %v1464_v39, 1  ;;  %v1557_v2 = vsel %vm544_vm0, %v1552_v38, %v1556_v32  ;;  %v4100_v9 = vld [vmem:[%s4373_s8 + $0x60] sm:$0xe] }
 0x1c1   : > { %v2539_v20 = vpop.f32.mrf.mxu1  ;;  %v1559_v38 = vshrl.u32 %v5167_v48, 16 }
 0x1c2   : > { %v2716_v23 = vadd.f32 %v2715_v60, %v2627_v49  ;;  %v2540_v30 = vadd.f32 %v2539_v20, %v5405_v31  ;;  %v1286_v42 = vsel %vm801_vm1, %v1284_v62, %v1285_v52  ;;  %v1750_v47 = vsel %vm801_vm1, %v1748_v26, %v1749_v56  ;;  %v4099_v62 = vld [vmem:[%s4373_s8 + $0x60] sm:$0xf0] }
 0x1c3   : > { %v2806_v33 = vpop.f32.mrf.mxu0  ;;  %v1566_v26 = vshll.u32 %v1465_v18, 16 }
 0x1c4   : > { %v5170_v0 = vadd.f32 %v2804_v29, %v2716_v23  ;;  %v5408_v23 = vld [vmem:[#allocation13_spill] sm:$0xff] }
 0x1c6   : > { %5406 = vst [vmem:[#allocation2_spill] sm:$0xff] %v5170_v0 }
 0x1c7   : > { %v2628_v49 = vpop.f32.mrf.mxu2 }
 0x1c8   : > { %v2629_v60 = vadd.f32 %v2628_v49, %v2540_v30  ;;  %v2717_v20 = vpop.f32.mrf.mxu3  ;;  %v1561_v30 = vshll.u32 %v5167_v48, 16 }
 0x1c9   : > { %v2542_v3 = vpop.f32.mrf.mxu1 }
 0x1ca   : > { %v2718_v29 = vadd.f32 %v2717_v20, %v2629_v60  ;;  %v2543_v4 = vadd.f32 %v2542_v3, %v5408_v23  ;;  %v4101_v20 = vor.u32 %v4100_v9, %v4099_v62  ;;  %v1563_v32 = vrot.slane %v1561_v30, 1  ;;  %v5411_v23 = vld [vmem:[#allocation12_spill] sm:$0xff] }
 0x1cb   : > { %v2809_v31 = vpop.f32.mrf.mxu0  ;;  %v1752_v9 = vrot.slane %v1465_v18, 1 }
 0x1cc   : > { %2857 = vmatmul.bf16.gmra.mxu1 %v1286_v42  ;;  %2946 = vmatmul.bf16.gmra.mxu2 %v4061_v22  ;;  %v5179_v39 = vadd.f32 %v2806_v33, %v2718_v29  ;;  %v5410_v33 = vld [vmem:[#allocation15_spill] sm:$0xff]  ;;  %v4252_v42 = vor.u32 %v4251_v46, %v4250_v21  ;;  %v1287_v45 = vrot.slane %v4101_v20, 1  ;;  %v5412_v46 = vld [vmem:[#allocation18_spill] sm:$0xff] }
 0x1cd   : > { %3035 = vmatmul.bf16.gmra.mxu3 %v1557_v2  ;;  %v1288_v2 = vrot.slane %v5411_v23, 1 }
 0x1ce   : > { %5409 = vst [vmem:[#allocation17_spill] sm:$0xff] %v5179_v39  ;;  %3124 = vmatmul.bf16.gmra.mxu0 %v1750_v47  ;;  %v1568_v47 = vrot.slane %v1566_v26, 1  ;;  %v1751_v62 = vrot.slane %v4252_v42, 1  ;;  %v3480_v39 = vld [vmem:[%s4373_s8 + $0x80] sm:$0x1]  ;;  %v4062_v26 = vld [vmem:[%s4373_s8 + $0x78] sm:$0xff]  }
 0x1cf   : > { %v2631_v52 = vpop.f32.mrf.mxu2  ;;  %v1450_v18 = vunpack.c.l.b16 %v3480_v39  ;;  %v4126_v42 = vld [vmem:[%s4373_s8 + $0x78] sm:$0xf0]  ;;  %v1571_v39 = vshrl.u32 %v4062_v26, 16 }
 0x1d0   : > { %v2632_v36 = vadd.f32 %v2631_v52, %v2543_v4  ;;  %v2720_v49 = vpop.f32.mrf.mxu3  ;;  %v1564_v4 = vor.u32 %v1563_v32, %v1559_v38  ;;  %v1753_v38 = vsel %vm801_vm1, %v1751_v62, %v1752_v9  ;;  %v4254_v32 = vld [vmem:[%s4373_s8 + $0x6c] sm:$0xe] }
 0x1d1   : > { %v2544_v60 = vpop.f32.mrf.mxu1 }
 0x1d2   : > { %v2721_v22 = vadd.f32 %v2720_v49, %v2632_v36  ;;  %v2545_v56 = vadd.f32 %v2544_v60, %v5410_v33  ;;  %v1289_v49 = vsel %vm801_vm1, %v1287_v45, %v1288_v2  ;;  %v1569_v21 = vsel %vm544_vm0, %v1564_v4, %v1568_v47  ;;  %v4127_v45 = vld [vmem:[%s4373_s8 + $0x78] sm:$0xe]  ;;  %v5414_v47 = vld [vmem:[#allocation14_spill] sm:$0xff] }
 0x1d3   : > { %v2811_v3 = vpop.f32.mrf.mxu0  ;;  %v1573_v33 = vshll.u32 %v4062_v26, 16  ;;  %v4255_v62 = vor.u32 %v4254_v32, %v5414_v47 }
 0x1d4   : > { %v5186_v29 = vadd.f32 %v2809_v31, %v2721_v22 }
 0x1d5   : > { %v1575_v9 = vrot.slane %v1573_v33, 1  ;;  %v3481_v33 = vld [vmem:[%s4373_s8 + $0x8c] sm:$0x1] }
 0x1d7   : > { %v2633_v52 = vpop.f32.mrf.mxu2 }
 0x1d8   : > { %v2634_v30 = vadd.f32 %v2633_v52, %v2545_v56  ;;  %v2722_v0 = vpop.f32.mrf.mxu3  ;;  %v1466_v56 = vpack.c.b16 %v1450_v18, %v1450_v18 }
 0x1d9   : > { %v2547_v36 = vpop.f32.mrf.mxu1 }
 0x1da   : > { %v2723_v31 = vadd.f32 %v2722_v0, %v2634_v30  ;;  %v2548_v60 = vadd.f32 %v2547_v36, %v5412_v46  ;;  %v1578_v36 = vshll.u32 %v1466_v56, 16 }
 0x1db   : > { %v2814_v20 = vpop.f32.mrf.mxu0 }
 0x1dc   : > { %2862 = vmatmul.bf16.gmra.mxu1 %v1289_v49  ;;  %2951 = vmatmul.bf16.gmra.mxu2 %v5167_v48  ;;  %v5197_v22 = vadd.f32 %v2811_v3, %v2723_v31  ;;  %v5415_v3 = vld [vmem:[#allocation20_spill] sm:$0xff]  ;;  %v4128_v49 = vor.u32 %v4127_v45, %v4126_v42  ;;  %v4256_v31 = vld [vmem:[%s4373_s8 + $0x84] sm:$0xf0]  ;;  %v1580_v32 = vrot.slane %v1578_v36, 1  ;;  %v1451_v45 = vunpack.c.l.b16 %v3481_v33  ;;  %v4102_v36 = vld [vmem:[%s4373_s8 + $0x78] sm:$0xf0] }
 0x1dd   : > { %3040 = vmatmul.bf16.gmra.mxu3 %v1569_v21  ;;  %v5204_v21 = vld [vmem:[%s4373_s8 + $0x84] sm:$0xff]  }
 0x1de   : > { %5413 = vst [vmem:[#allocation3_spill] sm:$0xff] %v5197_v22  ;;  %3129 = vmatmul.bf16.gmra.mxu0 %v1753_v38  ;;  %v1290_v38 = vrot.slane %v4255_v62, 1  ;;  %v1754_v47 = vrot.slane %v4128_v49, 1  ;;  %v1755_v22 = vrot.slane %v1466_v56, 1  ;;  %v4103_v49 = vld [vmem:[%s4373_s8 + $0x78] sm:$0xe] }
 0x1df   : > { %v2636_v0 = vpop.f32.mrf.mxu2 }
 0x1e0   : > { %v2637_v23 = vadd.f32 %v2636_v0, %v2548_v60  ;;  %v2725_v2 = vpop.f32.mrf.mxu3  ;;  %v5417_v60 = vld [vmem:[#allocation16_spill] sm:$0xff]  ;;  %v1576_v0 = vor.u32 %v1575_v9, %v1571_v39  ;;  %v4257_v39 = vld [vmem:[%s4373_s8 + $0x84] sm:$0xe]  ;;  %v1585_v9 = vshll.u32 %v5204_v21, 16 }
 0x1e1   : > { %v2549_v4 = vpop.f32.mrf.mxu1  ;;  %v1291_v18 = vrot.slane %v5417_v60, 1  ;;  %v1756_v60 = vsel %vm801_vm1, %v1754_v47, %v1755_v22  ;;  %v1583_v22 = vshrl.u32 %v5204_v21, 16 }
 0x1e2   : > { %v2726_v48 = vadd.f32 %v2725_v2, %v2637_v23  ;;  %v2550_v52 = vadd.f32 %v2549_v4, %v5415_v3  ;;  %v1581_v62 = vsel %vm544_vm0, %v1576_v0, %v1580_v32  ;;  %v4104_v0 = vor.u32 %v4103_v49, %v4102_v36  ;;  %v3482_v49 = vld [vmem:[%s4373_s8 + $0x98] sm:$0x1] }
 0x1e3   : > { %v2816_v30 = vpop.f32.mrf.mxu0  ;;  %v1292_v42 = vsel %vm801_vm1, %v1290_v38, %v1291_v18  ;;  %v1587_v32 = vrot.slane %v1585_v9, 1 }
 0x1e4   : > { %v5207_v46 = vadd.f32 %v2814_v20, %v2726_v48 }
 0x1e6   : > { %5416 = vst [vmem:[#allocation19_spill] sm:$0xff] %v5207_v46 }
 0x1e7   : > { %v2638_v23 = vpop.f32.mrf.mxu2 }
 0x1e8   : > { %v2639_v2 = vadd.f32 %v2638_v23, %v2550_v52  ;;  %v2727_v4 = vpop.f32.mrf.mxu3  ;;  %v1467_v52 = vpack.c.b16 %v1451_v45, %v1451_v45 }
 0x1e9   : > { %v2828_v3 = vpop.f32.mrf.mxu1 }
 0x1ea   : > { %v2728_v20 = vadd.f32 %v2727_v4, %v2639_v2  ;;  %v2829_v18 = vadd.f32 %v2828_v3, %v4880_v35  ;;  %v4258_v2 = vor.u32 %v4257_v39, %v4256_v31  ;;  %v1293_v4 = vrot.slane %v4104_v0, 1  ;;  %v4260_v31 = vld [vmem:[%s4373_s8 + $0x84] sm:$0xe] }
 0x1eb   : > { %v3095_v48 = vpop.f32.mrf.mxu0  ;;  %v1758_v36 = vrot.slane %v1467_v52, 1  ;;  %v1452_v39 = vunpack.c.l.b16 %v3482_v49 }
 0x1ec   : > { %2867 = vmatmul.bf16.gmra.mxu1 %v1292_v42  ;;  %2956 = vmatmul.bf16.gmra.mxu2 %v4062_v26  ;;  %v5215_v56 = vadd.f32 %v2816_v30, %v2728_v20  ;;  %v1590_v26 = vshll.u32 %v1467_v52, 16  ;;  %v5419_v42 = vld [vmem:[#allocation21_spill] sm:$0xff]  ;;  %v1588_v20 = vor.u32 %v1587_v32, %v1583_v22  ;;  %v1757_v3 = vrot.slane %v4258_v2, 1 }
 0x1ed   : > { %3045 = vmatmul.bf16.gmra.mxu3 %v1581_v62  ;;  %v1294_v45 = vrot.slane %v5419_v42, 1  ;;  %v1468_v32 = vpack.c.b16 %v1452_v39, %v1452_v39 }
 0x1ee   : > { %5418 = vst [vmem:[#allocation4_spill] sm:$0xff] %v5215_v56  ;;  %3134 = vmatmul.bf16.gmra.mxu0 %v1756_v60  ;;  %v1592_v62 = vrot.slane %v1590_v26, 1 }
 0x1ef   : > { %v2917_v38 = vpop.f32.mrf.mxu2 }
 0x1f0   : > { %v3006_v33 = vpop.f32.mrf.mxu3  ;;  %v2918_v30 = vadd.f32 %v2917_v38, %v2829_v18  ;;  %v1295_v18 = vsel %vm801_vm1, %v1293_v4, %v1294_v45  ;;  %v4261_v45 = vor.u32 %v4260_v31, %v4878_v25 }
 0x1f1   : > { %v2830_v23 = vpop.f32.mrf.mxu1 }
 0x1f2   : > { %v3007_v60 = vadd.f32 %v3006_v33, %v2918_v30  ;;  %v2831_v35 = vadd.f32 %v2830_v23, %v4889_v8  ;;  %v1593_v33 = vsel %vm544_vm0, %v1588_v20, %v1592_v62  ;;  %v1759_v8 = vsel %vm801_vm1, %v1757_v3, %v1758_v36  ;;  %v4063_v23 = vld [vmem:[%s4373_s8 + $0x90] sm:$0xff]  }
 0x1f3   : > { %v3097_v47 = vpop.f32.mrf.mxu0  ;;  %v4129_v30 = vld [vmem:[%s4373_s8 + $0x90] sm:$0xf0]  ;;  %v1595_v62 = vshrl.u32 %v4063_v23, 16  ;;  %v1296_v39 = vrot.slane %v4261_v45, 1 }
 0x1f4   : > { %v3096_v0 = vadd.f32 %v3095_v48, %v3007_v60 }
 0x1f6   : > { %v3175_v26 = vmax.f32 %v3096_v0, 0.0  ;;  %v1297_v0 = vrot.slane %v4895_v24, 1 }
 0x1f7   : > { %v2919_v56 = vpop.f32.mrf.mxu2 }
 0x1f8   : > { %v2920_v9 = vadd.f32 %v2919_v56, %v2831_v35  ;;  %v3008_v46 = vpop.f32.mrf.mxu3  ;;  %v1597_v56 = vshll.u32 %v4063_v23, 16  ;;  %v1602_v35 = vshll.u32 %v1468_v32, 16 }
 0x1f9   : > { %v2833_v38 = vpop.f32.mrf.mxu1 }
 0x1fa   : > { %v3009_v42 = vadd.f32 %v3008_v46, %v2920_v9  ;;  %v1599_v60 = vrot.slane %v1597_v56, 1  ;;  %v5243_v9 = vld [vmem:[%s4373_s8 + $0x9c] sm:$0xff]  }
 0x1fb   : > { %v3100_v22 = vpop.f32.mrf.mxu0 }
 0x1fc   : > { %v3098_v52 = vadd.f32 %v3097_v47, %v3009_v42  ;;  %2872 = vmatmul.bf16.gmra.mxu1 %v1295_v18  ;;  %2961 = vmatmul.bf16.gmra.mxu2 %v5204_v21  ;;  %v4130_v47 = vld [vmem:[%s4373_s8 + $0x90] sm:$0xe]  ;;  %v2834_v21 = vadd.f32 %v2833_v38, %v4902_v53  ;;  %v4262_v18 = vld [vmem:[%s4373_s8 + $0x9c] sm:$0xf0]  ;;  %v1600_v42 = vor.u32 %v1599_v60, %v1595_v62  ;;  %v1604_v53 = vrot.slane %v1602_v35, 1 }
 0x1fd   : > { %3050 = vmatmul.bf16.gmra.mxu3 %v1593_v33  ;;  %v4131_v49 = vor.u32 %v4130_v47, %v4129_v30  ;;  %v1761_v33 = vrot.slane %v1468_v32, 1  ;;  %v1609_v32 = vshll.u32 %v5243_v9, 16  ;;  %v4106_v35 = vld [vmem:[%s4373_s8 + $0x90] sm:$0xe] }
 0x1fe   : > { %3139 = vmatmul.bf16.gmra.mxu0 %v1759_v8  ;;  %v3176_v48 = vmax.f32 %v3098_v52, 0.0  ;;  %v3483_v8 = vld [vmem:[%s4373_s8 + $0xa4] sm:$0x1] }
 0x1ff   : > { %v2922_v46 = vpop.f32.mrf.mxu2  ;;  %v1760_v31 = vrot.slane %v4131_v49, 1  ;;  %v1453_v30 = vunpack.c.l.b16 %v3483_v8 }
 0x200   : > { %v3966_v2 = vpack.c.bf16 %v3176_v48, %v3175_v26  ;;  %v3011_v4 = vpop.f32.mrf.mxu3  ;;  %v2923_v3 = vadd.f32 %v2922_v46, %v2834_v21  ;;  %v1298_v46 = vsel %vm801_vm1, %v1296_v39, %v1297_v0  ;;  %v1605_v21 = vsel %vm544_vm0, %v1600_v42, %v1604_v53 }
 0x201   : > { %v2835_v20 = vpop.f32.mrf.mxu1 }
 0x202   : > { %3967 = vst [vmem:[%s5235_s10] sm:$0xff] %v3966_v2   ;;  %v3012_v38 = vadd.f32 %v3011_v4, %v2923_v3  ;;  %v2836_v25 = vadd.f32 %v2835_v20, %v4914_v40  ;;  %v1762_v4 = vsel %vm801_vm1, %v1760_v31, %v1761_v33  ;;  %v4263_v40 = vld [vmem:[%s4373_s8 + $0x9c] sm:$0xe]  ;;  %v1469_v20 = vpack.c.b16 %v1453_v30, %v1453_v30 }
 0x203   : > { %v3102_v36 = vpop.f32.mrf.mxu0  ;;  %v4264_v33 = vor.u32 %v4263_v40, %v4262_v18 }
 0x204   : > { %v3101_v47 = vadd.f32 %v3100_v22, %v3012_v38  ;;  %v4105_v22 = vld [vmem:[%s4373_s8 + $0x90] sm:$0xf0]  ;;  %v1614_v38 = vshll.u32 %v1469_v20, 16  ;;  %v1764_v30 = vrot.slane %v1469_v20, 1 }
 0x205   : > { %v4107_v53 = vor.u32 %v4106_v35, %v4105_v22  ;;  %v4064_v35 = vld [vmem:[%s4373_s8 + $0xa8] sm:$0xff]  }
 0x206   : > { %v3177_v62 = vmax.f32 %v3101_v47, 0.0  ;;  %v3484_v47 = vld [vmem:[%s4373_s8 + $0xb0] sm:$0x1] }
 0x207   : > { %v2924_v52 = vpop.f32.mrf.mxu2  ;;  %v1299_v8 = vrot.slane %v4107_v53, 1  ;;  %v1454_v18 = vunpack.c.l.b16 %v3484_v47  ;;  %v4133_v53 = vld [vmem:[%s4373_s8 + $0xa8] sm:$0xe] }
 0x208   : > { %v2925_v56 = vadd.f32 %v2924_v52, %v2836_v25  ;;  %v3013_v26 = vpop.f32.mrf.mxu3  ;;  %v1300_v52 = vrot.slane %v4917_v57, 1 }
 0x209   : > { %v2838_v48 = vpop.f32.mrf.mxu1 }
 0x20a   : > { %v3014_v24 = vadd.f32 %v3013_v26, %v2925_v56  ;;  %v2839_v39 = vadd.f32 %v2838_v48, %v4942_v6  ;;  %v1616_v26 = vrot.slane %v1614_v38, 1  ;;  %v1763_v48 = vrot.slane %v4264_v33, 1 }
 0x20b   : > { %v3105_v2 = vpop.f32.mrf.mxu0 }
 0x20c   : > { %v3103_v45 = vadd.f32 %v3102_v36, %v3014_v24  ;;  %2877 = vmatmul.bf16.gmra.mxu1 %v1298_v46  ;;  %2966 = vmatmul.bf16.gmra.mxu2 %v4063_v23  ;;  %v1607_v23 = vshrl.u32 %v5243_v9, 16  ;;  %v1611_v36 = vrot.slane %v1609_v32, 1  ;;  %v1301_v32 = vsel %vm801_vm1, %v1299_v8, %v1300_v52 }
 0x20d   : > { %3055 = vmatmul.bf16.gmra.mxu3 %v1605_v21 }
 0x20e   : > { %3144 = vmatmul.bf16.gmra.mxu0 %v1762_v4  ;;  %v3178_v60 = vmax.f32 %v3103_v45, 0.0  ;;  %v1612_v56 = vor.u32 %v1611_v36, %v1607_v23 }
 0x20f   : > { %v2927_v3 = vpop.f32.mrf.mxu2 }
 0x210   : > { %v3971_v49 = vpack.c.bf16 %v3178_v60, %v3177_v62  ;;  %v3016_v0 = vpop.f32.mrf.mxu3  ;;  %v2928_v25 = vadd.f32 %v2927_v3, %v2839_v39  ;;  %v4266_v62 = vld [vmem:[%s4373_s8 + $0x9c] sm:$0xe]  ;;  %v1617_v22 = vsel %vm544_vm0, %v1612_v56, %v1616_v26  ;;  %v1621_v3 = vshll.u32 %v4064_v35, 16 }
 0x211   : > { %v2840_v42 = vpop.f32.mrf.mxu1 }
 0x212   : > { %4138 = vst [vmem:[%s5235_s10 + $0x8] sm:$0xff] %v3971_v49   ;;  %v3017_v46 = vadd.f32 %v3016_v0, %v2928_v25  ;;  %v2841_v6 = vadd.f32 %v2840_v42, %v4951_v11  ;;  %v1765_v11 = vsel %vm801_vm1, %v1763_v48, %v1764_v30  ;;  %v1470_v49 = vpack.c.b16 %v1454_v18, %v1454_v18  ;;  %v4132_v42 = vld [vmem:[%s4373_s8 + $0xa8] sm:$0xf0] }
 0x213   : > { %v3107_v31 = vpop.f32.mrf.mxu0  ;;  %v4267_v25 = vor.u32 %v4266_v62, %v4940_v63  ;;  %v1623_v33 = vrot.slane %v1621_v3, 1  ;;  %v4134_v26 = vor.u32 %v4133_v53, %v4132_v42  ;;  %v1303_v30 = vrot.slane %v4957_v58, 1 }
 0x214   : > { %v3106_v40 = vadd.f32 %v3105_v2, %v3017_v46  ;;  %v1626_v8 = vshll.u32 %v1470_v49, 16  ;;  %v5274_v46 = vld [vmem:[%s4373_s8 + $0xb4] sm:$0xff]  }
 0x215   : > { %v1302_v48 = vrot.slane %v4267_v25, 1 }
 0x216   : > { %v3179_v39 = vmax.f32 %v3106_v40, 0.0 }
 0x217   : > { %v2929_v24 = vpop.f32.mrf.mxu2 }
 0x218   : > { %v2930_v21 = vadd.f32 %v2929_v24, %v2841_v6  ;;  %v3018_v4 = vpop.f32.mrf.mxu3  ;;  %v4268_v6 = vld [vmem:[%s4373_s8 + $0xb4] sm:$0xf0] }
 0x219   : > { %v2843_v45 = vpop.f32.mrf.mxu1 }
 0x21a   : > { %v3019_v57 = vadd.f32 %v3018_v4, %v2930_v21  ;;  %v2844_v36 = vadd.f32 %v2843_v45, %v4963_v14  ;;  %v1628_v14 = vrot.slane %v1626_v8, 1  ;;  %v1766_v21 = vrot.slane %v4134_v26, 1  ;;  %v3485_v45 = vld [vmem:[%s4373_s8 + $0xbc] sm:$0x1] }
 0x21b   : > { %v3110_v60 = vpop.f32.mrf.mxu0  ;;  %v1767_v4 = vrot.slane %v1470_v49, 1  ;;  %v1633_v49 = vshll.u32 %v5274_v46, 16 }
 0x21c   : > { %v3108_v20 = vadd.f32 %v3107_v31, %v3019_v57  ;;  %2882 = vmatmul.bf16.gmra.mxu1 %v1301_v32  ;;  %2971 = vmatmul.bf16.gmra.mxu2 %v5243_v9  ;;  %v1619_v9 = vshrl.u32 %v4064_v35, 16  ;;  %v1304_v57 = vsel %vm801_vm1, %v1302_v48, %v1303_v30 }
 0x21d   : > { %3060 = vmatmul.bf16.gmra.mxu3 %v1617_v22  ;;  %v1455_v22 = vunpack.c.l.b16 %v3485_v45  ;;  %v1635_v8 = vrot.slane %v1633_v49, 1  ;;  %v3486_v45 = vld [vmem:[%s4373_s8 + $0xc8] sm:$0x1] }
 0x21e   : > { %3149 = vmatmul.bf16.gmra.mxu0 %v1765_v11  ;;  %v3180_v2 = vmax.f32 %v3108_v20, 0.0  ;;  %v1624_v47 = vor.u32 %v1623_v33, %v1619_v9 }
 0x21f   : > { %v2932_v0 = vpop.f32.mrf.mxu2 }
 0x220   : > { %v3976_v23 = vpack.c.bf16 %v3180_v2, %v3179_v39  ;;  %v3021_v38 = vpop.f32.mrf.mxu3  ;;  %v2933_v52 = vadd.f32 %v2932_v0, %v2844_v36  ;;  %v1629_v3 = vsel %vm544_vm0, %v1624_v47, %v1628_v14  ;;  %v1768_v39 = vsel %vm801_vm1, %v1766_v21, %v1767_v4 }
 0x221   : > { %v2845_v31 = vpop.f32.mrf.mxu1  ;;  %v1471_v0 = vpack.c.b16 %v1455_v22, %v1455_v22  ;;  %v1306_v47 = vrot.slane %v4977_v44, 1  ;;  %v4272_v22 = vld [vmem:[%s4373_s8 + $0xb4] sm:$0xe] }
 0x222   : > { %4139 = vst [vmem:[%s5235_s10 + $0x10] sm:$0xff] %v3976_v23   ;;  %v3022_v24 = vadd.f32 %v3021_v38, %v2933_v52  ;;  %v2846_v63 = vadd.f32 %v2845_v31, %v4974_v61  ;;  %v4269_v61 = vld [vmem:[%s4373_s8 + $0xb4] sm:$0xe]  ;;  %v4109_v23 = vld [vmem:[%s4373_s8 + $0xa8] sm:$0xe] }
 0x223   : > { %v3112_v56 = vpop.f32.mrf.mxu0  ;;  %v1638_v52 = vshll.u32 %v1471_v0, 16  ;;  %v4270_v48 = vor.u32 %v4269_v61, %v4268_v6  ;;  %v1770_v4 = vrot.slane %v1471_v0, 1  ;;  %v1456_v6 = vunpack.c.l.b16 %v3486_v45 }
 0x224   : > { %v3111_v11 = vadd.f32 %v3110_v60, %v3022_v24  ;;  %v4108_v60 = vld [vmem:[%s4373_s8 + $0xa8] sm:$0xf0] }
 0x225   : > { %v4110_v33 = vor.u32 %v4109_v23, %v4108_v60  ;;  %v1640_v24 = vrot.slane %v1638_v52, 1  ;;  %v1769_v21 = vrot.slane %v4270_v48, 1  ;;  %v1472_v49 = vpack.c.b16 %v1456_v6, %v1456_v6  ;;  %v4136_v60 = vld [vmem:[%s4373_s8 + $0xc0] sm:$0xe] }
 0x226   : > { %v3181_v42 = vmax.f32 %v3111_v11, 0.0 }
 0x227   : > { %v2934_v32 = vpop.f32.mrf.mxu2  ;;  %v1305_v30 = vrot.slane %v4110_v33, 1  ;;  %v1650_v33 = vshll.u32 %v1472_v49, 16 }
 0x228   : > { %v2935_v62 = vadd.f32 %v2934_v32, %v2846_v63  ;;  %v3023_v18 = vpop.f32.mrf.mxu3 }
 0x229   : > { %v2848_v40 = vpop.f32.mrf.mxu1 }
 0x22a   : > { %v3024_v58 = vadd.f32 %v3023_v18, %v2935_v62  ;;  %v2849_v25 = vadd.f32 %v2848_v40, %v5001_v55 }
 0x22b   : > { %v3115_v20 = vpop.f32.mrf.mxu0 }
 0x22c   : > { %v3113_v2 = vadd.f32 %v3112_v56, %v3024_v58  ;;  %2887 = vmatmul.bf16.gmra.mxu1 %v1304_v57  ;;  %2976 = vmatmul.bf16.gmra.mxu2 %v4064_v35  ;;  %v1631_v35 = vshrl.u32 %v5274_v46, 16  ;;  %v1307_v57 = vsel %vm801_vm1, %v1305_v30, %v1306_v47  ;;  %v1309_v30 = vrot.slane %v5015_v54, 1 }
 0x22d   : > { %3065 = vmatmul.bf16.gmra.mxu3 %v1629_v3 }
 0x22e   : > { %3154 = vmatmul.bf16.gmra.mxu0 %v1768_v39  ;;  %v3182_v53 = vmax.f32 %v3113_v2, 0.0  ;;  %v1636_v14 = vor.u32 %v1635_v8, %v1631_v35  ;;  %v4065_v39 = vld [vmem:[%s4373_s8 + $0xc0] sm:$0xff]  }
 0x22f   : > { %v2937_v36 = vpop.f32.mrf.mxu2  ;;  %v1645_v2 = vshll.u32 %v4065_v39, 16 }
 0x230   : > { %v3981_v38 = vpack.c.bf16 %v3182_v53, %v3181_v42  ;;  %v3026_v31 = vpop.f32.mrf.mxu3  ;;  %v2938_v56 = vadd.f32 %v2937_v36, %v2849_v25  ;;  %v1641_v3 = vsel %vm544_vm0, %v1636_v14, %v1640_v24  ;;  %v4135_v53 = vld [vmem:[%s4373_s8 + $0xc0] sm:$0xf0]  ;;  %v4273_v25 = vor.u32 %v4272_v22, %v4999_v27 }
 0x231   : > { %v2850_v9 = vpop.f32.mrf.mxu1  ;;  %v4137_v52 = vor.u32 %v4136_v60, %v4135_v53 }
 0x232   : > { %4140 = vst [vmem:[%s5235_s10 + $0x18] sm:$0xff] %v3981_v38   ;;  %v3027_v63 = vadd.f32 %v3026_v31, %v2938_v56  ;;  %v2851_v55 = vadd.f32 %v2850_v9, %v5009_v43  ;;  %v1771_v43 = vsel %vm801_vm1, %v1769_v21, %v1770_v4  ;;  %v1647_v9 = vrot.slane %v1645_v2, 1  ;;  %v5305_v56 = vld [vmem:[%s4373_s8 + $0xcc] sm:$0xff]   ;;  %v4112_v2 = vld [vmem:[%s4373_s8 + $0xc0] sm:$0xe] }
 0x233   : > { %v3117_v26 = vpop.f32.mrf.mxu0  ;;  %v1308_v48 = vrot.slane %v4273_v25, 1  ;;  %v1772_v24 = vrot.slane %v4137_v52, 1 }
 0x234   : > { %v3116_v11 = vadd.f32 %v3115_v20, %v3027_v63  ;;  %v1773_v63 = vrot.slane %v1472_v49, 1 }
 0x236   : > { %v3183_v0 = vmax.f32 %v3116_v11, 0.0  ;;  %v1774_v6 = vsel %vm801_vm1, %v1772_v24, %v1773_v63 }
 0x237   : > { %v2939_v32 = vpop.f32.mrf.mxu2 }
 0x238   : > { %v2940_v62 = vadd.f32 %v2939_v32, %v2851_v55  ;;  %v3028_v18 = vpop.f32.mrf.mxu3  ;;  %v3487_v55 = vld [vmem:[%s4373_s8 + $0xd4] sm:$0x1] }
 0x239   : > { %v2853_v40 = vpop.f32.mrf.mxu1 }
 0x23a   : > { %v3029_v44 = vadd.f32 %v3028_v18, %v2940_v62  ;;  %v2854_v36 = vadd.f32 %v2853_v40, %v5020_v15  ;;  %v1652_v15 = vrot.slane %v1650_v33, 1  ;;  %v1310_v62 = vsel %vm801_vm1, %v1308_v48, %v1309_v30 }
 0x23b   : > { %v3120_v58 = vpop.f32.mrf.mxu0  ;;  %v1457_v18 = vunpack.c.l.b16 %v3487_v55 }
 0x23c   : > { %v3118_v61 = vadd.f32 %v3117_v26, %v3029_v44  ;;  %2892 = vmatmul.bf16.gmra.mxu1 %v1307_v57  ;;  %2981 = vmatmul.bf16.gmra.mxu2 %v5274_v46  ;;  %v1643_v46 = vshrl.u32 %v4065_v39, 16  ;;  %v4274_v26 = vld [vmem:[%s4373_s8 + $0xcc] sm:$0xf0]  ;;  %v1657_v44 = vshll.u32 %v5305_v56, 16 }
 0x23d   : > { %3070 = vmatmul.bf16.gmra.mxu3 %v1641_v3  ;;  %v1473_v3 = vpack.c.b16 %v1457_v18, %v1457_v18 }
 0x23e   : > { %3159 = vmatmul.bf16.gmra.mxu0 %v1771_v43  ;;  %v3184_v20 = vmax.f32 %v3118_v61, 0.0  ;;  %v1648_v47 = vor.u32 %v1647_v9, %v1643_v46  ;;  %v1312_v9 = vrot.slane %v5034_v37, 1 }
 0x23f   : > { %v2942_v42 = vpop.f32.mrf.mxu2  ;;  %v1776_v48 = vrot.slane %v1473_v3, 1 }
 0x240   : > { %v3986_v23 = vpack.c.bf16 %v3184_v20, %v3183_v0  ;;  %v3031_v38 = vpop.f32.mrf.mxu3  ;;  %v2943_v35 = vadd.f32 %v2942_v42, %v2854_v36  ;;  %v1653_v22 = vsel %vm544_vm0, %v1648_v47, %v1652_v15  ;;  %v1662_v36 = vshll.u32 %v1473_v3, 16 }
 0x241   : > { %v2855_v31 = vpop.f32.mrf.mxu1 }
 0x242   : > { %4141 = vst [vmem:[%s5235_s10 + $0x20] sm:$0xff] %v3986_v23   ;;  %v3032_v14 = vadd.f32 %v3031_v38, %v2943_v35  ;;  %v2856_v27 = vadd.f32 %v2855_v31, %v5030_v7  ;;  %v4275_v7 = vld [vmem:[%s4373_s8 + $0xcc] sm:$0xe]  ;;  %v1655_v23 = vshrl.u32 %v5305_v56, 16  ;;  %v1664_v35 = vrot.slane %v1662_v36, 1 }
 0x243   : > { %v3122_v8 = vpop.f32.mrf.mxu0  ;;  %v4276_v31 = vor.u32 %v4275_v7, %v4274_v26 }
 0x244   : > { %v3121_v40 = vadd.f32 %v3120_v58, %v3032_v14  ;;  %v4111_v58 = vld [vmem:[%s4373_s8 + $0xc0] sm:$0xf0] }
 0x245   : > { %v4113_v60 = vor.u32 %v4112_v2, %v4111_v58 }
 0x246   : > { %v3185_v43 = vmax.f32 %v3121_v40, 0.0 }
 0x247   : > { %v2944_v21 = vpop.f32.mrf.mxu2  ;;  %v1311_v46 = vrot.slane %v4113_v60, 1 }
 0x248   : > { %v2945_v4 = vadd.f32 %v2944_v21, %v2856_v27  ;;  %v3033_v45 = vpop.f32.mrf.mxu3 }
 0x249   : > { %v2858_v32 = vpop.f32.mrf.mxu1  ;;  %v1313_v27 = vsel %vm801_vm1, %v1311_v46, %v1312_v9 }
 0x24a   : > { %v3034_v54 = vadd.f32 %v3033_v45, %v2945_v4  ;;  %v2859_v20 = vadd.f32 %v2858_v32, %v5040_v12  ;;  %v1775_v12 = vrot.slane %v4276_v31, 1 }
 0x24b   : > { %v3125_v57 = vpop.f32.mrf.mxu0 }
 0x24c   : > { %v3123_v11 = vadd.f32 %v3122_v8, %v3034_v54  ;;  %2897 = vmatmul.bf16.gmra.mxu1 %v1310_v62  ;;  %2986 = vmatmul.bf16.gmra.mxu2 %v4065_v39  ;;  %v1659_v39 = vrot.slane %v1657_v44, 1  ;;  %v1777_v37 = vsel %vm801_vm1, %v1775_v12, %v1776_v48 }
 0x24d   : > { %3075 = vmatmul.bf16.gmra.mxu3 %v1653_v22 }
 0x24e   : > { %3164 = vmatmul.bf16.gmra.mxu0 %v1774_v6  ;;  %v3186_v61 = vmax.f32 %v3123_v11, 0.0  ;;  %v1660_v33 = vor.u32 %v1659_v39, %v1655_v23 }
 0x24f   : > { %v2947_v49 = vpop.f32.mrf.mxu2 }
 0x250   : > { %v3991_v0 = vpack.c.bf16 %v3186_v61, %v3185_v43  ;;  %v3036_v42 = vpop.f32.mrf.mxu3  ;;  %v2948_v38 = vadd.f32 %v2947_v49, %v2859_v20  ;;  %v1665_v55 = vsel %vm544_vm0, %v1660_v33, %v1664_v35 }
 0x251   : > { %v2860_v53 = vpop.f32.mrf.mxu1 }
 0x252   : > { %4142 = vst [vmem:[%s5235_s10 + $0x28] sm:$0xff] %v3991_v0   ;;  %v3037_v8 = vadd.f32 %v3036_v42, %v2948_v38  ;;  %v2861_v52 = vadd.f32 %v2860_v53, %v5049_v28 }
 0x253   : > { %v3127_v25 = vpop.f32.mrf.mxu0 }
 0x254   : > { %v3126_v24 = vadd.f32 %v3125_v57, %v3037_v8 }
 0x256   : > { %v3187_v28 = vmax.f32 %v3126_v24, 0.0 }
 0x257   : > { %v2949_v30 = vpop.f32.mrf.mxu2 }
 0x258   : > { %v2950_v47 = vadd.f32 %v2949_v30, %v2861_v52  ;;  %v3038_v15 = vpop.f32.mrf.mxu3 }
 0x259   : > { %v2863_v14 = vpop.f32.mrf.mxu1 }
 0x25a   : > { %v3039_v63 = vadd.f32 %v3038_v15, %v2950_v47  ;;  %v2864_v62 = vadd.f32 %v2863_v14, %v5059_v10 }
 0x25b   : > { %v3130_v26 = vpop.f32.mrf.mxu0 }
 0x25c   : > { %v3128_v21 = vadd.f32 %v3127_v25, %v3039_v63  ;;  %2902 = vmatmul.bf16.gmra.mxu1 %v1313_v27  ;;  %2991 = vmatmul.bf16.gmra.mxu2 %v5305_v56 }
 0x25d   : > { %3080 = vmatmul.bf16.gmra.mxu3 %v1665_v55 }
 0x25e   : > { %3169 = vmatmul.bf16.gmra.mxu0 %v1777_v37  ;;  %v3188_v4 = vmax.f32 %v3128_v21, 0.0 }
 0x25f   : > { %v2952_v45 = vpop.f32.mrf.mxu2 }
 0x260   : > { %v3996_v32 = vpack.c.bf16 %v3188_v4, %v3187_v28  ;;  %v3041_v18 = vpop.f32.mrf.mxu3  ;;  %v2953_v54 = vadd.f32 %v2952_v45, %v2864_v62 }
 0x261   : > { %v2865_v40 = vpop.f32.mrf.mxu1 }
 0x262   : > { %4143 = vst [vmem:[%s5235_s10 + $0x30] sm:$0xff] %v3996_v32   ;;  %v3042_v22 = vadd.f32 %v3041_v18, %v2953_v54  ;;  %v2866_v6 = vadd.f32 %v2865_v40, %v5068_v16 }
 0x263   : > { %v3132_v57 = vpop.f32.mrf.mxu0 }
 0x264   : > { %v3131_v3 = vadd.f32 %v3130_v26, %v3042_v22 }
 0x266   : > { %v3189_v2 = vmax.f32 %v3131_v3, 0.0 }
 0x267   : > { %v2954_v7 = vpop.f32.mrf.mxu2 }
 0x268   : > { %v2955_v11 = vadd.f32 %v2954_v7, %v2866_v6  ;;  %v3043_v56 = vpop.f32.mrf.mxu3 }
 0x269   : > { %v2868_v44 = vpop.f32.mrf.mxu1 }
 0x26a   : > { %v3044_v43 = vadd.f32 %v3043_v56, %v2955_v11  ;;  %v2869_v20 = vadd.f32 %v2868_v44, %v5075_v34 }
 0x26b   : > { %v3135_v61 = vpop.f32.mrf.mxu0 }
 0x26c   : > { %v3133_v58 = vadd.f32 %v3132_v57, %v3044_v43 }
 0x26e   : > { %v3190_v49 = vmax.f32 %v3133_v58, 0.0 }
 0x26f   : > { %v2957_v10 = vpop.f32.mrf.mxu2 }
 0x270   : > { %v4001_v0 = vpack.c.bf16 %v3190_v49, %v3189_v2  ;;  %v3046_v42 = vpop.f32.mrf.mxu3  ;;  %v2958_v60 = vadd.f32 %v2957_v10, %v2869_v20 }
 0x271   : > { %v2870_v53 = vpop.f32.mrf.mxu1 }
 0x272   : > { %4144 = vst [vmem:[%s5235_s10 + $0x38] sm:$0xff] %v4001_v0   ;;  %v3047_v23 = vadd.f32 %v3046_v42, %v2958_v60  ;;  %v2871_v39 = vadd.f32 %v2870_v53, %v5086_v17 }
 0x273   : > { %v3137_v16 = vpop.f32.mrf.mxu0 }
 0x274   : > { %v3136_v46 = vadd.f32 %v3135_v61, %v3047_v23 }
 0x276   : > { %v3191_v8 = vmax.f32 %v3136_v46, 0.0 }
 0x277   : > { %v2959_v36 = vpop.f32.mrf.mxu2 }
 0x278   : > { %v2960_v38 = vadd.f32 %v2959_v36, %v2871_v39  ;;  %v3048_v25 = vpop.f32.mrf.mxu3 }
 0x279   : > { %v2873_v31 = vpop.f32.mrf.mxu1 }
 0x27a   : > { %v3049_v9 = vadd.f32 %v3048_v25, %v2960_v38  ;;  %v2874_v48 = vadd.f32 %v2873_v31, %v5096_v59 }
 0x27b   : > { %v3140_v33 = vpop.f32.mrf.mxu0 }
 0x27c   : > { %v3138_v35 = vadd.f32 %v3137_v16, %v3049_v9 }
 0x27e   : > { %v3192_v52 = vmax.f32 %v3138_v35, 0.0 }
 0x27f   : > { %v2962_v34 = vpop.f32.mrf.mxu2 }
 0x280   : > { %v4006_v12 = vpack.c.bf16 %v3192_v52, %v3191_v8  ;;  %v3051_v30 = vpop.f32.mrf.mxu3  ;;  %v2963_v15 = vadd.f32 %v2962_v34, %v2874_v48 }
 0x281   : > { %v2875_v47 = vpop.f32.mrf.mxu1 }
 0x282   : > { %4145 = vst [vmem:[%s5235_s10 + $0x40] sm:$0xff] %v4006_v12   ;;  %v3052_v14 = vadd.f32 %v3051_v30, %v2963_v15  ;;  %v2876_v27 = vadd.f32 %v2875_v47, %v5105_v19 }
 0x283   : > { %v3142_v17 = vpop.f32.mrf.mxu0 }
 0x284   : > { %v3141_v37 = vadd.f32 %v3140_v33, %v3052_v14 }
 0x286   : > { %v3193_v45 = vmax.f32 %v3141_v37, 0.0 }
 0x287   : > { %v2964_v24 = vpop.f32.mrf.mxu2 }
 0x288   : > { %v2965_v63 = vadd.f32 %v2964_v24, %v2876_v27  ;;  %v3053_v26 = vpop.f32.mrf.mxu3 }
 0x289   : > { %v2878_v55 = vpop.f32.mrf.mxu1 }
 0x28a   : > { %v3054_v21 = vadd.f32 %v3053_v26, %v2965_v63  ;;  %v2879_v18 = vadd.f32 %v2878_v55, %v5112_v13 }
 0x28b   : > { %v3145_v28 = vpop.f32.mrf.mxu0 }
 0x28c   : > { %v3143_v4 = vadd.f32 %v3142_v17, %v3054_v21 }
 0x28e   : > { %v3194_v32 = vmax.f32 %v3143_v4, 0.0  ;;  %v5420_v4 = vld [vmem:[#allocation2_spill] sm:$0xff] }
 0x28f   : > { %v2967_v59 = vpop.f32.mrf.mxu2 }
 0x290   : > { %v4011_v62 = vpack.c.bf16 %v3194_v32, %v3193_v45  ;;  %v3056_v40 = vpop.f32.mrf.mxu3  ;;  %v2968_v57 = vadd.f32 %v2967_v59, %v2879_v18 }
 0x291   : > { %v2880_v54 = vpop.f32.mrf.mxu1 }
 0x292   : > { %4146 = vst [vmem:[%s5235_s10 + $0x48] sm:$0xff] %v4011_v62   ;;  %v3057_v22 = vadd.f32 %v3056_v40, %v2968_v57  ;;  %v2881_v6 = vadd.f32 %v2880_v54, %v5123_v51  ;;  %v5421_v40 = vld [vmem:[#allocation17_spill] sm:$0xff] }
 0x293   : > { %v3147_v19 = vpop.f32.mrf.mxu0 }
 0x294   : > { %v3146_v3 = vadd.f32 %v3145_v28, %v3057_v22 }
 0x296   : > { %v3195_v2 = vmax.f32 %v3146_v3, 0.0 }
 0x297   : > { %v2969_v7 = vpop.f32.mrf.mxu2 }
 0x298   : > { %v2970_v11 = vadd.f32 %v2969_v7, %v2881_v6  ;;  %v3058_v56 = vpop.f32.mrf.mxu3 }
 0x299   : > { %v2883_v44 = vpop.f32.mrf.mxu1 }
 0x29a   : > { %v3059_v43 = vadd.f32 %v3058_v56, %v2970_v11  ;;  %v2884_v0 = vadd.f32 %v2883_v44, %v5133_v50 }
 0x29b   : > { %v3150_v61 = vpop.f32.mrf.mxu0 }
 0x29c   : > { %v3148_v58 = vadd.f32 %v3147_v19, %v3059_v43 }
 0x29e   : > { %v3196_v49 = vmax.f32 %v3148_v58, 0.0 }
 0x29f   : > { %v2972_v13 = vpop.f32.mrf.mxu2 }
 0x2a0   : > { %v4016_v10 = vpack.c.bf16 %v3196_v49, %v3195_v2  ;;  %v3061_v20 = vpop.f32.mrf.mxu3  ;;  %v2973_v53 = vadd.f32 %v2972_v13, %v2884_v0 }
 0x2a1   : > { %v2885_v42 = vpop.f32.mrf.mxu1 }
 0x2a2   : > { %4147 = vst [vmem:[%s5235_s10 + $0x50] sm:$0xff] %v4016_v10   ;;  %v3062_v60 = vadd.f32 %v3061_v20, %v2973_v53  ;;  %v2886_v16 = vadd.f32 %v2885_v42, %v5142_v1  ;;  %v5422_v20 = vld [vmem:[#allocation3_spill] sm:$0xff] }
 0x2a3   : > { %v3152_v51 = vpop.f32.mrf.mxu0 }
 0x2a4   : > { %v3151_v25 = vadd.f32 %v3150_v61, %v3062_v60 }
 0x2a6   : > { %v3197_v33 = vmax.f32 %v3151_v25, 0.0 }
 0x2a7   : > { %v2974_v23 = vpop.f32.mrf.mxu2 }
 0x2a8   : > { %v2975_v39 = vadd.f32 %v2974_v23, %v2886_v16  ;;  %v3063_v36 = vpop.f32.mrf.mxu3 }
 0x2a9   : > { %v2888_v38 = vpop.f32.mrf.mxu1 }
 0x2aa   : > { %v3064_v31 = vadd.f32 %v3063_v36, %v2975_v39  ;;  %v2889_v52 = vadd.f32 %v2888_v38, %v5149_v5 }
 0x2ab   : > { %v3155_v46 = vpop.f32.mrf.mxu0 }
 0x2ac   : > { %v3153_v9 = vadd.f32 %v3152_v51, %v3064_v31 }
 0x2ae   : > { %v3198_v35 = vmax.f32 %v3153_v9, 0.0  ;;  %v5423_v9 = vld [vmem:[#allocation19_spill] sm:$0xff] }
 0x2af   : > { %v2977_v50 = vpop.f32.mrf.mxu2 }
 0x2b0   : > { %v4021_v8 = vpack.c.bf16 %v3198_v35, %v3197_v33  ;;  %v3066_v34 = vpop.f32.mrf.mxu3  ;;  %v2978_v48 = vadd.f32 %v2977_v50, %v2889_v52 }
 0x2b1   : > { %v2890_v12 = vpop.f32.mrf.mxu1 }
 0x2b2   : > { %4148 = vst [vmem:[%s5235_s10 + $0x58] sm:$0xff] %v4021_v8   ;;  %v3067_v30 = vadd.f32 %v3066_v34, %v2978_v48  ;;  %v2891_v47 = vadd.f32 %v2890_v12, %v5160_v41  ;;  %v5424_v12 = vld [vmem:[#allocation4_spill] sm:$0xff] }
 0x2b3   : > { %v3157_v1 = vpop.f32.mrf.mxu0 }
 0x2b4   : > { %v3156_v24 = vadd.f32 %v3155_v46, %v3067_v30 }
 0x2b6   : > { %v3199_v37 = vmax.f32 %v3156_v24, 0.0 }
 0x2b7   : > { %v2979_v15 = vpop.f32.mrf.mxu2 }
 0x2b8   : > { %v2980_v17 = vadd.f32 %v2979_v15, %v2891_v47  ;;  %v3068_v14 = vpop.f32.mrf.mxu3 }
 0x2b9   : > { %v2893_v27 = vpop.f32.mrf.mxu1 }
 0x2ba   : > { %v3069_v63 = vadd.f32 %v3068_v14, %v2980_v17  ;;  %v2894_v45 = vadd.f32 %v2893_v27, %v5420_v4 }
 0x2bb   : > { %v3160_v26 = vpop.f32.mrf.mxu0 }
 0x2bc   : > { %v3158_v55 = vadd.f32 %v3157_v1, %v3069_v63 }
 0x2be   : > { %v3200_v21 = vmax.f32 %v3158_v55, 0.0 }
 0x2bf   : > { %v2982_v5 = vpop.f32.mrf.mxu2 }
 0x2c0   : > { %v4026_v28 = vpack.c.bf16 %v3200_v21, %v3199_v37  ;;  %v3071_v32 = vpop.f32.mrf.mxu3  ;;  %v2983_v62 = vadd.f32 %v2982_v5, %v2894_v45 }
 0x2c1   : > { %v2895_v59 = vpop.f32.mrf.mxu1 }
 0x2c2   : > { %4149 = vst [vmem:[%s5235_s10 + $0x60] sm:$0xff] %v4026_v28   ;;  %v3072_v18 = vadd.f32 %v3071_v32, %v2983_v62  ;;  %v2896_v54 = vadd.f32 %v2895_v59, %v5421_v40 }
 0x2c3   : > { %v3162_v41 = vpop.f32.mrf.mxu0 }
 0x2c4   : > { %v3161_v7 = vadd.f32 %v3160_v26, %v3072_v18 }
 0x2c6   : > { %v3201_v3 = vmax.f32 %v3161_v7, 0.0 }
 0x2c7   : > { %v2984_v57 = vpop.f32.mrf.mxu2 }
 0x2c8   : > { %v2985_v19 = vadd.f32 %v2984_v57, %v2896_v54  ;;  %v3073_v22 = vpop.f32.mrf.mxu3 }
 0x2c9   : > { %v2898_v6 = vpop.f32.mrf.mxu1 }
 0x2ca   : > { %v3074_v11 = vadd.f32 %v3073_v22, %v2985_v19  ;;  %v2899_v2 = vadd.f32 %v2898_v6, %v5186_v29 }
 0x2cb   : > { %v3165_v44 = vpop.f32.mrf.mxu0 }
 0x2cc   : > { %v3163_v56 = vadd.f32 %v3162_v41, %v3074_v11 }
 0x2ce   : > { %v3202_v43 = vmax.f32 %v3163_v56, 0.0 }
 0x2cf   : > { %v2987_v61 = vpop.f32.mrf.mxu2 }
 0x2d0   : > { %v4031_v58 = vpack.c.bf16 %v3202_v43, %v3201_v3  ;;  %v3076_v49 = vpop.f32.mrf.mxu3  ;;  %v2988_v10 = vadd.f32 %v2987_v61, %v2899_v2 }
 0x2d1   : > { %v2900_v13 = vpop.f32.mrf.mxu1 }
 0x2d2   : > { %4150 = vst [vmem:[%s5235_s10 + $0x68] sm:$0xff] %v4031_v58   ;;  %v3077_v0 = vadd.f32 %v3076_v49, %v2988_v10  ;;  %v2901_v42 = vadd.f32 %v2900_v13, %v5422_v20 }
 0x2d3   : > { %v3167_v53 = vpop.f32.mrf.mxu0 }
 0x2d4   : > { %v3166_v39 = vadd.f32 %v3165_v44, %v3077_v0 }
 0x2d6   : > { %v3203_v25 = vmax.f32 %v3166_v39, 0.0 }
 0x2d7   : > { %v2989_v51 = vpop.f32.mrf.mxu2 }
 0x2d8   : > { %v2990_v60 = vadd.f32 %v2989_v51, %v2901_v42  ;;  %v3078_v16 = vpop.f32.mrf.mxu3 }
 0x2d9   : > { %v2903_v23 = vpop.f32.mrf.mxu1 }
 0x2da   : > { %v3079_v36 = vadd.f32 %v3078_v16, %v2990_v60  ;;  %v2904_v33 = vadd.f32 %v2903_v23, %v5423_v9 }
 0x2db   : > { %v3170_v50 = vpop.f32.mrf.mxu0 }
 0x2dc   : > { %v3168_v38 = vadd.f32 %v3167_v53, %v3079_v36 }
 0x2de   : > { %v3204_v31 = vmax.f32 %v3168_v38, 0.0 }
 0x2df   : > { %v2992_v46 = vpop.f32.mrf.mxu2 }
 0x2e0   : > { %v4036_v29 = vpack.c.bf16 %v3204_v31, %v3203_v25  ;;  %v3081_v35 = vpop.f32.mrf.mxu3  ;;  %v2993_v8 = vadd.f32 %v2992_v46, %v2904_v33 }
 0x2e1   : > { %v2905_v52 = vpop.f32.mrf.mxu1 }
 0x2e2   : > { %4151 = vst [vmem:[%s5235_s10 + $0x70] sm:$0xff] %v4036_v29   ;;  %v3082_v34 = vadd.f32 %v3081_v35, %v2993_v8  ;;  %v2906_v48 = vadd.f32 %v2905_v52, %v5424_v12 }
 0x2e3   : > { %v3172_v14 = vpop.f32.mrf.mxu0 }
 0x2e4   : > { %v3171_v15 = vadd.f32 %v3170_v50, %v3082_v34 }
 0x2e6   : > { %v3205_v24 = vmax.f32 %v3171_v15, 0.0 }
 0x2e7   : > { %v2994_v1 = vpop.f32.mrf.mxu2 }
 0x2e8   : > { %v2995_v30 = vadd.f32 %v2994_v1, %v2906_v48  ;;  %v3083_v47 = vpop.f32.mrf.mxu3 }
 0x2ea   : > { %v3084_v17 = vadd.f32 %v3083_v47, %v2995_v30 }
 0x2ec   : > { %v3173_v27 = vadd.f32 %v3172_v14, %v3084_v17 }
 0x2ee   : > { %v3206_v63 = vmax.f32 %v3173_v27, 0.0 }
 0x2f0   : > { %v4041_v26 = vpack.c.bf16 %v3206_v63, %v3205_v24 }
 0x2f2   : > { %4152 = vst [vmem:[%s5235_s10 + $0x78] sm:$0xff] %v4041_v26  }
 0x2f3 PF: > { %s13_s14 = sadd.s32 1, %s4299_s14   ;;  %s5425_s12 = smov %s4295_s13 }
 0x2f4   : > { %p10_p5 = scmp.ge.s32.totalorder %s13_s14, 4   ;;  %s5426_s13 = smov %s5428_s15 }
 0x2f6   :  { %12 = sbr.rel (!%p10_p5) target bundleno = 2 (0x2), region = 65 }

// kernel: residual_unit_forward.3
= control target key start
LH: loop header
LB: loop body
LE: loop exit
PB: predicated region body
PF: predicated region fallthrough
CT: control target
= control target key end

     0   :  { %s4695_s18 = smov 0   ;;  %s4697_s19 = smov 0   ;;  %s5712_s0 = inlined_call_operand.vmem [shape: bf16[2,1,18,18,128], index: 0, kind: input, shape index: {}]   ;;  %s5713_s1 = inlined_call_operand.vmem [shape: bf16[1152,128], index: 1, kind: input, shape index: {}]   ;;  %s5714_s2 = inlined_call_operand.vmem [shape: f32[1,128], index: 2, kind: input, shape index: {}]   ;;  %s5715_s3 = inlined_call_operand.vmem [shape: bf16[2,16,16,4], index: 3, kind: input, shape index: {}]   ;;  %s5716_s4 = inlined_call_operand.vmem [shape: bf16[4,128], index: 4, kind: input, shape index: {}]   ;;  %s5717_s5 = inlined_call_operand.vmem [shape: f32[2,16,16,128], index: 5, kind: output, shape index: {}]  }
   0x1   :  { %s4699_s20 = smov 0  }
   0x2 LB: > { %s27_s21 = sadd.s32 1, %s4659_s19  ;;  %p3742_p0 = scmp.ge.s32.totalorder %s4663_s20, 1  ;;  %s4663_s20 = sphi %s4699_s20, %s15_s20   ;;  %s4659_s19 = sphi %s4697_s19, %s5727_s19   ;;  %s4655_s18 = sphi %s4695_s18, %s5726_s18  }
   0x3   : > { %p29_p1 = scmp.ge.s32.totalorder %s27_s21, 2  ;;  %p219_p2 = scmp.lt.s32.totalorder %s4663_s20, 3 }
   0x5   : > { %s5729_s21 = smov (%p29_p1, %s27_s21), 0  ;;  %p220_p3 = pnand %p3742_p0, %p219_p2 }
   0x7   : > { %223 = sbr.rel (%p220_p3) target bundleno = 819 (0x333), region = 40 }
   0xc   : > { %v4255_v0 = vld [vmem:[%s5713_s1 + $0x38] sm:$0xff]  ;;  %p262_p4 = scmp.lt.s32.totalorder %s4655_s18, 1  ;;  %v4254_v2 = vld [vmem:[%s5713_s1 + $0x30] sm:$0xff]  ;;  %v4253_v4 = vld [vmem:[%s5713_s1 + $0x28] sm:$0xff]  ;;  %vm638_vm0 = vsmask.f32 7424 }
   0xd   : > { %v4263_v1 = vld [vmem:[%s5713_s1 + $0x78] sm:$0xff]  ;;  %4527 = vmatpush.bf16.msra.mxu2 %v4255_v0  ;;  %v4262_v3 = vld [vmem:[%s5713_s1 + $0x70] sm:$0xff]  ;;  %2468 = vmatpush.bf16.msra.mxu0 %v4255_v0  ;;  %v4261_v5 = vld [vmem:[%s5713_s1 + $0x68] sm:$0xff]  ;;  %vm3431_vm1 = vcmask 1041408   ;;  %vm895_vm2 = vcmask 1046528   ;;  %vm3382_vm3 = vcmask 31744  }
   0xe   : > { %4535 = vmatpush.bf16.msra.mxu3 %v4263_v1  ;;  %s5731_s18 = smov (!%p262_p4, %s4655_s18), 1  ;;  %2557 = vmatpush.bf16.msra.mxu1 %v4263_v1  ;;  %v4252_v6 = vld [vmem:[%s5713_s1 + $0x20] sm:$0xff]  ;;  %v4251_v10 = vld [vmem:[%s5713_s1 + $0x18] sm:$0xff]  ;;  %v4250_v16 = vld [vmem:[%s5713_s1 + $0x10] sm:$0xff] }
   0xf   : > { %s4543_s30 = smul.u32 216, %s5731_s18  ;;  %v4260_v7 = vld [vmem:[%s5713_s1 + $0x60] sm:$0xff]  ;;  %v4259_v11 = vld [vmem:[%s5713_s1 + $0x58] sm:$0xff]  ;;  %v4258_v17 = vld [vmem:[%s5713_s1 + $0x50] sm:$0xff]  ;;  %s4246_s8 = sshll.u32 %s5731_s18, 7 }
  0x10   : > { %v4249_v22 = vld [vmem:[%s5713_s1 + $0x8] sm:$0xff]  ;;  %v4248_v34 = vld [vmem:[%s5713_s1] sm:$0xff]  ;;  %v4271_v38 = vld [vmem:[%s5713_s1 + $0xb8] sm:$0xff]  ;;  %s5449_s11 = scalar_lea.vmem %s5715_s3, %s4246_s8  ;;  %s4247_s13 = sshll.u32 %s5731_s18, 8 }
  0x11   : > { %4528 = vmatpush.bf16.msra.mxu2 %v4254_v2  ;;  %2469 = vmatpush.bf16.msra.mxu0 %v4254_v2  ;;  %s4737_s12 = scalar_lea.vmem %s5712_s0, %s4543_s30  ;;  %v4257_v23 = vld [vmem:[%s5713_s1 + $0x48] sm:$0xff]  ;;  %v4256_v35 = vld [vmem:[%s5713_s1 + $0x40] sm:$0xff]  ;;  %v4279_v40 = vld [vmem:[%s5713_s1 + $0xf8] sm:$0xff]  ;;  %s5577_s16 = scalar_lea.vmem %s5717_s5, %s4247_s13 }
  0x12   : > { %4536 = vmatpush.bf16.msra.mxu3 %v4262_v3  ;;  %2558 = vmatpush.bf16.msra.mxu1 %v4262_v3  ;;  %v334_v8 = vld [vmem:[%s4737_s12 + $0x68] sm:$0x1]  ;;  %v4435_v13 = vld [vmem:[%s4737_s12 + $0x60] sm:$0xff]   ;;  %v4773_v27 = vld [vmem:[%s4737_s12 + $0x6c] sm:$0xff]  }
  0x13   : > { %v326_v9 = vld [vmem:[%s4737_s12 + $0x8] sm:$0x1]  ;;  %v614_v12 = vunpack.c.l.b16 %v334_v8  ;;  %v4337_v15 = vld [vmem:[%s4737_s12] sm:$0xff]   ;;  %v738_v18 = vshll.u32 %v4435_v13, 16  ;;  %v736_v24 = vshrl.u32 %v4435_v13, 16  ;;  %v4780_v32 = vld [vmem:[%s4737_s12 + $0xc] sm:$0xff]  }
  0x14   : > { %v606_v14 = vunpack.c.l.b16 %v326_v9  ;;  %v642_v20 = vshll.u32 %v4337_v15, 16  ;;  %v4776_v28 = vld [vmem:[%s4737_s12 + $0x6c] sm:$0xf0]  ;;  %v640_v29 = vshrl.u32 %v4337_v15, 16  ;;  %v335_v39 = vld [vmem:[%s4737_s12 + $0x74] sm:$0x1] }
  0x15   : > { %4529 = vmatpush.bf16.msra.mxu2 %v4253_v4  ;;  %2470 = vmatpush.bf16.msra.mxu0 %v4253_v4  ;;  %v4761_v19 = vpack.c.b16 %v614_v12, %v614_v12  ;;  %v740_v25 = vrot.slane %v738_v18, 1  ;;  %v4783_v33 = vld [vmem:[%s4737_s12 + $0xc] sm:$0xf0]  ;;  %v327_v43 = vld [vmem:[%s4737_s12 + $0x14] sm:$0x1]  ;;  %v4295_v45 = vld [vmem:[%s5713_s1 + $0x178] sm:$0xff]  ;;  %v615_v46 = vunpack.c.l.b16 %v335_v39 }
  0x16   : > { %4537 = vmatpush.bf16.msra.mxu3 %v4261_v5  ;;  %2559 = vmatpush.bf16.msra.mxu1 %v4261_v5  ;;  %v4763_v21 = vpack.c.b16 %v606_v14, %v606_v14  ;;  %v644_v30 = vrot.slane %v642_v20, 1  ;;  %v4287_v47 = vld [vmem:[%s5713_s1 + $0x138] sm:$0xff]  ;;  %v4270_v49 = vld [vmem:[%s5713_s1 + $0xb0] sm:$0xff]  ;;  %v607_v51 = vunpack.c.l.b16 %v327_v43  ;;  %v750_v53 = vshll.u32 %v4773_v27, 16  ;;  %v4269_v58 = vld [vmem:[%s5713_s1 + $0xa8] sm:$0xff] }
  0x17   : > { %v743_v26 = vshll.u32 %v4761_v19, 16  ;;  %v741_v36 = vor.u32 %v740_v25, %v736_v24  ;;  %v4278_v50 = vld [vmem:[%s5713_s1 + $0xf0] sm:$0xff]  ;;  %v4813_v52 = vpack.c.b16 %v615_v46, %v615_v46  ;;  %v654_v57 = vshll.u32 %v4780_v32, 16  ;;  %v4277_v59 = vld [vmem:[%s5713_s1 + $0xe8] sm:$0xff]  ;;  %v328_v9 = vld [vmem:[%s4737_s12 + $0x20] sm:$0x1] }
  0x18   : > { %v647_v31 = vshll.u32 %v4763_v21, 16  ;;  %v645_v41 = vor.u32 %v644_v30, %v640_v29  ;;  %v4294_v54 = vld [vmem:[%s5713_s1 + $0x170] sm:$0xff]  ;;  %v4822_v56 = vpack.c.b16 %v607_v51, %v607_v51  ;;  %v748_v60 = vshrl.u32 %v4773_v27, 16  ;;  %v4293_v63 = vld [vmem:[%s5713_s1 + $0x168] sm:$0xff]  ;;  %v4436_v12 = vld [vmem:[%s4737_s12 + $0x78] sm:$0xff]  }
  0x19   : > { %4530 = vmatpush.bf16.msra.mxu2 %v4252_v6  ;;  %2471 = vmatpush.bf16.msra.mxu0 %v4252_v6  ;;  %v745_v37 = vrot.slane %v743_v26, 1  ;;  %v4286_v55 = vld [vmem:[%s5713_s1 + $0x130] sm:$0xff]  ;;  %v752_v61 = vrot.slane %v750_v53, 1  ;;  %v755_v62 = vshll.u32 %v4813_v52, 16  ;;  %v4285_v0 = vld [vmem:[%s5713_s1 + $0x128] sm:$0xff]  ;;  %v652_v1 = vshrl.u32 %v4780_v32, 16 }
  0x1a   : > { %4538 = vmatpush.bf16.msra.mxu3 %v4260_v7  ;;  %2560 = vmatpush.bf16.msra.mxu1 %v4260_v7  ;;  %v649_v42 = vrot.slane %v647_v31, 1  ;;  %v656_v2 = vrot.slane %v654_v57, 1  ;;  %v659_v3 = vshll.u32 %v4822_v56, 16  ;;  %v336_v6 = vld [vmem:[%s4737_s12 + $0x80] sm:$0x1]  ;;  %v608_v14 = vunpack.c.l.b16 %v328_v9  ;;  %v316_v30 = vld [vmem:[%s4737_s12 + $0x84] sm:$0xff]  }
  0x1b   : > { %v746_v44 = vsel %vm638_vm0, %v741_v36, %v745_v37  ;;  %v753_v4 = vor.u32 %v752_v61, %v748_v60  ;;  %v757_v5 = vrot.slane %v755_v62, 1  ;;  %v4276_v20 = vld [vmem:[%s5713_s1 + $0xe0] sm:$0xff]  ;;  %v760_v26 = vshrl.u32 %v4436_v12, 16  ;;  %v4871_v31 = vld [vmem:[%s4737_s12 + $0x84] sm:$0xf0]  ;;  %v4275_v51 = vld [vmem:[%s5713_s1 + $0xd8] sm:$0xff] }
  0x1c   : > { %v650_v48 = vsel %vm638_vm0, %v645_v41, %v649_v42  ;;  %v657_v7 = vor.u32 %v656_v2, %v652_v1  ;;  %v661_v8 = vrot.slane %v659_v3, 1  ;;  %v4866_v25 = vpack.c.b16 %v608_v14, %v608_v14  ;;  %v300_v36 = vld [vmem:[%s4737_s12 + $0x24] sm:$0xff]   ;;  %v329_v43 = vld [vmem:[%s4737_s12 + $0x2c] sm:$0x1]  ;;  %v4283_v53 = vld [vmem:[%s5713_s1 + $0x118] sm:$0xff] }
  0x1d   : > { %4531 = vmatpush.bf16.msra.mxu2 %v4251_v10  ;;  %2472 = vmatpush.bf16.msra.mxu0 %v4251_v10  ;;  %v758_v10 = vsel %vm638_vm0, %v753_v4, %v757_v5  ;;  %v4877_v37 = vld [vmem:[%s4737_s12 + $0x24] sm:$0xf0]  ;;  %v678_v57 = vshll.u32 %v300_v36, 16  ;;  %v676_v61 = vshrl.u32 %v300_v36, 16  ;;  %v338_v2 = vld [vmem:[%s4737_s12 + $0x98] sm:$0x1] }
  0x1e   : > { %4539 = vmatpush.bf16.msra.mxu3 %v4259_v11  ;;  %2561 = vmatpush.bf16.msra.mxu1 %v4259_v11  ;;  %v616_v11 = vunpack.c.l.b16 %v336_v6  ;;  %v330_v5 = vld [vmem:[%s4737_s12 + $0x38] sm:$0x1] }
  0x1f   : > { %v680_v62 = vrot.slane %v678_v57, 1  ;;  %v4273_v57 = vld [vmem:[%s5713_s1 + $0xc8] sm:$0xff] }
  0x20   : > { %v4854_v18 = vpack.c.b16 %v616_v11, %v616_v11  ;;  %v4911_v11 = vld [vmem:[%s4737_s12 + $0x30] sm:$0xff]  }
  0x21   : > { %4532 = vmatpush.bf16.msra.mxu2 %v4250_v16  ;;  %2473 = vmatpush.bf16.msra.mxu0 %v4250_v16  ;;  %v4268_v16 = vld [vmem:[%s5713_s1 + $0xa0] sm:$0xff]  ;;  %v681_v3 = vor.u32 %v680_v62, %v676_v61 }
  0x22   : > { %4540 = vmatpush.bf16.msra.mxu3 %v4258_v17  ;;  %2562 = vmatpush.bf16.msra.mxu1 %v4258_v17  ;;  %v762_v17 = vshll.u32 %v4436_v12, 16  ;;  %v767_v29 = vshll.u32 %v4854_v18, 16 }
  0x24   : > { %v769_v39 = vrot.slane %v767_v29, 1  ;;  %v320_v29 = vld [vmem:[%s4737_s12 + $0x9c] sm:$0xff]  }
  0x25   : > { %4533 = vmatpush.bf16.msra.mxu2 %v4249_v22  ;;  %2474 = vmatpush.bf16.msra.mxu0 %v4249_v22  ;;  %v4284_v22 = vld [vmem:[%s5713_s1 + $0x120] sm:$0xff]  ;;  %v796_v62 = vshrl.u32 %v320_v29, 16 }
  0x26   : > { %4541 = vmatpush.bf16.msra.mxu3 %v4257_v23  ;;  %2563 = vmatpush.bf16.msra.mxu1 %v4257_v23  ;;  %v4292_v23 = vld [vmem:[%s5713_s1 + $0x160] sm:$0xff] }
  0x29   : > { %4534 = vmatpush.bf16.msra.mxu2 %v4248_v34  ;;  %2475 = vmatpush.bf16.msra.mxu0 %v4248_v34 }
  0x2a   : > { %4542 = vmatpush.bf16.msra.mxu3 %v4256_v35  ;;  %2564 = vmatpush.bf16.msra.mxu1 %v4256_v35  ;;  %v671_v35 = vshll.u32 %v4866_v25, 16 }
  0x2c   : > { %2516 = vmatmul.bf16.vlgmr.msra.gmra.mxu2 %v4435_v13  ;;  %2476 = vmatmul.bf16.vlgmr.msra.gmra.mxu0 %v4337_v15  ;;  %v662_v13 = vsel %vm638_vm0, %v657_v7, %v661_v8  ;;  %v4848_v15 = vld [vmem:[%s4737_s12 + $0x18] sm:$0xff]   ;;  %v673_v42 = vrot.slane %v671_v35, 1  ;;  %v618_v7 = vunpack.c.l.b16 %v338_v2  ;;  %v4437_v8 = vld [vmem:[%s4737_s12 + $0x90] sm:$0xff]  }
  0x2d   : > { %2646 = vmatpush.bf16.msrb.mxu2 %v4271_v38  ;;  %2605 = vmatmul.bf16.vlgmr.msra.gmra.mxu3 %v746_v44  ;;  %v666_v24 = vshll.u32 %v4848_v15, 16 }
  0x2e   : > { %2735 = vmatpush.bf16.msrb.mxu3 %v4279_v40  ;;  %2913 = vmatpush.bf16.msrb.mxu1 %v4295_v45  ;;  %v337_v40 = vld [vmem:[%s4737_s12 + $0x8c] sm:$0x1]  ;;  %v4916_v14 = vpack.c.b16 %v618_v7, %v618_v7 }
  0x2f   : > { %2565 = vmatmul.bf16.vlgmr.msra.gmra.mxu1 %v650_v48  ;;  %2824 = vmatpush.bf16.msrb.mxu0 %v4287_v47  ;;  %v668_v34 = vrot.slane %v666_v24, 1  ;;  %v617_v45 = vunpack.c.l.b16 %v337_v40  ;;  %v609_v47 = vunpack.c.l.b16 %v329_v43  ;;  %v4267_v48 = vld [vmem:[%s5713_s1 + $0x98] sm:$0xff]  ;;  %v784_v24 = vshrl.u32 %v4437_v8, 16 }
  0x31   : > { %2647 = vmatpush.bf16.msrb.mxu2 %v4270_v49  ;;  %v4890_v49 = vpack.c.b16 %v617_v45, %v617_v45  ;;  %v331_v45 = vld [vmem:[%s4737_s12 + $0x44] sm:$0x1] }
  0x32   : > { %2736 = vmatpush.bf16.msrb.mxu3 %v4278_v50  ;;  %2914 = vmatpush.bf16.msrb.mxu1 %v4294_v54  ;;  %v774_v50 = vshll.u32 %v316_v30, 16  ;;  %v4291_v54 = vld [vmem:[%s5713_s1 + $0x158] sm:$0xff] }
  0x33   : > { %2825 = vmatpush.bf16.msrb.mxu0 %v4286_v55  ;;  %v4901_v55 = vpack.c.b16 %v609_v47, %v609_v47  ;;  %v779_v60 = vshll.u32 %v4890_v49, 16 }
  0x35   : > { %2648 = vmatpush.bf16.msrb.mxu2 %v4269_v58  ;;  %v772_v58 = vshrl.u32 %v316_v30, 16  ;;  %v781_v1 = vrot.slane %v779_v60, 1 }
  0x36   : > { %2737 = vmatpush.bf16.msrb.mxu3 %v4277_v59  ;;  %2915 = vmatpush.bf16.msrb.mxu1 %v4293_v63  ;;  %v776_v59 = vrot.slane %v774_v50, 1  ;;  %v683_v63 = vshll.u32 %v4901_v55, 16  ;;  %v611_v50 = vunpack.c.l.b16 %v331_v45 }
  0x37   : > { %2826 = vmatpush.bf16.msrb.mxu0 %v4285_v0 }
  0x38   : > { %v777_v0 = vor.u32 %v776_v59, %v772_v58  ;;  %v685_v4 = vrot.slane %v683_v63, 1  ;;  %v4281_v58 = vld [vmem:[%s5713_s1 + $0x108] sm:$0xff]  ;;  %v4963_v60 = vpack.c.b16 %v611_v50, %v611_v50  ;;  %v5001_v50 = vld [vmem:[%s4737_s12 + $0x54] sm:$0xf0] }
  0x39   : > { %2649 = vmatpush.bf16.msrb.mxu2 %v4268_v16  ;;  %v4274_v16 = vld [vmem:[%s5713_s1 + $0xd0] sm:$0xff]  ;;  %v4289_v59 = vld [vmem:[%s5713_s1 + $0x148] sm:$0xff] }
  0x3a   : > { %2738 = vmatpush.bf16.msrb.mxu3 %v4276_v20  ;;  %2916 = vmatpush.bf16.msrb.mxu1 %v4292_v23  ;;  %v782_v6 = vsel %vm638_vm0, %v777_v0, %v781_v1  ;;  %v686_v9 = vsel %vm638_vm0, %v681_v3, %v685_v4  ;;  %v4290_v20 = vld [vmem:[%s5713_s1 + $0x150] sm:$0xff]  ;;  %v707_v3 = vshll.u32 %v4963_v60, 16 }
  0x3b   : > { %2827 = vmatpush.bf16.msrb.mxu0 %v4284_v22  ;;  %v690_v22 = vshll.u32 %v4911_v11, 16 }
  0x3c   : > { %2521 = vmatmul.bf16.gmra.mxu2 %v4773_v27  ;;  %2481 = vmatmul.bf16.gmra.mxu0 %v4780_v32  ;;  %v764_v27 = vrot.slane %v762_v17, 1  ;;  %v664_v32 = vshrl.u32 %v4848_v15, 16  ;;  %v4282_v17 = vld [vmem:[%s5713_s1 + $0x110] sm:$0xff] }
  0x3d   : > { %2610 = vmatmul.bf16.gmra.mxu3 %v758_v10  ;;  %2650 = vmatpush.bf16.msrb.mxu2 %v4267_v48  ;;  %v610_v10 = vunpack.c.l.b16 %v330_v5 }
  0x3e   : > { %v765_v38 = vor.u32 %v764_v27, %v760_v26  ;;  %v4880_v41 = vor.u32 %v668_v34, %v664_v32  ;;  %2739 = vmatpush.bf16.msrb.mxu3 %v4275_v51  ;;  %2917 = vmatpush.bf16.msrb.mxu1 %v4291_v54  ;;  %v791_v27 = vshll.u32 %v4916_v14, 16  ;;  %v688_v32 = vshrl.u32 %v4911_v11, 16  ;;  %v4265_v51 = vld [vmem:[%s5713_s1 + $0x88] sm:$0xff] }
  0x3f   : > { %2570 = vmatmul.bf16.gmra.mxu1 %v662_v13  ;;  %2828 = vmatpush.bf16.msrb.mxu0 %v4283_v53  ;;  %v786_v13 = vshll.u32 %v4437_v8, 16  ;;  %v4928_v23 = vpack.c.b16 %v610_v10, %v610_v10  ;;  %v692_v34 = vrot.slane %v690_v22, 1  ;;  %v798_v54 = vshll.u32 %v320_v29, 16  ;;  %v4264_v22 = vld [vmem:[%s5713_s1 + $0x80] sm:$0xff] }
  0x40   : > { %v770_v44 = vsel %vm638_vm0, %v765_v38, %v769_v39  ;;  %v674_v46 = vsel %vm638_vm0, %v4880_v41, %v673_v42  ;;  %v4939_v38 = vld [vmem:[%s4737_s12 + $0x3c] sm:$0xf0]  ;;  %v793_v40 = vrot.slane %v791_v27, 1  ;;  %v339_v42 = vld [vmem:[%s4737_s12 + $0xa4] sm:$0x1] }
  0x41   : > { %v788_v26 = vrot.slane %v786_v13, 1  ;;  %v695_v35 = vshll.u32 %v4928_v23, 16  ;;  %v4942_v43 = vor.u32 %v692_v34, %v688_v32  ;;  %v619_v47 = vunpack.c.l.b16 %v339_v42  ;;  %v4438_v13 = vld [vmem:[%s4737_s12 + $0xa8] sm:$0xff]   ;;  %v4272_v27 = vld [vmem:[%s5713_s1 + $0xc0] sm:$0xff]  ;;  %v324_v42 = vld [vmem:[%s4737_s12 + $0xb4] sm:$0xff]  }
  0x42   : > { %2740 = vmatpush.bf16.msrb.mxu3 %v4274_v16  ;;  %2918 = vmatpush.bf16.msrb.mxu1 %v4290_v20  ;;  %v800_v63 = vrot.slane %v798_v54, 1  ;;  %v4973_v20 = vld [vmem:[%s4737_s12 + $0x48] sm:$0xff]   ;;  %v4288_v32 = vld [vmem:[%s5713_s1 + $0x140] sm:$0xff] }
  0x43   : > { %2829 = vmatpush.bf16.msrb.mxu0 %v4282_v17  ;;  %v789_v39 = vor.u32 %v788_v26, %v784_v24  ;;  %v4952_v53 = vpack.c.b16 %v619_v47, %v619_v47  ;;  %v810_v24 = vshll.u32 %v4438_v13, 16  ;;  %v714_v34 = vshll.u32 %v4973_v20, 16 }
  0x44   : > { %v801_v4 = vor.u32 %v800_v63, %v796_v62  ;;  %v712_v45 = vshrl.u32 %v4973_v20, 16 }
  0x45   : > { %v803_v0 = vshll.u32 %v4952_v53, 16 }
  0x46   : > { %2741 = vmatpush.bf16.msrb.mxu3 %v4273_v57  ;;  %2919 = vmatpush.bf16.msrb.mxu1 %v4289_v59  ;;  %v341_v57 = vld [vmem:[%s4737_s12 + $0xbc] sm:$0x1] }
  0x47   : > { %2830 = vmatpush.bf16.msrb.mxu0 %v4281_v58  ;;  %v805_v5 = vrot.slane %v803_v0, 1  ;;  %v621_v63 = vunpack.c.l.b16 %v341_v57  ;;  %v4456_v57 = vld [vmem:[%s4737_s12] sm:$0xe] }
  0x49   : > { %v806_v10 = vsel %vm638_vm0, %v801_v4, %v805_v5  ;;  %v822_v4 = vshll.u32 %v324_v42, 16  ;;  %v4311_v5 = vld [vmem:[%s5713_s1 + $0x1f8] sm:$0xff] }
  0x4a   : > { %2742 = vmatpush.bf16.msrb.mxu3 %v4272_v27  ;;  %2920 = vmatpush.bf16.msrb.mxu1 %v4288_v32 }
  0x4c   : > { %2526 = vmatmul.bf16.gmra.mxu2 %v4436_v12  ;;  %2486 = vmatmul.bf16.gmra.mxu0 %v4848_v15  ;;  %v4266_v12 = vld [vmem:[%s5713_s1 + $0x90] sm:$0xff] }
  0x4d   : > { %2615 = vmatmul.bf16.gmra.mxu3 %v770_v44  ;;  %2651 = vmatpush.bf16.msrb.mxu2 %v4266_v12  ;;  %v697_v44 = vrot.slane %v695_v35, 1 }
  0x4e   : > { %3091 = vmatpush.bf16.msra.mxu3 %v4311_v5  ;;  %v897_v5 = vrot.slane %v4763_v21, 1 }
  0x4f   : > { %2575 = vmatmul.bf16.gmra.mxu1 %v674_v46  ;;  %v794_v46 = vsel %vm638_vm0, %v789_v39, %v793_v40  ;;  %v698_v48 = vsel %vm638_vm0, %v4942_v43, %v697_v44  ;;  %v812_v39 = vrot.slane %v810_v24, 1  ;;  %v4995_v44 = vld [vmem:[%s4737_s12 + $0xb4] sm:$0xf0] }
  0x51   : > { %2652 = vmatpush.bf16.msrb.mxu2 %v4265_v51 }
  0x55   : > { %2653 = vmatpush.bf16.msrb.mxu2 %v4264_v22  ;;  %v4569_v22 = vld [vmem:[%s4737_s12 + $0xc] sm:$0xf0] }
  0x5c   : > { %2531 = vmatmul.bf16.gmra.mxu2 %v316_v30  ;;  %2491 = vmatmul.bf16.gmra.mxu0 %v300_v36  ;;  %v4933_v30 = vld [vmem:[%s4737_s12 + $0x9c] sm:$0xf0] }
  0x5d   : > { %2620 = vmatmul.bf16.gmra.mxu3 %v782_v6  ;;  %v304_v36 = vld [vmem:[%s4737_s12 + $0x3c] sm:$0xff]   ;;  %v340_v6 = vld [vmem:[%s4737_s12 + $0xb0] sm:$0x1] }
  0x5e   : > { %v702_v61 = vshll.u32 %v304_v36, 16  ;;  %v700_v1 = vshrl.u32 %v304_v36, 16  ;;  %v620_v12 = vunpack.c.l.b16 %v340_v6 }
  0x5f   : > { %2580 = vmatmul.bf16.gmra.mxu1 %v686_v9  ;;  %v332_v9 = vld [vmem:[%s4737_s12 + $0x50] sm:$0x1] }
  0x60   : > { %v704_v2 = vrot.slane %v702_v61, 1  ;;  %v612_v17 = vunpack.c.l.b16 %v332_v9  ;;  %v4978_v26 = vpack.c.b16 %v620_v12, %v620_v12  ;;  %v333_v61 = vld [vmem:[%s4737_s12 + $0x5c] sm:$0x1]  ;;  %v824_v9 = vrot.slane %v822_v4, 1 }
  0x62   : > { %v705_v7 = vor.u32 %v704_v2, %v700_v1  ;;  %v4990_v35 = vpack.c.b16 %v612_v17, %v612_v17  ;;  %v815_v40 = vshll.u32 %v4978_v26, 16  ;;  %v613_v1 = vunpack.c.l.b16 %v333_v61  ;;  %v4303_v2 = vld [vmem:[%s5713_s1 + $0x1b8] sm:$0xff]  ;;  %v3748_v17 = vld [vmem:[%s4737_s12 + $0xc] sm:$0xff]  }
  0x63   : > { %3002 = vmatpush.bf16.msra.mxu2 %v4303_v2 }
  0x64   : > { %v719_v47 = vshll.u32 %v4990_v35, 16  ;;  %v817_v54 = vrot.slane %v815_v40, 1  ;;  %v5019_v6 = vpack.c.b16 %v613_v1, %v613_v1 }
  0x66   : > { %v721_v59 = vrot.slane %v719_v47, 1 }
  0x6c   : > { %2536 = vmatmul.bf16.gmra.mxu2 %v4437_v8  ;;  %2496 = vmatmul.bf16.gmra.mxu0 %v4911_v11  ;;  %v709_v8 = vrot.slane %v707_v3, 1  ;;  %v5014_v3 = vpack.c.b16 %v621_v63, %v621_v63  ;;  %v1105_v63 = vshrl.u32 %v3748_v17, 16 }
  0x6d   : > { %2625 = vmatmul.bf16.gmra.mxu3 %v794_v46  ;;  %v716_v46 = vrot.slane %v714_v34, 1 }
  0x6e   : > { %v710_v16 = vsel %vm638_vm0, %v705_v7, %v709_v8  ;;  %v820_v8 = vshrl.u32 %v324_v42, 16 }
  0x6f   : > { %2585 = vmatmul.bf16.gmra.mxu1 %v698_v48  ;;  %v308_v48 = vld [vmem:[%s4737_s12 + $0x54] sm:$0xff]   ;;  %v5004_v58 = vor.u32 %v716_v46, %v712_v45  ;;  %v3301_v45 = vld [vmem:[%s5716_s4] sm:$0x3] }
  0x70   : > { %v726_v7 = vshll.u32 %v308_v48, 16  ;;  %v724_v12 = vshrl.u32 %v308_v48, 16  ;;  %v825_v24 = vor.u32 %v824_v9, %v820_v8  ;;  %v3433_v47 = vsel %vm3431_vm1, %v3301_v45, 0  ;;  %v3781_v9 = vld [vmem:[%s4737_s12 + $0x20] sm:$0x1] }
  0x71   : > { %v722_v0 = vsel %vm638_vm0, %v5004_v58, %v721_v59  ;;  %3442 = vmatpush.bf16.msra.mxu1 %v3433_v47  ;;  %v1107_v59 = vshll.u32 %v3748_v17, 16  ;;  %v4480_v47 = vld [vmem:[%s4737_s12 + $0x18] sm:$0xe] }
  0x7c   : > { %2541 = vmatmul.bf16.gmra.mxu2 %v320_v29  ;;  %2501 = vmatmul.bf16.gmra.mxu0 %v304_v36  ;;  %v4280_v29 = vld [vmem:[%s5713_s1 + $0x100] sm:$0xff]  ;;  %v808_v36 = vshrl.u32 %v4438_v13, 16 }
  0x7d   : > { %2630 = vmatmul.bf16.gmra.mxu3 %v806_v10  ;;  %2831 = vmatpush.bf16.msrb.mxu0 %v4280_v29  ;;  %v827_v10 = vshll.u32 %v5014_v3, 16  ;;  %v4319_v29 = vld [vmem:[%s5713_s1 + $0x238] sm:$0xff] }
  0x7e   : > { %v813_v51 = vor.u32 %v812_v39, %v808_v36  ;;  %v3780_v36 = vld [vmem:[%s4737_s12 + $0x14] sm:$0x1] }
  0x7f   : > { %2590 = vmatmul.bf16.gmra.mxu1 %v710_v16  ;;  %v731_v16 = vshll.u32 %v5019_v6, 16  ;;  %v829_v27 = vrot.slane %v827_v10, 1  ;;  %v1072_v40 = vunpack.c.l.b16 %v3780_v36  ;;  %v5042_v10 = vld [vmem:[%s5714_s2] ss:$0 sm:$0xff]  ;;  %v4310_v36 = vld [vmem:[%s5713_s1 + $0x1f0] sm:$0xff] }
  0x80   : > { %v818_v62 = vsel %vm638_vm0, %v813_v51, %v817_v54  ;;  %v4570_v51 = vld [vmem:[%s4737_s12 + $0xc] sm:$0xe]  ;;  %v4455_v54 = vld [vmem:[%s4737_s12] sm:$0xf0]  ;;  %3092 = vmatpush.bf16.msra.mxu3 %v4310_v36 }
  0x81   : > { %v733_v34 = vrot.slane %v731_v16, 1  ;;  %3180 = vmatpush.bf16.msra.mxu0 %v4319_v29  ;;  %v830_v39 = vsel %vm638_vm0, %v825_v24, %v829_v27  ;;  %v1088_v61 = vpack.c.b16 %v1072_v40, %v1072_v40  ;;  %v4571_v2 = vor.u32 %v4570_v51, %v4569_v22  ;;  %v4573_v22 = vld [vmem:[%s4737_s12 + $0xc] sm:$0xe]  ;;  %v4576_v36 = vld [vmem:[%s4737_s12 + $0x24] sm:$0xe] }
  0x82   : > { %v1073_v24 = vunpack.c.l.b16 %v3781_v9  ;;  %v4574_v51 = vor.u32 %v4573_v22, %v4783_v33  ;;  %v4318_v33 = vld [vmem:[%s5713_s1 + $0x230] sm:$0xff] }
  0x83   : > { %v1112_v1 = vshll.u32 %v1088_v61, 16  ;;  %v1361_v8 = vrot.slane %v1088_v61, 1 }
  0x85   : > { %3181 = vmatpush.bf16.msra.mxu0 %v4318_v33 }
  0x8c   : > { %2546 = vmatmul.bf16.gmra.mxu2 %v4438_v13  ;;  %2506 = vmatmul.bf16.gmra.mxu0 %v4973_v20  ;;  %v728_v13 = vrot.slane %v726_v7, 1  ;;  %v1114_v7 = vrot.slane %v1112_v1, 1  ;;  %v4575_v1 = vld [vmem:[%s4737_s12 + $0x24] sm:$0xf0] }
  0x8d   : > { %2635 = vmatmul.bf16.gmra.mxu3 %v818_v62  ;;  %v4457_v62 = vor.u32 %v4456_v57, %v4455_v54  ;;  %v4577_v33 = vor.u32 %v4576_v36, %v4575_v1  ;;  %v4579_v36 = vld [vmem:[%s4737_s12 + $0x24] sm:$0xe] }
  0x8e   : > { %v729_v32 = vor.u32 %v728_v13, %v724_v12 }
  0x8f   : > { %2595 = vmatmul.bf16.gmra.mxu1 %v722_v0  ;;  %v1109_v0 = vrot.slane %v1107_v59, 1  ;;  %v896_v4 = vrot.slane %v4457_v62, 1 }
  0x90   : > { %v734_v46 = vsel %vm638_vm0, %v729_v32, %v733_v34  ;;  %v4302_v32 = vld [vmem:[%s5713_s1 + $0x1b0] sm:$0xff] }
  0x91   : > { %v898_v12 = vsel %vm895_vm2, %v896_v4, %v897_v5  ;;  %3003 = vmatpush.bf16.msra.mxu2 %v4302_v32  ;;  %v899_v4 = vrot.slane %v4574_v51, 1  ;;  %v900_v5 = vrot.slane %v4822_v56, 1 }
  0x9c   : > { %2551 = vmatmul.bf16.gmra.mxu2 %v324_v42  ;;  %2511 = vmatmul.bf16.gmra.mxu0 %v308_v48  ;;  %v1110_v42 = vor.u32 %v1109_v0, %v1105_v63  ;;  %v1360_v48 = vrot.slane %v4571_v2, 1  ;;  %v5065_v0 = vld [vmem:[%s4737_s12 + $0x24] sm:$0xff]  }
  0x9d   : > { %2640 = vmatmul.bf16.gmra.mxu3 %v830_v39  ;;  %v1089_v39 = vpack.c.b16 %v1073_v24, %v1073_v24 }
  0x9e   : > { %v1115_v16 = vsel %vm638_vm0, %v1110_v42, %v1114_v7  ;;  %v1362_v29 = vsel %vm895_vm2, %v1360_v48, %v1361_v8 }
  0x9f   : > { %2600 = vmatmul.bf16.gmra.mxu1 %v734_v46  ;;  %v4479_v46 = vld [vmem:[%s4737_s12 + $0x18] sm:$0xf0]  ;;  %v1124_v59 = vshll.u32 %v1089_v39, 16  ;;  %v1364_v9 = vrot.slane %v1089_v39, 1 }
  0xa0   : > { %v4481_v63 = vor.u32 %v4480_v47, %v4479_v46  ;;  %v1131_v46 = vshll.u32 %v5065_v0, 16 }
  0xa1   : > { %v1126_v42 = vrot.slane %v1124_v59, 1 }
  0xa2   : > { %v1363_v8 = vrot.slane %v4481_v63, 1 }
  0xa3   : > { %v1127_v24 = vsel %vm638_vm0, %v4880_v41, %v1126_v42 }
  0xa4   : > { %v1365_v32 = vsel %vm895_vm2, %v1363_v8, %v1364_v9 }
  0xa9   : > { %v2477_v13 = vpop.f32.mrf.mxu0 }
  0xaa   : > { %v2478_v21 = vadd.f32 %v5042_v10, %v2477_v13 }
  0xac   : > { %v2566_v27 = vpop.f32.mrf.mxu1  ;;  %2654 = vmatmul.bf16.vlgmr.msrb.gmra.mxu2 %v898_v12  ;;  %2832 = vmatmul.bf16.vlgmr.msrb.gmra.mxu0 %v1115_v16  ;;  %v3782_v12 = vld [vmem:[%s4737_s12 + $0x2c] sm:$0x1]  ;;  %v901_v16 = vsel %vm895_vm2, %v899_v4, %v900_v5 }
  0xad   : > { %2743 = vmatmul.bf16.vlgmr.msrb.gmra.mxu3 %v3748_v17  ;;  %v5052_v34 = vadd.f32 %v2566_v27, %v2478_v21  ;;  %v1074_v21 = vunpack.c.l.b16 %v3782_v12 }
  0xaf   : > { %2921 = vmatmul.bf16.vlgmr.msrb.gmra.mxu1 %v1362_v29  ;;  %v2517_v40 = vpop.f32.mrf.mxu2 }
  0xb0   : > { %v2606_v45 = vpop.f32.mrf.mxu3  ;;  %v2518_v17 = vadd.f32 %v5042_v10, %v2517_v40  ;;  %v4458_v40 = vld [vmem:[%s4737_s12 + $0x18] sm:$0xf0] }
  0xb1   : > { %v2479_v57 = vpop.f32.mrf.mxu0 }
  0xb2   : > { %v5061_v54 = vadd.f32 %v2606_v45, %v2518_v17  ;;  %v2480_v61 = vadd.f32 %v5042_v10, %v2479_v57  ;;  %v4459_v45 = vld [vmem:[%s4737_s12 + $0x18] sm:$0xe]  ;;  %v1090_v17 = vpack.c.b16 %v1074_v21, %v1074_v21 }
  0xb3   : > { %v4460_v57 = vor.u32 %v4459_v45, %v4458_v40 }
  0xb4   : > { %v2568_v62 = vpop.f32.mrf.mxu1  ;;  %v1136_v63 = vshll.u32 %v1090_v17, 16 }
  0xb5   : > { %v5068_v2 = vadd.f32 %v2568_v62, %v2480_v61  ;;  %v1133_v62 = vrot.slane %v1131_v46, 1 }
  0xb6   : > { %v1138_v9 = vrot.slane %v1136_v63, 1  ;;  %v4580_v63 = vor.u32 %v4579_v36, %v4877_v37  ;;  %v4317_v37 = vld [vmem:[%s5713_s1 + $0x228] sm:$0xff]  ;;  %v3784_v36 = vld [vmem:[%s4737_s12 + $0x44] sm:$0x1] }
  0xb7   : > { %v2519_v7 = vpop.f32.mrf.mxu2  ;;  %3182 = vmatpush.bf16.msra.mxu0 %v4317_v37 }
  0xb8   : > { %v2608_v48 = vpop.f32.mrf.mxu3  ;;  %v2520_v13 = vadd.f32 %v5042_v10, %v2519_v7  ;;  %v902_v7 = vrot.slane %v4460_v57, 1 }
  0xb9   : > { %v2482_v56 = vpop.f32.mrf.mxu0 }
  0xba   : > { %v5077_v22 = vadd.f32 %v2608_v48, %v2520_v13  ;;  %v2483_v27 = vadd.f32 %v5042_v10, %v2482_v56  ;;  %v903_v48 = vrot.slane %v4866_v25, 1  ;;  %v1367_v56 = vrot.slane %v1090_v17, 1  ;;  %v4301_v17 = vld [vmem:[%s5713_s1 + $0x1a8] sm:$0xff] }
  0xbb   : > { %3004 = vmatpush.bf16.msra.mxu2 %v4301_v17  ;;  %v1076_v17 = vunpack.c.l.b16 %v3784_v36  ;;  %v909_v36 = vrot.slane %v4928_v23, 1 }
  0xbc   : > { %v2571_v29 = vpop.f32.mrf.mxu1  ;;  %2659 = vmatmul.bf16.gmra.mxu2 %v901_v16  ;;  %2837 = vmatmul.bf16.gmra.mxu0 %v1127_v24  ;;  %v1366_v16 = vrot.slane %v4577_v33, 1  ;;  %v3783_v24 = vld [vmem:[%s4737_s12 + $0x38] sm:$0x1] }
  0xbd   : > { %2748 = vmatmul.bf16.gmra.mxu3 %v4848_v15  ;;  %v5085_v39 = vadd.f32 %v2571_v29, %v2483_v27  ;;  %v1129_v15 = vshrl.u32 %v5065_v0, 16  ;;  %v904_v27 = vsel %vm895_vm2, %v902_v7, %v903_v48  ;;  %v1075_v40 = vunpack.c.l.b16 %v3783_v24 }
  0xbe   : > { %v1368_v46 = vsel %vm895_vm2, %v1366_v16, %v1367_v56  ;;  %v905_v16 = vrot.slane %v4580_v63, 1  ;;  %v906_v56 = vrot.slane %v4901_v55, 1 }
  0xbf   : > { %2926 = vmatmul.bf16.gmra.mxu1 %v1365_v32  ;;  %v2522_v41 = vpop.f32.mrf.mxu2  ;;  %v1134_v8 = vor.u32 %v1133_v62, %v1129_v15  ;;  %v4482_v15 = vld [vmem:[%s4737_s12 + $0x30] sm:$0xf0]  ;;  %v4483_v62 = vld [vmem:[%s4737_s12 + $0x30] sm:$0xe] }
  0xc0   : > { %v2611_v47 = vpop.f32.mrf.mxu3  ;;  %v2523_v51 = vadd.f32 %v5042_v10, %v2522_v41 }
  0xc1   : > { %v2484_v61 = vpop.f32.mrf.mxu0  ;;  %v1139_v32 = vsel %vm638_vm0, %v1134_v8, %v1138_v9  ;;  %v4484_v8 = vor.u32 %v4483_v62, %v4482_v15  ;;  %v5124_v9 = vld [vmem:[%s4737_s12 + $0x3c] sm:$0xff]   ;;  %v4461_v15 = vld [vmem:[%s4737_s12 + $0x30] sm:$0xf0]  ;;  %v4462_v62 = vld [vmem:[%s4737_s12 + $0x30] sm:$0xe] }
  0xc2   : > { %v5091_v59 = vadd.f32 %v2611_v47, %v2523_v51  ;;  %v2485_v4 = vadd.f32 %v5042_v10, %v2484_v61  ;;  %v4309_v47 = vld [vmem:[%s5713_s1 + $0x1e8] sm:$0xff]  ;;  %v1091_v51 = vpack.c.b16 %v1075_v40, %v1075_v40  ;;  %v1155_v63 = vshll.u32 %v5124_v9, 16 }
  0xc3   : > { %3093 = vmatpush.bf16.msra.mxu3 %v4309_v47 }
  0xc4   : > { %v2573_v5 = vpop.f32.mrf.mxu1  ;;  %v1148_v33 = vshll.u32 %v1091_v51, 16 }
  0xc5   : > { %v5095_v42 = vadd.f32 %v2573_v5, %v2485_v4 }
  0xc6   : > { %v1150_v24 = vrot.slane %v1148_v33, 1 }
  0xc7   : > { %v2524_v12 = vpop.f32.mrf.mxu2 }
  0xc8   : > { %v2613_v13 = vpop.f32.mrf.mxu3  ;;  %v2525_v21 = vadd.f32 %v5042_v10, %v2524_v12  ;;  %v4581_v12 = vld [vmem:[%s4737_s12 + $0x3c] sm:$0xf0] }
  0xc9   : > { %v2487_v1 = vpop.f32.mrf.mxu0 }
  0xca   : > { %v5101_v29 = vadd.f32 %v2613_v13, %v2525_v21  ;;  %v2488_v25 = vadd.f32 %v5042_v10, %v2487_v1  ;;  %v1369_v1 = vrot.slane %v4484_v8, 1 }
  0xcc   : > { %v2576_v45 = vpop.f32.mrf.mxu1  ;;  %2664 = vmatmul.bf16.gmra.mxu2 %v904_v27  ;;  %2842 = vmatmul.bf16.gmra.mxu0 %v1139_v32  ;;  %v1370_v32 = vrot.slane %v1091_v51, 1 }
  0xcd   : > { %2753 = vmatmul.bf16.gmra.mxu3 %v5065_v0  ;;  %v5111_v41 = vadd.f32 %v2576_v45, %v2488_v25  ;;  %v907_v25 = vsel %vm895_vm2, %v905_v16, %v906_v56  ;;  %v1157_v56 = vrot.slane %v1155_v63, 1  ;;  %v4585_v63 = vld [vmem:[%s4737_s12 + $0x3c] sm:$0xe] }
  0xce   : > { %v1371_v51 = vsel %vm895_vm2, %v1369_v1, %v1370_v32 }
  0xcf   : > { %2931 = vmatmul.bf16.gmra.mxu1 %v1368_v46  ;;  %v2527_v57 = vpop.f32.mrf.mxu2  ;;  %v1151_v46 = vsel %vm638_vm0, %v4942_v43, %v1150_v24 }
  0xd0   : > { %v2616_v61 = vpop.f32.mrf.mxu3  ;;  %v2528_v0 = vadd.f32 %v5042_v10, %v2527_v57 }
  0xd1   : > { %v2489_v5 = vpop.f32.mrf.mxu0 }
  0xd2   : > { %v5120_v4 = vadd.f32 %v2616_v61, %v2528_v0  ;;  %v2490_v7 = vadd.f32 %v5042_v10, %v2489_v5  ;;  %v4582_v61 = vld [vmem:[%s4737_s12 + $0x3c] sm:$0xe]  ;;  %v1092_v5 = vpack.c.b16 %v1076_v17, %v1076_v17 }
  0xd4   : > { %v2578_v48 = vpop.f32.mrf.mxu1  ;;  %v1160_v37 = vshll.u32 %v1092_v5, 16 }
  0xd5   : > { %v5127_v13 = vadd.f32 %v2578_v48, %v2490_v7  ;;  %v4463_v48 = vor.u32 %v4462_v62, %v4461_v15 }
  0xd7   : > { %v2529_v21 = vpop.f32.mrf.mxu2  ;;  %v908_v32 = vrot.slane %v4463_v48, 1 }
  0xd8   : > { %v2618_v27 = vpop.f32.mrf.mxu3  ;;  %v2530_v40 = vadd.f32 %v5042_v10, %v2529_v21 }
  0xd9   : > { %v2492_v55 = vpop.f32.mrf.mxu0  ;;  %v910_v15 = vsel %vm895_vm2, %v908_v32, %v909_v36 }
  0xda   : > { %v5136_v45 = vadd.f32 %v2618_v27, %v2530_v40  ;;  %v2493_v47 = vadd.f32 %v5042_v10, %v2492_v55  ;;  %v4583_v27 = vor.u32 %v4582_v61, %v4581_v12 }
  0xdc   : > { %v2581_v57 = vpop.f32.mrf.mxu1  ;;  %2669 = vmatmul.bf16.gmra.mxu2 %v907_v25  ;;  %2847 = vmatmul.bf16.gmra.mxu0 %v1151_v46  ;;  %v1162_v25 = vrot.slane %v1160_v37, 1  ;;  %v1372_v17 = vrot.slane %v4583_v27, 1  ;;  %v4586_v27 = vor.u32 %v4585_v63, %v4939_v38  ;;  %v4316_v38 = vld [vmem:[%s5713_s1 + $0x220] sm:$0xff] }
  0xdd   : > { %2758 = vmatmul.bf16.gmra.mxu3 %v4911_v11  ;;  %v5144_v0 = vadd.f32 %v2581_v57, %v2493_v47  ;;  %v1153_v11 = vshrl.u32 %v5124_v9, 16  ;;  %v1373_v47 = vrot.slane %v1092_v5, 1  ;;  %v3785_v57 = vld [vmem:[%s4737_s12 + $0x50] sm:$0x1]  ;;  %v4300_v5 = vld [vmem:[%s5713_s1 + $0x1a0] sm:$0xff]  ;;  %3183 = vmatpush.bf16.msra.mxu0 %v4316_v38 }
  0xde   : > { %3005 = vmatpush.bf16.msra.mxu2 %v4300_v5 }
  0xdf   : > { %2936 = vmatmul.bf16.gmra.mxu1 %v1371_v51  ;;  %v2532_v43 = vpop.f32.mrf.mxu2  ;;  %v1158_v40 = vor.u32 %v1157_v56, %v1153_v11 }
  0xe0   : > { %v2621_v33 = vpop.f32.mrf.mxu3  ;;  %v2533_v7 = vadd.f32 %v5042_v10, %v2532_v43  ;;  %v1077_v43 = vunpack.c.l.b16 %v3785_v57 }
  0xe1   : > { %v2494_v16 = vpop.f32.mrf.mxu0  ;;  %v1163_v61 = vsel %vm638_vm0, %v1158_v40, %v1162_v25 }
  0xe2   : > { %v5150_v8 = vadd.f32 %v2621_v33, %v2533_v7  ;;  %v2495_v24 = vadd.f32 %v5042_v10, %v2494_v16  ;;  %v1374_v7 = vsel %vm895_vm2, %v1372_v17, %v1373_v47  ;;  %v4308_v16 = vld [vmem:[%s5713_s1 + $0x1e0] sm:$0xff]  ;;  %v1093_v11 = vpack.c.b16 %v1077_v43, %v1077_v43  ;;  %v5183_v17 = vld [vmem:[%s4737_s12 + $0x54] sm:$0xff]  }
  0xe3   : > { %3094 = vmatpush.bf16.msra.mxu3 %v4308_v16  ;;  %v4587_v47 = vld [vmem:[%s4737_s12 + $0x54] sm:$0xf0] }
  0xe4   : > { %v2583_v21 = vpop.f32.mrf.mxu1  ;;  %v1172_v40 = vshll.u32 %v1093_v11, 16 }
  0xe5   : > { %v5154_v1 = vadd.f32 %v2583_v21, %v2495_v24  ;;  %v4485_v24 = vld [vmem:[%s4737_s12 + $0x48] sm:$0xf0]  ;;  %v4486_v21 = vld [vmem:[%s4737_s12 + $0x48] sm:$0xe] }
  0xe7   : > { %v2534_v55 = vpop.f32.mrf.mxu2 }
  0xe8   : > { %v2623_v46 = vpop.f32.mrf.mxu3  ;;  %v2535_v51 = vadd.f32 %v5042_v10, %v2534_v55 }
  0xe9   : > { %v2497_v12 = vpop.f32.mrf.mxu0 }
  0xea   : > { %v5160_v62 = vadd.f32 %v2623_v46, %v2535_v51  ;;  %v2498_v23 = vadd.f32 %v5042_v10, %v2497_v12  ;;  %v4487_v46 = vor.u32 %v4486_v21, %v4485_v24  ;;  %v911_v51 = vrot.slane %v4586_v27, 1  ;;  %v4588_v21 = vld [vmem:[%s4737_s12 + $0x54] sm:$0xe] }
  0xeb   : > { %v1174_v12 = vrot.slane %v1172_v40, 1  ;;  %v4465_v40 = vld [vmem:[%s4737_s12 + $0x48] sm:$0xe] }
  0xec   : > { %v2586_v33 = vpop.f32.mrf.mxu1  ;;  %2674 = vmatmul.bf16.gmra.mxu2 %v910_v15  ;;  %2852 = vmatmul.bf16.gmra.mxu0 %v1163_v61  ;;  %v912_v15 = vrot.slane %v4963_v60, 1  ;;  %v1375_v43 = vrot.slane %v4487_v46, 1 }
  0xed   : > { %2763 = vmatmul.bf16.gmra.mxu3 %v5124_v9  ;;  %v5170_v48 = vadd.f32 %v2586_v33, %v2498_v23  ;;  %v1376_v23 = vrot.slane %v1093_v11, 1  ;;  %v3786_v33 = vld [vmem:[%s4737_s12 + $0x5c] sm:$0x1] }
  0xee   : > { %v913_v5 = vsel %vm895_vm2, %v911_v51, %v912_v15 }
  0xef   : > { %2941 = vmatmul.bf16.gmra.mxu1 %v1374_v7  ;;  %v2537_v56 = vpop.f32.mrf.mxu2  ;;  %v1377_v11 = vsel %vm895_vm2, %v1375_v43, %v1376_v23 }
  0xf0   : > { %v2626_v37 = vpop.f32.mrf.mxu3  ;;  %v2538_v9 = vadd.f32 %v5042_v10, %v2537_v56  ;;  %v1175_v56 = vsel %vm638_vm0, %v5004_v58, %v1174_v12 }
  0xf1   : > { %v2499_v36 = vpop.f32.mrf.mxu0 }
  0xf2   : > { %v5179_v32 = vadd.f32 %v2626_v37, %v2538_v9  ;;  %v2500_v25 = vadd.f32 %v5042_v10, %v2499_v36  ;;  %v1078_v37 = vunpack.c.l.b16 %v3786_v33  ;;  %v4464_v36 = vld [vmem:[%s4737_s12 + $0x48] sm:$0xf0]  ;;  %v4589_v33 = vor.u32 %v4588_v21, %v4587_v47 }
  0xf3   : > { %v4466_v15 = vor.u32 %v4465_v40, %v4464_v36  ;;  %v3787_v40 = vld [vmem:[%s4737_s12 + $0x68] sm:$0x1] }
  0xf4   : > { %v2588_v55 = vpop.f32.mrf.mxu1 }
  0xf5   : > { %v5186_v57 = vadd.f32 %v2588_v55, %v2500_v25  ;;  %v1179_v25 = vshll.u32 %v5183_v17, 16  ;;  %v1094_v55 = vpack.c.b16 %v1078_v37, %v1078_v37 }
  0xf7   : > { %v2539_v61 = vpop.f32.mrf.mxu2  ;;  %v1379_v36 = vrot.slane %v1094_v55, 1 }
  0xf8   : > { %v2628_v63 = vpop.f32.mrf.mxu3  ;;  %v2540_v7 = vadd.f32 %v5042_v10, %v2539_v61  ;;  %v1181_v61 = vrot.slane %v1179_v25, 1 }
  0xf9   : > { %v2502_v60 = vpop.f32.mrf.mxu0 }
  0xfa   : > { %v5195_v16 = vadd.f32 %v2628_v63, %v2540_v7  ;;  %v2503_v9 = vadd.f32 %v5042_v10, %v2502_v60  ;;  %v1184_v63 = vshll.u32 %v1094_v55, 16  ;;  %v915_v60 = vrot.slane %v4990_v35, 1  ;;  %v4299_v55 = vld [vmem:[%s5713_s1 + $0x198] sm:$0xff] }
  0xfb   : > { %3006 = vmatpush.bf16.msra.mxu2 %v4299_v55 }
  0xfc   : > { %v2591_v24 = vpop.f32.mrf.mxu1  ;;  %2679 = vmatmul.bf16.gmra.mxu2 %v913_v5  ;;  %2857 = vmatmul.bf16.gmra.mxu0 %v1175_v56  ;;  %v914_v5 = vrot.slane %v4466_v15, 1  ;;  %v1186_v37 = vrot.slane %v1184_v63, 1  ;;  %v1079_v15 = vunpack.c.l.b16 %v3787_v40 }
  0xfd   : > { %2768 = vmatmul.bf16.gmra.mxu3 %v4973_v20  ;;  %v5203_v27 = vadd.f32 %v2591_v24, %v2503_v9  ;;  %v1177_v20 = vshrl.u32 %v5183_v17, 16 }
  0xff   : > { %2946 = vmatmul.bf16.gmra.mxu1 %v1377_v11  ;;  %v2542_v58 = vpop.f32.mrf.mxu2  ;;  %v1182_v56 = vor.u32 %v1181_v61, %v1177_v20  ;;  %v1378_v11 = vrot.slane %v4589_v33, 1  ;;  %v4442_v61 = vld [vmem:[%s4737_s12 + $0x60] sm:$0xff]   ;;  %v1095_v33 = vpack.c.b16 %v1079_v15, %v1079_v15  ;;  %v5243_v15 = vld [vmem:[%s4737_s12 + $0x6c] sm:$0xff]  }
 0x100   : > { %v2631_v46 = vpop.f32.mrf.mxu3  ;;  %v2543_v51 = vadd.f32 %v5042_v10, %v2542_v58  ;;  %v916_v58 = vsel %vm895_vm2, %v914_v5, %v915_v60 }
 0x101   : > { %v2504_v12 = vpop.f32.mrf.mxu0  ;;  %v1187_v21 = vsel %vm638_vm0, %v1182_v56, %v1186_v37  ;;  %v1380_v20 = vsel %vm895_vm2, %v1378_v11, %v1379_v36  ;;  %v4488_v56 = vld [vmem:[%s4737_s12 + $0x60] sm:$0xf0]  ;;  %v4489_v37 = vld [vmem:[%s4737_s12 + $0x60] sm:$0xe]  ;;  %v1189_v36 = vshrl.u32 %v4442_v61, 16 }
 0x102   : > { %v5209_v38 = vadd.f32 %v2631_v46, %v2543_v51  ;;  %v2505_v43 = vadd.f32 %v5042_v10, %v2504_v12  ;;  %v4591_v51 = vld [vmem:[%s4737_s12 + $0x54] sm:$0xe] }
 0x104   : > { %v2593_v23 = vpop.f32.mrf.mxu1 }
 0x105   : > { %v5213_v7 = vadd.f32 %v2593_v23, %v2505_v43  ;;  %v4307_v43 = vld [vmem:[%s5713_s1 + $0x1d8] sm:$0xff]  ;;  %v1191_v23 = vshll.u32 %v4442_v61, 16 }
 0x106   : > { %3095 = vmatpush.bf16.msra.mxu3 %v4307_v43 }
 0x107   : > { %v2544_v9 = vpop.f32.mrf.mxu2  ;;  %v1193_v40 = vrot.slane %v1191_v23, 1 }
 0x108   : > { %v2633_v24 = vpop.f32.mrf.mxu3  ;;  %v2545_v25 = vadd.f32 %v5042_v10, %v2544_v9  ;;  %v4592_v9 = vor.u32 %v4591_v51, %v5001_v50  ;;  %v918_v51 = vrot.slane %v5019_v6, 1 }
 0x109   : > { %v2507_v47 = vpop.f32.mrf.mxu0  ;;  %v1194_v55 = vor.u32 %v1193_v40, %v1189_v36 }
 0x10a   : > { %v5219_v46 = vadd.f32 %v2633_v24, %v2545_v25  ;;  %v2508_v35 = vadd.f32 %v5042_v10, %v2507_v47  ;;  %v1196_v25 = vshll.u32 %v1095_v33, 16  ;;  %v917_v50 = vrot.slane %v4592_v9, 1 }
 0x10c   : > { %v2596_v12 = vpop.f32.mrf.mxu1  ;;  %2684 = vmatmul.bf16.gmra.mxu2 %v916_v58  ;;  %2862 = vmatmul.bf16.gmra.mxu0 %v1187_v21  ;;  %v4490_v21 = vor.u32 %v4489_v37, %v4488_v56  ;;  %v1198_v43 = vrot.slane %v1196_v25, 1  ;;  %v3788_v56 = vld [vmem:[%s4737_s12 + $0x74] sm:$0x1] }
 0x10d   : > { %2773 = vmatmul.bf16.gmra.mxu3 %v5183_v17  ;;  %v5230_v63 = vadd.f32 %v2596_v12, %v2508_v35  ;;  %v4593_v35 = vld [vmem:[%s4737_s12 + $0x6c] sm:$0xf0]  ;;  %v4315_v12 = vld [vmem:[%s5713_s1 + $0x218] sm:$0xff]  ;;  %v1080_v36 = vunpack.c.l.b16 %v3788_v56 }
 0x10e   : > { %3184 = vmatpush.bf16.msra.mxu0 %v4315_v12  ;;  %v1199_v6 = vsel %vm638_vm0, %v1194_v55, %v1198_v43  ;;  %v4467_v12 = vld [vmem:[%s4737_s12 + $0x60] sm:$0xf0] }
 0x10f   : > { %2951 = vmatmul.bf16.gmra.mxu1 %v1380_v20  ;;  %v2547_v5 = vpop.f32.mrf.mxu2 }
 0x110   : > { %v2636_v60 = vpop.f32.mrf.mxu3  ;;  %v2548_v17 = vadd.f32 %v5042_v10, %v2547_v5 }
 0x111   : > { %v2509_v11 = vpop.f32.mrf.mxu0 }
 0x112   : > { %v5239_v24 = vadd.f32 %v2636_v60, %v2548_v17  ;;  %v2510_v58 = vadd.f32 %v5042_v10, %v2509_v11  ;;  %v1381_v60 = vrot.slane %v4490_v21, 1  ;;  %v1382_v17 = vrot.slane %v1095_v33, 1  ;;  %v4594_v33 = vld [vmem:[%s4737_s12 + $0x6c] sm:$0xe] }
 0x113   : > { %v919_v11 = vsel %vm895_vm2, %v917_v50, %v918_v51  ;;  %v4468_v50 = vld [vmem:[%s4737_s12 + $0x60] sm:$0xe]  ;;  %v1203_v51 = vshll.u32 %v5243_v15, 16 }
 0x114   : > { %5718 = vst [vmem:[#allocation2_spill] sm:$0xff] %v5239_v24  ;;  %v2598_v47 = vpop.f32.mrf.mxu1  ;;  %v4469_v56 = vor.u32 %v4468_v50, %v4467_v12 }
 0x115   : > { %v5249_v20 = vadd.f32 %v2598_v47, %v2510_v58  ;;  %v1383_v47 = vsel %vm895_vm2, %v1381_v60, %v1382_v17  ;;  %v1205_v17 = vrot.slane %v1203_v51, 1 }
 0x117   : > { %v2549_v23 = vpop.f32.mrf.mxu2 }
 0x118   : > { %v2638_v5 = vpop.f32.mrf.mxu3  ;;  %v2550_v37 = vadd.f32 %v5042_v10, %v2549_v23  ;;  %v1096_v23 = vpack.c.b16 %v1080_v36, %v1080_v36  ;;  %v920_v36 = vrot.slane %v4469_v56, 1  ;;  %v4443_v56 = vld [vmem:[%s4737_s12 + $0x78] sm:$0xff]  }
 0x119   : > { %v2512_v9 = vpop.f32.mrf.mxu0 }
 0x11a   : > { %v5255_v58 = vadd.f32 %v2638_v5, %v2550_v37  ;;  %v2513_v40 = vadd.f32 %v5042_v10, %v2512_v9 }
 0x11c   : > { %5719 = vst [vmem:[#allocation3_spill] sm:$0xff] %v5255_v58  ;;  %v2601_v25 = vpop.f32.mrf.mxu1  ;;  %2689 = vmatmul.bf16.gmra.mxu2 %v919_v11  ;;  %2867 = vmatmul.bf16.gmra.mxu0 %v1199_v6  ;;  %v1208_v11 = vshll.u32 %v1096_v23, 16  ;;  %v3789_v58 = vld [vmem:[%s4737_s12 + $0x80] sm:$0x1] }
 0x11d   : > { %2778 = vmatmul.bf16.gmra.mxu3 %v4442_v61  ;;  %v5261_v21 = vadd.f32 %v2601_v25, %v2513_v40  ;;  %v1201_v61 = vshrl.u32 %v5243_v15, 16  ;;  %v4595_v40 = vor.u32 %v4594_v33, %v4593_v35 }
 0x11e   : > { %v1210_v50 = vrot.slane %v1208_v11, 1 }
 0x11f   : > { %2956 = vmatmul.bf16.gmra.mxu1 %v1383_v47  ;;  %v2552_v5 = vpop.f32.mrf.mxu2  ;;  %v921_v47 = vrot.slane %v4761_v19, 1  ;;  %v1206_v12 = vor.u32 %v1205_v17, %v1201_v61  ;;  %v4306_v17 = vld [vmem:[%s5713_s1 + $0x1d0] sm:$0xff] }
 0x120   : > { %v2641_v55 = vpop.f32.mrf.mxu3  ;;  %v2553_v43 = vadd.f32 %v5042_v10, %v2552_v5  ;;  %3096 = vmatpush.bf16.msra.mxu3 %v4306_v17  ;;  %v924_v17 = vrot.slane %v4813_v52, 1 }
 0x121   : > { %v2514_v60 = vpop.f32.mrf.mxu0  ;;  %v1211_v33 = vsel %vm638_vm0, %v1206_v12, %v1210_v50  ;;  %v1213_v12 = vshrl.u32 %v4443_v56, 16 }
 0x122   : > { %v5267_v37 = vadd.f32 %v2641_v55, %v2553_v43  ;;  %v2515_v9 = vadd.f32 %v5042_v10, %v2514_v60  ;;  %v1384_v43 = vrot.slane %v4595_v40, 1  ;;  %v922_v60 = vsel %vm895_vm2, %v920_v36, %v921_v47  ;;  %v4491_v40 = vld [vmem:[%s4737_s12 + $0x78] sm:$0xf0]  ;;  %v4492_v36 = vld [vmem:[%s4737_s12 + $0x78] sm:$0xe] }
 0x124   : > { %5720 = vst [vmem:[#allocation4_spill] sm:$0xff] %v5267_v37  ;;  %v2603_v6 = vpop.f32.mrf.mxu1  ;;  %v1385_v37 = vrot.slane %v1096_v23, 1  ;;  %v1215_v23 = vshll.u32 %v4443_v56, 16 }
 0x125   : > { %v5271_v25 = vadd.f32 %v2603_v6, %v2515_v9  ;;  %v4597_v9 = vld [vmem:[%s4737_s12 + $0x6c] sm:$0xe]  ;;  %v1081_v6 = vunpack.c.l.b16 %v3789_v58 }
 0x126   : > { %v1386_v61 = vsel %vm895_vm2, %v1384_v43, %v1385_v37  ;;  %v4598_v47 = vor.u32 %v4597_v9, %v4776_v28  ;;  %v1217_v50 = vrot.slane %v1215_v23, 1 }
 0x127   : > { %v2554_v5 = vpop.f32.mrf.mxu2  ;;  %v1097_v58 = vpack.c.b16 %v1081_v6, %v1081_v6  ;;  %v4599_v6 = vld [vmem:[%s4737_s12 + $0x84] sm:$0xf0] }
 0x128   : > { %v2643_v55 = vpop.f32.mrf.mxu3  ;;  %v2555_v51 = vadd.f32 %v5042_v10, %v2554_v5  ;;  %v4298_v10 = vld [vmem:[%s5713_s1 + $0x190] sm:$0xff]  ;;  %v1218_v28 = vor.u32 %v1217_v50, %v1213_v12 }
 0x129   : > { %v2833_v35 = vpop.f32.mrf.mxu0  ;;  %3007 = vmatpush.bf16.msra.mxu2 %v4298_v10  ;;  %v1220_v43 = vshll.u32 %v1097_v58, 16  ;;  %v923_v10 = vrot.slane %v4598_v47, 1 }
 0x12a   : > { %v5277_v24 = vadd.f32 %v2643_v55, %v2555_v51 }
 0x12b   : > { %v1222_v9 = vrot.slane %v1220_v43, 1 }
 0x12c   : > { %5721 = vst [vmem:[#allocation5_spill] sm:$0xff] %v5277_v24  ;;  %v2922_v19 = vpop.f32.mrf.mxu1  ;;  %2694 = vmatmul.bf16.gmra.mxu2 %v922_v60  ;;  %2872 = vmatmul.bf16.gmra.mxu0 %v1211_v33  ;;  %v4493_v60 = vor.u32 %v4492_v36, %v4491_v40  ;;  %v5295_v33 = vld [vmem:[%s4737_s12 + $0x84] sm:$0xff]   ;;  %v1388_v40 = vrot.slane %v1097_v58, 1  ;;  %v3790_v36 = vld [vmem:[%s4737_s12 + $0x8c] sm:$0x1] }
 0x12d   : > { %2783 = vmatmul.bf16.gmra.mxu3 %v5243_v15  ;;  %v1223_v52 = vsel %vm638_vm0, %v1218_v28, %v1222_v9  ;;  %v1082_v12 = vunpack.c.l.b16 %v3790_v36  ;;  %v4470_v58 = vld [vmem:[%s4737_s12 + $0x78] sm:$0xf0] }
 0x12f   : > { %2961 = vmatmul.bf16.gmra.mxu1 %v1386_v61  ;;  %v2655_v11 = vpop.f32.mrf.mxu2 }
 0x130   : > { %v2744_v37 = vpop.f32.mrf.mxu3  ;;  %v2656_v15 = vadd.f32 %v2655_v11, %v5052_v34  ;;  %v4314_v34 = vld [vmem:[%s5713_s1 + $0x210] sm:$0xff] }
 0x131   : > { %v2835_v55 = vpop.f32.mrf.mxu0  ;;  %3185 = vmatpush.bf16.msra.mxu0 %v4314_v34  ;;  %v1098_v34 = vpack.c.b16 %v1082_v12, %v1082_v12 }
 0x132   : > { %v2745_v5 = vadd.f32 %v2744_v37, %v2656_v15  ;;  %v1387_v15 = vrot.slane %v4493_v60, 1  ;;  %v4600_v60 = vld [vmem:[%s4737_s12 + $0x84] sm:$0xe] }
 0x134   : > { %v2924_v51 = vpop.f32.mrf.mxu1  ;;  %v2834_v61 = vadd.f32 %v2833_v35, %v2745_v5  ;;  %v925_v5 = vsel %vm895_vm2, %v923_v10, %v924_v17 }
 0x136   : > { %v5302_v23 = vadd.f32 %v2922_v19, %v2834_v61  ;;  %v1389_v19 = vsel %vm895_vm2, %v1387_v15, %v1388_v40  ;;  %v4471_v61 = vld [vmem:[%s4737_s12 + $0x78] sm:$0xe]  ;;  %v1232_v40 = vshll.u32 %v1098_v34, 16 }
 0x137   : > { %v2657_v11 = vpop.f32.mrf.mxu2  ;;  %v4472_v9 = vor.u32 %v4471_v61, %v4470_v58  ;;  %v1391_v61 = vrot.slane %v1098_v34, 1 }
 0x138   : > { %v2746_v37 = vpop.f32.mrf.mxu3  ;;  %v2658_v35 = vadd.f32 %v2657_v11, %v5068_v2  ;;  %v1227_v2 = vshll.u32 %v5295_v33, 16  ;;  %v1234_v12 = vrot.slane %v1232_v40, 1 }
 0x139   : > { %v2838_v24 = vpop.f32.mrf.mxu0 }
 0x13a   : > { %v2747_v47 = vadd.f32 %v2746_v37, %v2658_v35  ;;  %v4601_v35 = vor.u32 %v4600_v60, %v4599_v6 }
 0x13c   : > { %v2927_v50 = vpop.f32.mrf.mxu1  ;;  %v2836_v43 = vadd.f32 %v2835_v55, %v2747_v47  ;;  %2699 = vmatmul.bf16.gmra.mxu2 %v925_v5  ;;  %2877 = vmatmul.bf16.gmra.mxu0 %v1223_v52  ;;  %v1229_v55 = vrot.slane %v1227_v2, 1  ;;  %v926_v47 = vrot.slane %v4472_v9, 1  ;;  %v1390_v58 = vrot.slane %v4601_v35, 1  ;;  %v4444_v9 = vld [vmem:[%s4737_s12 + $0x90] sm:$0xff]  }
 0x13d   : > { %2788 = vmatmul.bf16.gmra.mxu3 %v4443_v56  ;;  %v1225_v56 = vshrl.u32 %v5295_v33, 16  ;;  %v1239_v34 = vshll.u32 %v4444_v9, 16 }
 0x13e   : > { %v5313_v10 = vadd.f32 %v2924_v51, %v2836_v43  ;;  %v927_v51 = vrot.slane %v4854_v18, 1 }
 0x13f   : > { %2966 = vmatmul.bf16.gmra.mxu1 %v1389_v19  ;;  %v2660_v17 = vpop.f32.mrf.mxu2  ;;  %v1230_v52 = vor.u32 %v1229_v55, %v1225_v56  ;;  %v4305_v55 = vld [vmem:[%s5713_s1 + $0x1c8] sm:$0xff] }
 0x140   : > { %v2749_v11 = vpop.f32.mrf.mxu3  ;;  %v2661_v28 = vadd.f32 %v2660_v17, %v5085_v39  ;;  %v3791_v17 = vld [vmem:[%s4737_s12 + $0x98] sm:$0x1]  ;;  %3097 = vmatpush.bf16.msra.mxu3 %v4305_v55 }
 0x141   : > { %v2840_v15 = vpop.f32.mrf.mxu0  ;;  %v1235_v60 = vsel %vm638_vm0, %v1230_v52, %v1234_v12  ;;  %v1083_v18 = vunpack.c.l.b16 %v3791_v17  ;;  %v1237_v12 = vshrl.u32 %v4444_v9, 16 }
 0x142   : > { %v2750_v37 = vadd.f32 %v2749_v11, %v2661_v28  ;;  %v928_v11 = vsel %vm895_vm2, %v926_v47, %v927_v51  ;;  %v4603_v28 = vld [vmem:[%s4737_s12 + $0x84] sm:$0xe]  ;;  %v4494_v47 = vld [vmem:[%s4737_s12 + $0x90] sm:$0xf0]  ;;  %v4495_v51 = vld [vmem:[%s4737_s12 + $0x90] sm:$0xe] }
 0x143   : > { %v1099_v40 = vpack.c.b16 %v1083_v18, %v1083_v18  ;;  %v4604_v52 = vor.u32 %v4603_v28, %v4871_v31  ;;  %v930_v18 = vrot.slane %v4890_v49, 1 }
 0x144   : > { %v2929_v36 = vpop.f32.mrf.mxu1  ;;  %v2839_v5 = vadd.f32 %v2838_v24, %v2750_v37 }
 0x145   : > { %v1394_v55 = vrot.slane %v1099_v40, 1 }
 0x146   : > { %v5318_v19 = vadd.f32 %v2927_v50, %v2839_v5  ;;  %v1392_v50 = vsel %vm895_vm2, %v1390_v58, %v1391_v61  ;;  %v1244_v61 = vshll.u32 %v1099_v40, 16  ;;  %v4473_v40 = vld [vmem:[%s4737_s12 + $0x90] sm:$0xf0] }
 0x147   : > { %v2662_v39 = vpop.f32.mrf.mxu2 }
 0x148   : > { %v2751_v43 = vpop.f32.mrf.mxu3  ;;  %v2663_v2 = vadd.f32 %v2662_v39, %v5095_v42  ;;  %v4297_v42 = vld [vmem:[%s5713_s1 + $0x188] sm:$0xff]  ;;  %v1241_v39 = vrot.slane %v1239_v34, 1  ;;  %v1246_v28 = vrot.slane %v1244_v61, 1 }
 0x149   : > { %v2843_v24 = vpop.f32.mrf.mxu0  ;;  %3008 = vmatpush.bf16.msra.mxu2 %v4297_v42 }
 0x14a   : > { %v2752_v6 = vadd.f32 %v2751_v43, %v2663_v2  ;;  %v4496_v2 = vor.u32 %v4495_v51, %v4494_v47  ;;  %v1242_v31 = vor.u32 %v1241_v39, %v1237_v12  ;;  %v4606_v39 = vld [vmem:[%s4737_s12 + $0x9c] sm:$0xe] }
 0x14c   : > { %v2932_v37 = vpop.f32.mrf.mxu1  ;;  %v2841_v56 = vadd.f32 %v2840_v15, %v2752_v6  ;;  %2704 = vmatmul.bf16.gmra.mxu2 %v928_v11  ;;  %2882 = vmatmul.bf16.gmra.mxu0 %v1235_v60  ;;  %v4605_v11 = vld [vmem:[%s4737_s12 + $0x9c] sm:$0xf0]  ;;  %v929_v60 = vrot.slane %v4604_v52, 1  ;;  %v1393_v34 = vrot.slane %v4496_v2, 1  ;;  %v1247_v49 = vsel %vm638_vm0, %v1242_v31, %v1246_v28 }
 0x14d   : > { %2793 = vmatmul.bf16.gmra.mxu3 %v5295_v33 }
 0x14e   : > { %v5334_v35 = vadd.f32 %v2929_v36, %v2841_v56  ;;  %v5341_v36 = vld [vmem:[%s4737_s12 + $0x9c] sm:$0xff]  }
 0x14f   : > { %2971 = vmatmul.bf16.gmra.mxu1 %v1392_v50  ;;  %v2665_v15 = vpop.f32.mrf.mxu2 }
 0x150   : > { %v2754_v5 = vpop.f32.mrf.mxu3  ;;  %v2666_v33 = vadd.f32 %v2665_v15, %v5111_v41  ;;  %v4313_v41 = vld [vmem:[%s5713_s1 + $0x208] sm:$0xff]  ;;  %v3792_v15 = vld [vmem:[%s4737_s12 + $0xa4] sm:$0x1] }
 0x151   : > { %v2845_v58 = vpop.f32.mrf.mxu0  ;;  %3186 = vmatpush.bf16.msra.mxu0 %v4313_v41  ;;  %v1084_v51 = vunpack.c.l.b16 %v3792_v15 }
 0x152   : > { %v2755_v43 = vadd.f32 %v2754_v5, %v2666_v33  ;;  %v931_v5 = vsel %vm895_vm2, %v929_v60, %v930_v18 }
 0x153   : > { %v1100_v61 = vpack.c.b16 %v1084_v51, %v1084_v51 }
 0x154   : > { %v2934_v17 = vpop.f32.mrf.mxu1  ;;  %v2844_v6 = vadd.f32 %v2843_v24, %v2755_v43  ;;  %v4474_v43 = vld [vmem:[%s4737_s12 + $0x90] sm:$0xe] }
 0x155   : > { %v4475_v18 = vor.u32 %v4474_v43, %v4473_v40 }
 0x156   : > { %v5348_v50 = vadd.f32 %v2932_v37, %v2844_v6  ;;  %v1395_v37 = vsel %vm895_vm2, %v1393_v34, %v1394_v55  ;;  %v4607_v34 = vor.u32 %v4606_v39, %v4605_v11 }
 0x157   : > { %v2667_v56 = vpop.f32.mrf.mxu2  ;;  %v932_v15 = vrot.slane %v4475_v18, 1  ;;  %v4304_v18 = vld [vmem:[%s5713_s1 + $0x1c0] sm:$0xff] }
 0x158   : > { %v2756_v42 = vpop.f32.mrf.mxu3  ;;  %v2668_v24 = vadd.f32 %v2667_v56, %v5127_v13  ;;  %v1251_v13 = vshll.u32 %v5341_v36, 16  ;;  %v1256_v56 = vshll.u32 %v1100_v61, 16  ;;  %v1396_v51 = vrot.slane %v4607_v34, 1  ;;  %3098 = vmatpush.bf16.msra.mxu3 %v4304_v18  ;;  %v4498_v34 = vld [vmem:[%s4737_s12 + $0xa8] sm:$0xe] }
 0x159   : > { %v2848_v47 = vpop.f32.mrf.mxu0 }
 0x15a   : > { %v2757_v33 = vadd.f32 %v2756_v42, %v2668_v24 }
 0x15c   : > { %v2937_v52 = vpop.f32.mrf.mxu1  ;;  %v2846_v12 = vadd.f32 %v2845_v58, %v2757_v33  ;;  %2709 = vmatmul.bf16.gmra.mxu2 %v931_v5  ;;  %2887 = vmatmul.bf16.gmra.mxu0 %v1247_v49  ;;  %v1253_v58 = vrot.slane %v1251_v13, 1  ;;  %v1258_v5 = vrot.slane %v1256_v56, 1  ;;  %v4609_v13 = vld [vmem:[%s4737_s12 + $0x9c] sm:$0xe]  ;;  %v4497_v56 = vld [vmem:[%s4737_s12 + $0xa8] sm:$0xf0] }
 0x15d   : > { %2798 = vmatmul.bf16.gmra.mxu3 %v4444_v9  ;;  %v1249_v9 = vshrl.u32 %v5341_v36, 16 }
 0x15e   : > { %v5359_v2 = vadd.f32 %v2934_v17, %v2846_v12  ;;  %v933_v17 = vrot.slane %v4916_v14, 1  ;;  %v3793_v12 = vld [vmem:[%s4737_s12 + $0xb0] sm:$0x1] }
 0x15f   : > { %2976 = vmatmul.bf16.gmra.mxu1 %v1395_v37  ;;  %v2670_v6 = vpop.f32.mrf.mxu2  ;;  %v1254_v24 = vor.u32 %v1253_v58, %v1249_v9  ;;  %v1397_v37 = vrot.slane %v1100_v61, 1  ;;  %v1085_v14 = vunpack.c.l.b16 %v3793_v12 }
 0x160   : > { %v2759_v41 = vpop.f32.mrf.mxu3  ;;  %v2671_v60 = vadd.f32 %v2670_v6, %v5144_v0  ;;  %v934_v43 = vsel %vm895_vm2, %v932_v15, %v933_v17  ;;  %v4445_v6 = vld [vmem:[%s4737_s12 + $0xa8] sm:$0xff]  }
 0x161   : > { %v2850_v28 = vpop.f32.mrf.mxu0  ;;  %v1259_v39 = vsel %vm638_vm0, %v1254_v24, %v1258_v5  ;;  %v1263_v61 = vshll.u32 %v4445_v6, 16  ;;  %v1261_v15 = vshrl.u32 %v4445_v6, 16 }
 0x162   : > { %v2760_v31 = vadd.f32 %v2759_v41, %v2671_v60 }
 0x163   : > { %v1265_v17 = vrot.slane %v1263_v61, 1 }
 0x164   : > { %v2939_v42 = vpop.f32.mrf.mxu1  ;;  %v2849_v55 = vadd.f32 %v2848_v47, %v2760_v31  ;;  %v1101_v31 = vpack.c.b16 %v1085_v14, %v1085_v14 }
 0x166   : > { %v5364_v33 = vadd.f32 %v2937_v52, %v2849_v55  ;;  %v1398_v52 = vsel %vm895_vm2, %v1396_v51, %v1397_v37  ;;  %v4610_v55 = vor.u32 %v4609_v13, %v4933_v30  ;;  %v4499_v51 = vor.u32 %v4498_v34, %v4497_v56  ;;  %v4611_v37 = vld [vmem:[%s4737_s12 + $0xb4] sm:$0xf0]  ;;  %v4612_v34 = vld [vmem:[%s4737_s12 + $0xb4] sm:$0xe] }
 0x167   : > { %v2672_v0 = vpop.f32.mrf.mxu2  ;;  %v1266_v30 = vor.u32 %v1265_v17, %v1261_v15 }
 0x168   : > { %v2761_v49 = vpop.f32.mrf.mxu3  ;;  %v2673_v40 = vadd.f32 %v2672_v0, %v5154_v1  ;;  %v4296_v1 = vld [vmem:[%s5713_s1 + $0x180] sm:$0xff]  ;;  %v1268_v0 = vshll.u32 %v1101_v31, 16 }
 0x169   : > { %v2853_v47 = vpop.f32.mrf.mxu0  ;;  %3009 = vmatpush.bf16.msra.mxu2 %v4296_v1  ;;  %v3794_v1 = vld [vmem:[%s4737_s12 + $0xbc] sm:$0x1] }
 0x16a   : > { %v2762_v11 = vadd.f32 %v2761_v49, %v2673_v40  ;;  %v935_v40 = vrot.slane %v4610_v55, 1  ;;  %v4477_v55 = vld [vmem:[%s4737_s12 + $0xa8] sm:$0xe] }
 0x16c   : > { %v2942_v41 = vpop.f32.mrf.mxu1  ;;  %v2851_v60 = vadd.f32 %v2850_v28, %v2762_v11  ;;  %2714 = vmatmul.bf16.gmra.mxu2 %v934_v43  ;;  %2892 = vmatmul.bf16.gmra.mxu0 %v1259_v39  ;;  %v936_v43 = vrot.slane %v4952_v53, 1  ;;  %v1270_v11 = vrot.slane %v1268_v0, 1 }
 0x16d   : > { %2803 = vmatmul.bf16.gmra.mxu3 %v5341_v36 }
 0x16e   : > { %v5380_v9 = vadd.f32 %v2939_v42, %v2851_v60  ;;  %v5387_v42 = vld [vmem:[%s4737_s12 + $0xb4] sm:$0xff]   ;;  %v1400_v60 = vrot.slane %v1101_v31, 1  ;;  %v937_v61 = vsel %vm895_vm2, %v935_v40, %v936_v43  ;;  %v1271_v53 = vsel %vm638_vm0, %v1266_v30, %v1270_v11  ;;  %v4476_v31 = vld [vmem:[%s4737_s12 + $0xa8] sm:$0xf0] }
 0x16f   : > { %2981 = vmatmul.bf16.gmra.mxu1 %v1398_v52  ;;  %v2675_v28 = vpop.f32.mrf.mxu2  ;;  %v1399_v52 = vrot.slane %v4499_v51, 1  ;;  %v4613_v11 = vor.u32 %v4612_v34, %v4611_v37  ;;  %v4615_v34 = vld [vmem:[%s4737_s12 + $0xb4] sm:$0xe] }
 0x170   : > { %v2764_v58 = vpop.f32.mrf.mxu3  ;;  %v2676_v36 = vadd.f32 %v2675_v28, %v5170_v48  ;;  %v4312_v48 = vld [vmem:[%s5713_s1 + $0x200] sm:$0xff] }
 0x171   : > { %v2855_v5 = vpop.f32.mrf.mxu0  ;;  %3187 = vmatpush.bf16.msra.mxu0 %v4312_v48 }
 0x172   : > { %v2765_v24 = vadd.f32 %v2764_v58, %v2676_v36  ;;  %v1086_v58 = vunpack.c.l.b16 %v3794_v1 }
 0x174   : > { %v2944_v49 = vpop.f32.mrf.mxu1  ;;  %v2854_v12 = vadd.f32 %v2853_v47, %v2765_v24  ;;  %v1102_v15 = vpack.c.b16 %v1086_v58, %v1086_v58 }
 0x176   : > { %v5394_v39 = vadd.f32 %v2942_v41, %v2854_v12  ;;  %v1401_v41 = vsel %vm895_vm2, %v1399_v52, %v1400_v60  ;;  %v4478_v12 = vor.u32 %v4477_v55, %v4476_v31  ;;  %v1280_v43 = vshll.u32 %v1102_v15, 16  ;;  %v4446_v55 = vld [vmem:[%s4737_s12 + $0xc0] sm:$0xff]  }
 0x177   : > { %v2677_v13 = vpop.f32.mrf.mxu2 }
 0x178   : > { %v2766_v14 = vpop.f32.mrf.mxu3  ;;  %v2678_v47 = vadd.f32 %v2677_v13, %v5186_v57  ;;  %v1275_v57 = vshll.u32 %v5387_v42, 16  ;;  %v1282_v60 = vrot.slane %v1280_v43, 1 }
 0x179   : > { %v2858_v28 = vpop.f32.mrf.mxu0 }
 0x17a   : > { %v2767_v18 = vadd.f32 %v2766_v14, %v2678_v47  ;;  %v938_v14 = vrot.slane %v4478_v12, 1 }
 0x17c   : > { %v2947_v36 = vpop.f32.mrf.mxu1  ;;  %v2856_v56 = vadd.f32 %v2855_v5, %v2767_v18  ;;  %2719 = vmatmul.bf16.gmra.mxu2 %v937_v61  ;;  %2897 = vmatmul.bf16.gmra.mxu0 %v1271_v53  ;;  %v1277_v5 = vrot.slane %v1275_v57, 1  ;;  %v1402_v61 = vrot.slane %v4613_v11, 1  ;;  %v1403_v18 = vrot.slane %v1102_v15, 1  ;;  %v3795_v53 = vld [vmem:[%s4737_s12 + $0xc8] sm:$0x1] }
 0x17d   : > { %2808 = vmatmul.bf16.gmra.mxu3 %v4445_v6  ;;  %v1273_v6 = vshrl.u32 %v5387_v42, 16  ;;  %v1285_v11 = vshrl.u32 %v4446_v55, 16 }
 0x17e   : > { %v5405_v17 = vadd.f32 %v2944_v49, %v2856_v56  ;;  %v939_v49 = vrot.slane %v4978_v26, 1  ;;  %v1087_v26 = vunpack.c.l.b16 %v3795_v53 }
 0x17f   : > { %2986 = vmatmul.bf16.gmra.mxu1 %v1401_v41  ;;  %v2680_v24 = vpop.f32.mrf.mxu2  ;;  %v1278_v52 = vor.u32 %v1277_v5, %v1273_v6  ;;  %v4501_v6 = vld [vmem:[%s4737_s12 + $0xc0] sm:$0xe]  ;;  %v4616_v5 = vor.u32 %v4615_v34, %v4995_v44 }
 0x180   : > { %v2769_v0 = vpop.f32.mrf.mxu3  ;;  %v2681_v51 = vadd.f32 %v2680_v24, %v5203_v27  ;;  %v940_v41 = vsel %vm895_vm2, %v938_v14, %v939_v49  ;;  %v1103_v15 = vpack.c.b16 %v1087_v26, %v1087_v26  ;;  %v4447_v26 = vld [vmem:[%s4737_s12 + $0x18] sm:$0xff]  }
 0x181   : > { %v2860_v40 = vpop.f32.mrf.mxu0  ;;  %v1283_v56 = vsel %vm638_vm0, %v1278_v52, %v1282_v60  ;;  %v941_v60 = vrot.slane %v4616_v5, 1  ;;  %v1569_v5 = vshrl.u32 %v4447_v26, 16 }
 0x182   : > { %v2770_v48 = vadd.f32 %v2769_v0, %v2681_v51 }
 0x184   : > { %v2949_v30 = vpop.f32.mrf.mxu1  ;;  %v2859_v13 = vadd.f32 %v2858_v28, %v2770_v48  ;;  %v4500_v48 = vld [vmem:[%s4737_s12 + $0xc0] sm:$0xf0] }
 0x185   : > { %v4502_v49 = vor.u32 %v4501_v6, %v4500_v48  ;;  %v4504_v48 = vld [vmem:[%s4737_s12 + $0x18] sm:$0xe] }
 0x186   : > { %v5410_v1 = vadd.f32 %v2947_v36, %v2859_v13  ;;  %v1404_v36 = vsel %vm895_vm2, %v1402_v61, %v1403_v18 }
 0x187   : > { %v2682_v27 = vpop.f32.mrf.mxu2  ;;  %v1405_v44 = vrot.slane %v4502_v49, 1  ;;  %v4617_v49 = vld [vmem:[%s4737_s12 + $0x24] sm:$0xf0] }
 0x188   : > { %v2771_v47 = vpop.f32.mrf.mxu3  ;;  %v2683_v58 = vadd.f32 %v2682_v27, %v5213_v7  ;;  %v1287_v7 = vshll.u32 %v4446_v55, 16 }
 0x189   : > { %v2863_v28 = vpop.f32.mrf.mxu0 }
 0x18a   : > { %v2772_v37 = vadd.f32 %v2771_v47, %v2683_v58  ;;  %v1289_v13 = vrot.slane %v1287_v7, 1  ;;  %v1406_v58 = vrot.slane %v1103_v15, 1  ;;  %v1571_v7 = vshll.u32 %v4447_v26, 16 }
 0x18c   : > { %v2952_v31 = vpop.f32.mrf.mxu1  ;;  %v2861_v57 = vadd.f32 %v2860_v40, %v2772_v37  ;;  %2724 = vmatmul.bf16.gmra.mxu2 %v940_v41  ;;  %2902 = vmatmul.bf16.gmra.mxu0 %v1283_v56  ;;  %v1290_v27 = vor.u32 %v1289_v13, %v1285_v11 }
 0x18d   : > { %2813 = vmatmul.bf16.gmra.mxu3 %v5387_v42  ;;  %v1292_v42 = vshll.u32 %v1103_v15, 16 }
 0x18e   : > { %v5420_v24 = vadd.f32 %v2949_v30, %v2861_v57  ;;  %v942_v30 = vrot.slane %v5014_v3, 1 }
 0x18f   : > { %2991 = vmatmul.bf16.gmra.mxu1 %v1404_v36  ;;  %v2685_v0 = vpop.f32.mrf.mxu2  ;;  %v1294_v47 = vrot.slane %v1292_v42, 1  ;;  %v3814_v42 = vld [vmem:[%s4737_s12 + $0x24] sm:$0xff]  }
 0x190   : > { %v2774_v51 = vpop.f32.mrf.mxu3  ;;  %v2686_v12 = vadd.f32 %v2685_v0, %v5230_v63  ;;  %v3844_v63 = vld [vmem:[%s4737_s12 + $0x20] sm:$0x1]  ;;  %v943_v37 = vsel %vm895_vm2, %v941_v60, %v942_v30 }
 0x191   : > { %v2865_v40 = vpop.f32.mrf.mxu0  ;;  %v1536_v56 = vunpack.c.l.b16 %v3844_v63  ;;  %v1295_v3 = vsel %vm638_vm0, %v1290_v27, %v1294_v47  ;;  %v3845_v63 = vld [vmem:[%s4737_s12 + $0x2c] sm:$0x1] }
 0x192   : > { %v2775_v43 = vadd.f32 %v2774_v51, %v2686_v12  ;;  %v4503_v12 = vld [vmem:[%s4737_s12 + $0x18] sm:$0xf0] }
 0x193   : > { %v4505_v13 = vor.u32 %v4504_v48, %v4503_v12  ;;  %v1581_v12 = vshrl.u32 %v3814_v42, 16 }
 0x194   : > { %v2954_v14 = vpop.f32.mrf.mxu1  ;;  %v2864_v52 = vadd.f32 %v2863_v28, %v2775_v43  ;;  %v1573_v43 = vrot.slane %v1571_v7, 1 }
 0x195   : > { %v1824_v27 = vrot.slane %v4505_v13, 1 }
 0x196   : > { %v5428_v61 = vadd.f32 %v2952_v31, %v2864_v52  ;;  %v1407_v31 = vsel %vm895_vm2, %v1405_v44, %v1406_v58 }
 0x197   : > { %v2687_v18 = vpop.f32.mrf.mxu2 }
 0x198   : > { %v2776_v53 = vpop.f32.mrf.mxu3  ;;  %v2688_v41 = vadd.f32 %v2687_v18, %v5249_v20  ;;  %v1552_v20 = vpack.c.b16 %v1536_v56, %v1536_v56 }
 0x199   : > { %v2868_v28 = vpop.f32.mrf.mxu0 }
 0x19a   : > { %v2777_v34 = vadd.f32 %v2776_v53, %v2688_v41  ;;  %v1825_v47 = vrot.slane %v1552_v20, 1  ;;  %v1537_v41 = vunpack.c.l.b16 %v3845_v63 }
 0x19c   : > { %v2957_v36 = vpop.f32.mrf.mxu1  ;;  %v2866_v57 = vadd.f32 %v2865_v40, %v2777_v34  ;;  %2729 = vmatmul.bf16.gmra.mxu2 %v943_v37  ;;  %2907 = vmatmul.bf16.gmra.mxu0 %v1295_v3  ;;  %v1576_v40 = vshll.u32 %v1552_v20, 16  ;;  %v1826_v34 = vsel %vm895_vm2, %v1824_v27, %v1825_v47  ;;  %v1553_v7 = vpack.c.b16 %v1537_v41, %v1537_v41  ;;  %v4448_v41 = vld [vmem:[%s4737_s12 + $0x30] sm:$0xff]  }
 0x19d   : > { %2818 = vmatmul.bf16.gmra.mxu3 %v4446_v55 }
 0x19e   : > { %v5435_v15 = vadd.f32 %v2954_v14, %v2866_v57  ;;  %v1574_v14 = vor.u32 %v1573_v43, %v1569_v5  ;;  %v1578_v30 = vrot.slane %v1576_v40, 1  ;;  %v1583_v57 = vshll.u32 %v3814_v42, 16 }
 0x19f   : > { %2996 = vmatmul.bf16.gmra.mxu1 %v1407_v31  ;;  %v2690_v0 = vpop.f32.mrf.mxu2 }
 0x1a0   : > { %v2779_v51 = vpop.f32.mrf.mxu3  ;;  %v2691_v6 = vadd.f32 %v2690_v0, %v5261_v21  ;;  %v1579_v58 = vsel %vm638_vm0, %v1574_v14, %v1578_v30  ;;  %v1585_v48 = vrot.slane %v1583_v57, 1  ;;  %v3846_v14 = vld [vmem:[%s4737_s12 + $0x38] sm:$0x1]  ;;  %v4507_v57 = vld [vmem:[%s4737_s12 + $0x30] sm:$0xe] }
 0x1a1   : > { %v2870_v11 = vpop.f32.mrf.mxu0 }
 0x1a2   : > { %v2780_v55 = vadd.f32 %v2779_v51, %v2691_v6  ;;  %v1588_v6 = vshll.u32 %v1553_v7, 16 }
 0x1a4   : > { %v2959_v52 = vpop.f32.mrf.mxu1  ;;  %v2869_v60 = vadd.f32 %v2868_v28, %v2780_v55  ;;  %v4320_v28 = vld [vmem:[%s5449_s11] sm:$0xff]  ;;  %v1590_v13 = vrot.slane %v1588_v6, 1 }
 0x1a5   : > { %v3818_v6 = vld [vmem:[%s4737_s12 + $0x3c] sm:$0xff]  }
 0x1a6   : > { %v5444_v18 = vadd.f32 %v2957_v36, %v2869_v60  ;;  %v4618_v36 = vld [vmem:[%s4737_s12 + $0x24] sm:$0xe] }
 0x1a7   : > { %v2692_v21 = vpop.f32.mrf.mxu2  ;;  %v4619_v40 = vor.u32 %v4618_v36, %v4617_v49 }
 0x1a8   : > { %v2781_v53 = vpop.f32.mrf.mxu3  ;;  %v2693_v44 = vadd.f32 %v2692_v21, %v5271_v25  ;;  %v1538_v21 = vunpack.c.l.b16 %v3846_v14 }
 0x1a9   : > { %v2873_v56 = vpop.f32.mrf.mxu0  ;;  %v1827_v60 = vrot.slane %v4619_v40, 1 }
 0x1aa   : > { %v2782_v37 = vadd.f32 %v2781_v53, %v2693_v44 }
 0x1ac   : > { %v2962_v3 = vpop.f32.mrf.mxu1  ;;  %v2871_v31 = vadd.f32 %v2870_v11, %v2782_v37  ;;  %3010 = vmatmul.bf16.vlgmr.msra.gmra.mxu2 %v4447_v26  ;;  %3188 = vmatmul.bf16.vlgmr.msra.gmra.mxu0 %v1826_v34  ;;  %v1586_v11 = vor.u32 %v1585_v48, %v1581_v12  ;;  %v1595_v34 = vshll.u32 %v4448_v41, 16 }
 0x1ad   : > { %3099 = vmatmul.bf16.vlgmr.msra.gmra.mxu3 %v1579_v58  ;;  %v4321_v58 = vld [vmem:[%s5449_s11 + $0x8] sm:$0xff] }
 0x1ae   : > { %v5457_v25 = vadd.f32 %v2959_v52, %v2871_v31  ;;  %v1828_v52 = vrot.slane %v1553_v7, 1  ;;  %v1591_v63 = vsel %vm638_vm0, %v1586_v11, %v1590_v13  ;;  %v4506_v31 = vld [vmem:[%s4737_s12 + $0x30] sm:$0xf0] }
 0x1af   : > { %4228 = vmatmul.msk.bf16.vlgmr.msra.gmra.mxu1 %vm3382_vm3, %v4320_v28  ;;  %v2695_v20 = vpop.f32.mrf.mxu2  ;;  %v4508_v48 = vor.u32 %v4507_v57, %v4506_v31  ;;  %v1605_v31 = vshrl.u32 %v3818_v6, 16 }
 0x1b0   : > { %v2784_v0 = vpop.f32.mrf.mxu3  ;;  %v2696_v51 = vadd.f32 %v2695_v20, %v5061_v54  ;;  %v1829_v44 = vsel %vm895_vm2, %v1827_v60, %v1828_v52  ;;  %v1593_v20 = vshrl.u32 %v4448_v41, 16  ;;  %v3847_v60 = vld [vmem:[%s4737_s12 + $0x44] sm:$0x1] }
 0x1b1   : > { %v2875_v43 = vpop.f32.mrf.mxu0  ;;  %v1830_v11 = vrot.slane %v4508_v48, 1 }
 0x1b2   : > { %v2785_v5 = vadd.f32 %v2784_v0, %v2696_v51  ;;  %v1597_v0 = vrot.slane %v1595_v34, 1 }
 0x1b4   : > { %v2964_v26 = vpop.f32.mrf.mxu1  ;;  %v2874_v55 = vadd.f32 %v2873_v56, %v2785_v5  ;;  %v4620_v5 = vld [vmem:[%s4737_s12 + $0x3c] sm:$0xf0] }
 0x1b6   : > { %v5461_v30 = vadd.f32 %v2962_v3, %v2874_v55 }
 0x1b7   : > { %v2697_v27 = vpop.f32.mrf.mxu2 }
 0x1b8   : > { %v2786_v47 = vpop.f32.mrf.mxu3  ;;  %v2698_v54 = vadd.f32 %v2697_v27, %v5077_v22  ;;  %v1554_v22 = vpack.c.b16 %v1538_v21, %v1538_v21 }
 0x1b9   : > { %v2878_v49 = vpop.f32.mrf.mxu0 }
 0x1ba   : > { %v2787_v53 = vadd.f32 %v2786_v47, %v2698_v54  ;;  %v1831_v13 = vrot.slane %v1554_v22, 1  ;;  %v1539_v54 = vunpack.c.l.b16 %v3847_v60 }
 0x1bc   : > { %v2967_v37 = vpop.f32.mrf.mxu1  ;;  %v2876_v56 = vadd.f32 %v2875_v43, %v2787_v53  ;;  %3015 = vmatmul.bf16.gmra.mxu2 %v3814_v42  ;;  %3193 = vmatmul.bf16.gmra.mxu0 %v1829_v44  ;;  %v1600_v42 = vshll.u32 %v1554_v22, 16  ;;  %v1832_v53 = vsel %vm895_vm2, %v1830_v11, %v1831_v13  ;;  %v1555_v34 = vpack.c.b16 %v1539_v54, %v1539_v54  ;;  %v4449_v54 = vld [vmem:[%s4737_s12 + $0x48] sm:$0xff]  }
 0x1bd   : > { %3104 = vmatmul.bf16.gmra.mxu3 %v1591_v63 }
 0x1be   : > { %v5469_v28 = vadd.f32 %v2964_v26, %v2876_v56  ;;  %v1598_v26 = vor.u32 %v1597_v0, %v1593_v20  ;;  %v1602_v55 = vrot.slane %v1600_v42, 1 }
 0x1bf   : > { %4229 = vmatmul.msk.bf16.gmra.mxu1 %vm3382_vm3, %v4321_v58  ;;  %v2700_v3 = vpop.f32.mrf.mxu2  ;;  %v4621_v58 = vld [vmem:[%s4737_s12 + $0x3c] sm:$0xe] }
 0x1c0   : > { %v2789_v36 = vpop.f32.mrf.mxu3  ;;  %v2701_v7 = vadd.f32 %v2700_v3, %v5091_v59  ;;  %v1603_v47 = vsel %vm638_vm0, %v1598_v26, %v1602_v55  ;;  %v4622_v42 = vor.u32 %v4621_v58, %v4620_v5  ;;  %v3848_v26 = vld [vmem:[%s4737_s12 + $0x50] sm:$0x1] }
 0x1c1   : > { %v2880_v12 = vpop.f32.mrf.mxu0 }
 0x1c2   : > { %v2790_v51 = vadd.f32 %v2789_v36, %v2701_v7  ;;  %v1612_v7 = vshll.u32 %v1555_v34, 16 }
 0x1c4   : > { %v2969_v43 = vpop.f32.mrf.mxu1  ;;  %v2879_v40 = vadd.f32 %v2878_v49, %v2790_v51  ;;  %v4322_v49 = vld [vmem:[%s5449_s11 + $0x10] sm:$0xff]  ;;  %v1614_v48 = vrot.slane %v1612_v7, 1 }
 0x1c5   : > { %v3822_v7 = vld [vmem:[%s4737_s12 + $0x54] sm:$0xff]  }
 0x1c6   : > { %v5477_v52 = vadd.f32 %v2967_v37, %v2879_v40  ;;  %v1607_v37 = vshll.u32 %v3818_v6, 16  ;;  %v1833_v40 = vrot.slane %v4622_v42, 1 }
 0x1c7   : > { %v2702_v59 = vpop.f32.mrf.mxu2 }
 0x1c8   : > { %v2791_v14 = vpop.f32.mrf.mxu3  ;;  %v2703_v27 = vadd.f32 %v2702_v59, %v5101_v29  ;;  %v1609_v57 = vrot.slane %v1607_v37, 1  ;;  %v1540_v59 = vunpack.c.l.b16 %v3848_v26  ;;  %v4510_v37 = vld [vmem:[%s4737_s12 + $0x48] sm:$0xe] }
 0x1c9   : > { %v2883_v21 = vpop.f32.mrf.mxu0 }
 0x1ca   : > { %v2792_v63 = vadd.f32 %v2791_v14, %v2703_v27 }
 0x1cc   : > { %v2972_v44 = vpop.f32.mrf.mxu1  ;;  %v2881_v56 = vadd.f32 %v2880_v12, %v2792_v63  ;;  %3020 = vmatmul.bf16.gmra.mxu2 %v4448_v41  ;;  %3198 = vmatmul.bf16.gmra.mxu0 %v1832_v53  ;;  %v1610_v12 = vor.u32 %v1609_v57, %v1605_v31  ;;  %v1619_v53 = vshll.u32 %v4449_v54, 16 }
 0x1cd   : > { %3109 = vmatmul.bf16.gmra.mxu3 %v1603_v47  ;;  %v4323_v47 = vld [vmem:[%s5449_s11 + $0x18] sm:$0xff] }
 0x1ce   : > { %v5485_v22 = vadd.f32 %v2969_v43, %v2881_v56  ;;  %v1834_v43 = vrot.slane %v1555_v34, 1  ;;  %v1615_v60 = vsel %vm638_vm0, %v1610_v12, %v1614_v48  ;;  %v4509_v56 = vld [vmem:[%s4737_s12 + $0x48] sm:$0xf0] }
 0x1cf   : > { %4230 = vmatmul.msk.bf16.gmra.mxu1 %vm3382_vm3, %v4322_v49  ;;  %v2705_v29 = vpop.f32.mrf.mxu2  ;;  %v4511_v57 = vor.u32 %v4510_v37, %v4509_v56  ;;  %v1629_v56 = vshrl.u32 %v3822_v7, 16 }
 0x1d0   : > { %v2794_v3 = vpop.f32.mrf.mxu3  ;;  %v2706_v36 = vadd.f32 %v2705_v29, %v5120_v4  ;;  %v1835_v27 = vsel %vm895_vm2, %v1833_v40, %v1834_v43  ;;  %v1617_v29 = vshrl.u32 %v4449_v54, 16  ;;  %v3849_v40 = vld [vmem:[%s4737_s12 + $0x5c] sm:$0x1] }
 0x1d1   : > { %v2885_v0 = vpop.f32.mrf.mxu0  ;;  %v1836_v12 = vrot.slane %v4511_v57, 1 }
 0x1d2   : > { %v2795_v20 = vadd.f32 %v2794_v3, %v2706_v36  ;;  %v1621_v3 = vrot.slane %v1619_v53, 1 }
 0x1d4   : > { %v2974_v41 = vpop.f32.mrf.mxu1  ;;  %v2884_v51 = vadd.f32 %v2883_v21, %v2795_v20  ;;  %v4623_v20 = vld [vmem:[%s4737_s12 + $0x54] sm:$0xf0] }
 0x1d6   : > { %v5489_v55 = vadd.f32 %v2972_v44, %v2884_v51 }
 0x1d7   : > { %v2707_v11 = vpop.f32.mrf.mxu2 }
 0x1d8   : > { %v2796_v13 = vpop.f32.mrf.mxu3  ;;  %v2708_v4 = vadd.f32 %v2707_v11, %v5136_v45  ;;  %v1556_v45 = vpack.c.b16 %v1540_v59, %v1540_v59 }
 0x1d9   : > { %v2888_v5 = vpop.f32.mrf.mxu0 }
 0x1da   : > { %v2797_v14 = vadd.f32 %v2796_v13, %v2708_v4  ;;  %v1837_v48 = vrot.slane %v1556_v45, 1  ;;  %v1541_v4 = vunpack.c.l.b16 %v3849_v40 }
 0x1dc   : > { %v2977_v63 = vpop.f32.mrf.mxu1  ;;  %v2886_v21 = vadd.f32 %v2885_v0, %v2797_v14  ;;  %3025 = vmatmul.bf16.gmra.mxu2 %v3818_v6  ;;  %3203 = vmatmul.bf16.gmra.mxu0 %v1835_v27  ;;  %v1624_v6 = vshll.u32 %v1556_v45, 16  ;;  %v1838_v14 = vsel %vm895_vm2, %v1836_v12, %v1837_v48  ;;  %v1557_v53 = vpack.c.b16 %v1541_v4, %v1541_v4  ;;  %v4450_v4 = vld [vmem:[%s4737_s12 + $0x60] sm:$0xff]  }
 0x1dd   : > { %3114 = vmatmul.bf16.gmra.mxu3 %v1615_v60 }
 0x1de   : > { %v5497_v49 = vadd.f32 %v2974_v41, %v2886_v21  ;;  %v1622_v41 = vor.u32 %v1621_v3, %v1617_v29  ;;  %v1626_v51 = vrot.slane %v1624_v6, 1 }
 0x1df   : > { %4231 = vmatmul.msk.bf16.gmra.mxu1 %vm3382_vm3, %v4323_v47  ;;  %v2710_v44 = vpop.f32.mrf.mxu2  ;;  %v4624_v47 = vld [vmem:[%s4737_s12 + $0x54] sm:$0xe] }
 0x1e0   : > { %v2799_v58 = vpop.f32.mrf.mxu3  ;;  %v2711_v34 = vadd.f32 %v2710_v44, %v5150_v8  ;;  %v1627_v13 = vsel %vm638_vm0, %v1622_v41, %v1626_v51  ;;  %v4625_v6 = vor.u32 %v4624_v47, %v4623_v20  ;;  %v3850_v41 = vld [vmem:[%s4737_s12 + $0x68] sm:$0x1] }
 0x1e1   : > { %v2890_v31 = vpop.f32.mrf.mxu0 }
 0x1e2   : > { %v2800_v36 = vadd.f32 %v2799_v58, %v2711_v34  ;;  %v1636_v34 = vshll.u32 %v1557_v53, 16 }
 0x1e4   : > { %v2979_v0 = vpop.f32.mrf.mxu1  ;;  %v2889_v42 = vadd.f32 %v2888_v5, %v2800_v36  ;;  %v4324_v5 = vld [vmem:[%s5449_s11 + $0x20] sm:$0xff]  ;;  %v1638_v57 = vrot.slane %v1636_v34, 1  ;;  %v3826_v34 = vld [vmem:[%s4737_s12 + $0x6c] sm:$0xff]  }
 0x1e6   : > { %v5505_v43 = vadd.f32 %v2977_v63, %v2889_v42  ;;  %v1631_v63 = vshll.u32 %v3822_v7, 16  ;;  %v1839_v42 = vrot.slane %v4625_v6, 1 }
 0x1e7   : > { %v2712_v8 = vpop.f32.mrf.mxu2 }
 0x1e8   : > { %v2801_v26 = vpop.f32.mrf.mxu3  ;;  %v2713_v11 = vadd.f32 %v2712_v8, %v5160_v62  ;;  %v1633_v37 = vrot.slane %v1631_v63, 1  ;;  %v1542_v8 = vunpack.c.l.b16 %v3850_v41  ;;  %v4513_v63 = vld [vmem:[%s4737_s12 + $0x60] sm:$0xe] }
 0x1e9   : > { %v2893_v59 = vpop.f32.mrf.mxu0 }
 0x1ea   : > { %v2802_v60 = vadd.f32 %v2801_v26, %v2713_v11 }
 0x1ec   : > { %v2982_v27 = vpop.f32.mrf.mxu1  ;;  %v2891_v21 = vadd.f32 %v2890_v31, %v2802_v60  ;;  %3030 = vmatmul.bf16.gmra.mxu2 %v4449_v54  ;;  %3208 = vmatmul.bf16.gmra.mxu0 %v1838_v14  ;;  %v1634_v31 = vor.u32 %v1633_v37, %v1629_v56  ;;  %v1643_v14 = vshll.u32 %v4450_v4, 16 }
 0x1ed   : > { %3119 = vmatmul.bf16.gmra.mxu3 %v1627_v13  ;;  %v4325_v13 = vld [vmem:[%s5449_s11 + $0x28] sm:$0xff] }
 0x1ee   : > { %v5513_v45 = vadd.f32 %v2979_v0, %v2891_v21  ;;  %v1840_v0 = vrot.slane %v1557_v53, 1  ;;  %v1639_v40 = vsel %vm638_vm0, %v1634_v31, %v1638_v57  ;;  %v4512_v21 = vld [vmem:[%s4737_s12 + $0x60] sm:$0xf0] }
 0x1ef   : > { %4232 = vmatmul.msk.bf16.gmra.mxu1 %vm3382_vm3, %v4324_v5  ;;  %v2715_v62 = vpop.f32.mrf.mxu2  ;;  %v4514_v37 = vor.u32 %v4513_v63, %v4512_v21  ;;  %v1653_v63 = vshrl.u32 %v3826_v34, 16 }
 0x1f0   : > { %v2804_v44 = vpop.f32.mrf.mxu3  ;;  %v2716_v58 = vadd.f32 %v2715_v62, %v5179_v32  ;;  %v1841_v11 = vsel %vm895_vm2, %v1839_v42, %v1840_v0  ;;  %v1641_v62 = vshrl.u32 %v4450_v4, 16  ;;  %v3851_v42 = vld [vmem:[%s4737_s12 + $0x74] sm:$0x1] }
 0x1f1   : > { %v2895_v3 = vpop.f32.mrf.mxu0  ;;  %v1842_v31 = vrot.slane %v4514_v37, 1 }
 0x1f2   : > { %v2805_v29 = vadd.f32 %v2804_v44, %v2716_v58  ;;  %v1645_v44 = vrot.slane %v1643_v14, 1 }
 0x1f4   : > { %v2984_v54 = vpop.f32.mrf.mxu1  ;;  %v2894_v36 = vadd.f32 %v2893_v59, %v2805_v29  ;;  %v4626_v29 = vld [vmem:[%s4737_s12 + $0x6c] sm:$0xf0] }
 0x1f6   : > { %v5517_v51 = vadd.f32 %v2982_v27, %v2894_v36 }
 0x1f7   : > { %v2717_v12 = vpop.f32.mrf.mxu2 }
 0x1f8   : > { %v2806_v48 = vpop.f32.mrf.mxu3  ;;  %v2718_v32 = vadd.f32 %v2717_v12, %v5195_v16  ;;  %v1558_v16 = vpack.c.b16 %v1542_v8, %v1542_v8 }
 0x1f9   : > { %v2898_v20 = vpop.f32.mrf.mxu0 }
 0x1fa   : > { %v2807_v26 = vadd.f32 %v2806_v48, %v2718_v32  ;;  %v1843_v57 = vrot.slane %v1558_v16, 1  ;;  %v1543_v32 = vunpack.c.l.b16 %v3851_v42 }
 0x1fc   : > { %v2987_v60 = vpop.f32.mrf.mxu1  ;;  %v2896_v59 = vadd.f32 %v2895_v3, %v2807_v26  ;;  %3035 = vmatmul.bf16.gmra.mxu2 %v3822_v7  ;;  %3213 = vmatmul.bf16.gmra.mxu0 %v1841_v11  ;;  %v1648_v7 = vshll.u32 %v1558_v16, 16  ;;  %v1844_v26 = vsel %vm895_vm2, %v1842_v31, %v1843_v57  ;;  %v1559_v14 = vpack.c.b16 %v1543_v32, %v1543_v32 }
 0x1fd   : > { %3124 = vmatmul.bf16.gmra.mxu3 %v1639_v40 }
 0x1fe   : > { %v5525_v5 = vadd.f32 %v2984_v54, %v2896_v59  ;;  %v1646_v54 = vor.u32 %v1645_v44, %v1641_v62  ;;  %v1650_v36 = vrot.slane %v1648_v7, 1  ;;  %v1660_v62 = vshll.u32 %v1559_v14, 16 }
 0x1ff   : > { %4233 = vmatmul.msk.bf16.gmra.mxu1 %vm3382_vm3, %v4325_v13  ;;  %v2720_v27 = vpop.f32.mrf.mxu2  ;;  %v4627_v13 = vld [vmem:[%s4737_s12 + $0x6c] sm:$0xe] }
 0x200   : > { %v2809_v47 = vpop.f32.mrf.mxu3  ;;  %v2721_v53 = vadd.f32 %v2720_v27, %v5209_v38  ;;  %v1651_v48 = vsel %vm638_vm0, %v1646_v54, %v1650_v36  ;;  %v3852_v36 = vld [vmem:[%s4737_s12 + $0x80] sm:$0x1] }
 0x201   : > { %v2900_v56 = vpop.f32.mrf.mxu0 }
 0x202   : > { %v2810_v58 = vadd.f32 %v2809_v47, %v2721_v53  ;;  %v5722_v47 = vld [vmem:[#allocation2_spill] sm:$0xff] }
 0x204   : > { %v2989_v3 = vpop.f32.mrf.mxu1  ;;  %v2899_v6 = vadd.f32 %v2898_v20, %v2810_v58  ;;  %v4326_v20 = vld [vmem:[%s5449_s11 + $0x30] sm:$0xff]  ;;  %v4628_v58 = vor.u32 %v4627_v13, %v4626_v29 }
 0x206   : > { %v5533_v0 = vadd.f32 %v2987_v60, %v2899_v6  ;;  %v1655_v60 = vshll.u32 %v3826_v34, 16  ;;  %v1662_v6 = vrot.slane %v1660_v62, 1  ;;  %v1845_v54 = vrot.slane %v4628_v58, 1 }
 0x207   : > { %v2722_v38 = vpop.f32.mrf.mxu2 }
 0x208   : > { %v2811_v41 = vpop.f32.mrf.mxu3  ;;  %v2723_v12 = vadd.f32 %v2722_v38, %v5219_v46  ;;  %v1657_v53 = vrot.slane %v1655_v60, 1  ;;  %v5723_v38 = vld [vmem:[#allocation3_spill] sm:$0xff] }
 0x209   : > { %v2903_v8 = vpop.f32.mrf.mxu0 }
 0x20a   : > { %v2812_v40 = vadd.f32 %v2811_v41, %v2723_v12  ;;  %v1658_v37 = vor.u32 %v1657_v53, %v1653_v63 }
 0x20c   : > { %v2992_v11 = vpop.f32.mrf.mxu1  ;;  %v2901_v59 = vadd.f32 %v2900_v56, %v2812_v40  ;;  %3040 = vmatmul.bf16.gmra.mxu2 %v4450_v4  ;;  %3218 = vmatmul.bf16.gmra.mxu0 %v1844_v26  ;;  %v1663_v12 = vsel %vm638_vm0, %v1658_v37, %v1662_v6  ;;  %v4451_v26 = vld [vmem:[%s4737_s12 + $0x78] sm:$0xff]   ;;  %v4629_v37 = vld [vmem:[%s4737_s12 + $0x84] sm:$0xf0] }
 0x20d   : > { %3129 = vmatmul.bf16.gmra.mxu3 %v1651_v48  ;;  %v1544_v48 = vunpack.c.l.b16 %v3852_v36  ;;  %v1665_v53 = vshrl.u32 %v4451_v26, 16 }
 0x20e   : > { %v5541_v16 = vadd.f32 %v2989_v3, %v2901_v59  ;;  %v1846_v3 = vrot.slane %v1559_v14, 1 }
 0x20f   : > { %4234 = vmatmul.msk.bf16.gmra.mxu1 %vm3382_vm3, %v4326_v20  ;;  %v2725_v46 = vpop.f32.mrf.mxu2  ;;  %v1560_v59 = vpack.c.b16 %v1544_v48, %v1544_v48  ;;  %v5725_v48 = vld [vmem:[#allocation5_spill] sm:$0xff] }
 0x210   : > { %v2814_v27 = vpop.f32.mrf.mxu3  ;;  %v2726_v21 = vadd.f32 %v2725_v46, %v5722_v47  ;;  %v1847_v40 = vsel %vm895_vm2, %v1845_v54, %v1846_v3  ;;  %v4516_v47 = vld [vmem:[%s4737_s12 + $0x78] sm:$0xe] }
 0x211   : > { %v2905_v7 = vpop.f32.mrf.mxu0 }
 0x212   : > { %v2815_v44 = vadd.f32 %v2814_v27, %v2726_v21  ;;  %v4515_v27 = vld [vmem:[%s4737_s12 + $0x78] sm:$0xf0]  ;;  %v5724_v21 = vld [vmem:[#allocation4_spill] sm:$0xff] }
 0x213   : > { %v4517_v58 = vor.u32 %v4516_v47, %v4515_v27  ;;  %v4630_v27 = vld [vmem:[%s4737_s12 + $0x84] sm:$0xe] }
 0x214   : > { %v2994_v4 = vpop.f32.mrf.mxu1  ;;  %v2904_v56 = vadd.f32 %v2903_v8, %v2815_v44  ;;  %v4327_v8 = vld [vmem:[%s5449_s11 + $0x38] sm:$0xff] }
 0x215   : > { %v1848_v36 = vrot.slane %v4517_v58, 1 }
 0x216   : > { %v5545_v31 = vadd.f32 %v2992_v11, %v2904_v56  ;;  %v1667_v11 = vshll.u32 %v4451_v26, 16  ;;  %v3830_v56 = vld [vmem:[%s4737_s12 + $0x84] sm:$0xff]  }
 0x217   : > { %v2727_v57 = vpop.f32.mrf.mxu2 }
 0x218   : > { %v2816_v42 = vpop.f32.mrf.mxu3  ;;  %v2728_v41 = vadd.f32 %v2727_v57, %v5723_v38  ;;  %v1669_v62 = vrot.slane %v1667_v11, 1  ;;  %v1849_v57 = vrot.slane %v1560_v59, 1 }
 0x219   : > { %v2908_v29 = vpop.f32.mrf.mxu0 }
 0x21a   : > { %v2817_v32 = vadd.f32 %v2816_v42, %v2728_v41  ;;  %v3853_v42 = vld [vmem:[%s4737_s12 + $0x8c] sm:$0x1] }
 0x21c   : > { %v2997_v20 = vpop.f32.mrf.mxu1  ;;  %v2906_v13 = vadd.f32 %v2905_v7, %v2817_v32  ;;  %3045 = vmatmul.bf16.gmra.mxu2 %v3826_v34  ;;  %3223 = vmatmul.bf16.gmra.mxu0 %v1847_v40  ;;  %v1672_v34 = vshll.u32 %v1560_v59, 16 }
 0x21d   : > { %3134 = vmatmul.bf16.gmra.mxu3 %v1663_v12 }
 0x21e   : > { %v5553_v60 = vadd.f32 %v2994_v4, %v2906_v13  ;;  %v1670_v4 = vor.u32 %v1669_v62, %v1665_v53  ;;  %v1674_v3 = vrot.slane %v1672_v34, 1  ;;  %v1677_v34 = vshrl.u32 %v3830_v56, 16 }
 0x21f   : > { %4235 = vmatmul.msk.bf16.gmra.mxu1 %vm3382_vm3, %v4327_v8  ;;  %v2730_v14 = vpop.f32.mrf.mxu2  ;;  %v1545_v8 = vunpack.c.l.b16 %v3853_v42 }
 0x220   : > { %v2819_v46 = vpop.f32.mrf.mxu3  ;;  %v2731_v63 = vadd.f32 %v2730_v14, %v5724_v21  ;;  %v1675_v40 = vsel %vm638_vm0, %v1670_v4, %v1674_v3  ;;  %v1850_v14 = vsel %vm895_vm2, %v1848_v36, %v1849_v57 }
 0x221   : > { %v2910_v7 = vpop.f32.mrf.mxu0  ;;  %v1561_v59 = vpack.c.b16 %v1545_v8, %v1545_v8 }
 0x222   : > { %v2820_v44 = vadd.f32 %v2819_v46, %v2731_v63 }
 0x223   : > { %v1684_v58 = vshll.u32 %v1561_v59, 16 }
 0x224   : > { %v2999_v6 = vpop.f32.mrf.mxu1  ;;  %v2909_v54 = vadd.f32 %v2908_v29, %v2820_v44  ;;  %v4328_v29 = vld [vmem:[%s5449_s11 + $0x40] sm:$0xff] }
 0x225   : > { %v1686_v57 = vrot.slane %v1684_v58, 1 }
 0x226   : > { %v5561_v38 = vadd.f32 %v2997_v20, %v2909_v54  ;;  %v1679_v20 = vshll.u32 %v3830_v56, 16 }
 0x227   : > { %v2732_v41 = vpop.f32.mrf.mxu2 }
 0x228   : > { %v2821_v12 = vpop.f32.mrf.mxu3  ;;  %v2733_v32 = vadd.f32 %v2732_v41, %v5725_v48  ;;  %v1681_v44 = vrot.slane %v1679_v20, 1  ;;  %v1852_v41 = vrot.slane %v1561_v59, 1 }
 0x229   : > { %v3189_v11 = vpop.f32.mrf.mxu0 }
 0x22a   : > { %v2822_v13 = vadd.f32 %v2821_v12, %v2733_v32  ;;  %v1682_v36 = vor.u32 %v1681_v44, %v1677_v34  ;;  %v3854_v12 = vld [vmem:[%s4737_s12 + $0x98] sm:$0x1]  ;;  %v4519_v34 = vld [vmem:[%s4737_s12 + $0x90] sm:$0xe] }
 0x22b   : > { %v1546_v8 = vunpack.c.l.b16 %v3854_v12 }
 0x22c   : > { %v3444_v46 = vpop.f32.mrf.mxu1  ;;  %v2911_v47 = vadd.f32 %v2910_v7, %v2822_v13  ;;  %3050 = vmatmul.bf16.gmra.mxu2 %v4451_v26  ;;  %3228 = vmatmul.bf16.gmra.mxu0 %v1850_v14  ;;  %v4631_v26 = vor.u32 %v4630_v27, %v4629_v37 }
 0x22d   : > { %3139 = vmatmul.bf16.gmra.mxu3 %v1675_v40  ;;  %v1687_v40 = vsel %vm638_vm0, %v1682_v36, %v1686_v57  ;;  %v5591_v57 = vld [vmem:[%s4737_s12 + $0x9c] sm:$0xff]  }
 0x22e   : > { %v5569_v21 = vadd.f32 %v2999_v6, %v2911_v47  ;;  %v1851_v6 = vrot.slane %v4631_v26, 1 }
 0x22f   : > { %4236 = vmatmul.msk.bf16.gmra.mxu1 %vm3382_vm3, %v4328_v29  ;;  %v3011_v63 = vpop.f32.mrf.mxu2  ;;  %v4329_v29 = vld [vmem:[%s5449_s11 + $0x48] sm:$0xff] }
 0x230   : > { %v3100_v53 = vpop.f32.mrf.mxu3  ;;  %v3012_v62 = vadd.f32 %v3011_v63, %v5302_v23  ;;  %v1853_v14 = vsel %vm895_vm2, %v1851_v6, %v1852_v41 }
 0x231   : > { %v3191_v7 = vpop.f32.mrf.mxu0 }
 0x232   : > { %v3101_v54 = vadd.f32 %v3100_v53, %v3012_v62  ;;  %v4518_v62 = vld [vmem:[%s4737_s12 + $0x90] sm:$0xf0] }
 0x233   : > { %v4520_v36 = vor.u32 %v4519_v34, %v4518_v62 }
 0x234   : > { %v3446_v4 = vpop.f32.mrf.mxu1  ;;  %v3190_v3 = vadd.f32 %v3189_v11, %v3101_v54 }
 0x236   : > { %v3524_v42 = vadd.f32 %v3444_v46, %v3190_v3  ;;  %v4452_v46 = vld [vmem:[%s4737_s12 + $0x90] sm:$0xff]  }
 0x237   : > { %v3013_v23 = vpop.f32.mrf.mxu2  ;;  %v1691_v20 = vshll.u32 %v4452_v46, 16  ;;  %v1689_v54 = vshrl.u32 %v4452_v46, 16 }
 0x238   : > { %v3102_v48 = vpop.f32.mrf.mxu3  ;;  %v3556_v37 = vmax.f32 %v3524_v42, 0.0  ;;  %v3014_v32 = vadd.f32 %v3013_v23, %v5313_v10  ;;  %v1562_v10 = vpack.c.b16 %v1546_v8, %v1546_v8 }
 0x239   : > { %v3194_v11 = vpop.f32.mrf.mxu0 }
 0x23a   : > { %3588 = vst [vmem:[%s5577_s16] sm:$0xff] %v3556_v37  ;;  %v3103_v13 = vadd.f32 %v3102_v48, %v3014_v32  ;;  %v1855_v48 = vrot.slane %v1562_v10, 1  ;;  %v3855_v37 = vld [vmem:[%s4737_s12 + $0xa4] sm:$0x1] }
 0x23c   : > { %v3449_v27 = vpop.f32.mrf.mxu1  ;;  %v3192_v47 = vadd.f32 %v3191_v7, %v3103_v13  ;;  %3055 = vmatmul.bf16.gmra.mxu2 %v3830_v56  ;;  %3233 = vmatmul.bf16.gmra.mxu0 %v1853_v14  ;;  %v1693_v56 = vrot.slane %v1691_v20, 1  ;;  %v1696_v7 = vshll.u32 %v1562_v10, 16  ;;  %v1703_v10 = vshll.u32 %v5591_v57, 16 }
 0x23d   : > { %3144 = vmatmul.bf16.gmra.mxu3 %v1687_v40 }
 0x23e   : > { %v3525_v59 = vadd.f32 %v3446_v4, %v3192_v47  ;;  %v4632_v4 = vld [vmem:[%s4737_s12 + $0x9c] sm:$0xf0]  ;;  %v1694_v41 = vor.u32 %v1693_v56, %v1689_v54  ;;  %v1698_v12 = vrot.slane %v1696_v7, 1  ;;  %v1701_v56 = vshrl.u32 %v5591_v57, 16 }
 0x23f   : > { %4237 = vmatmul.msk.bf16.gmra.mxu1 %vm3382_vm3, %v4329_v29  ;;  %v3016_v63 = vpop.f32.mrf.mxu2  ;;  %v1547_v29 = vunpack.c.l.b16 %v3855_v37  ;;  %v1705_v7 = vrot.slane %v1703_v10, 1  ;;  %v3856_v37 = vld [vmem:[%s4737_s12 + $0xb0] sm:$0x1] }
 0x240   : > { %v3105_v53 = vpop.f32.mrf.mxu3  ;;  %v3557_v44 = vmax.f32 %v3525_v59, 0.0  ;;  %v3017_v58 = vadd.f32 %v3016_v63, %v5318_v19  ;;  %v1854_v19 = vrot.slane %v4520_v36, 1  ;;  %v1699_v14 = vsel %vm638_vm0, %v1694_v41, %v1698_v12  ;;  %v4330_v59 = vld [vmem:[%s5449_s11 + $0x50] sm:$0xff] }
 0x241   : > { %v3196_v3 = vpop.f32.mrf.mxu0  ;;  %v1563_v62 = vpack.c.b16 %v1547_v29, %v1547_v29 }
 0x242   : > { %3589 = vst [vmem:[%s5577_s16 + $0x8] sm:$0xff] %v3557_v44  ;;  %v3106_v26 = vadd.f32 %v3105_v53, %v3017_v58 }
 0x244   : > { %v3451_v42 = vpop.f32.mrf.mxu1  ;;  %v3195_v6 = vadd.f32 %v3194_v11, %v3106_v26  ;;  %v1856_v11 = vsel %vm895_vm2, %v1854_v19, %v1855_v48  ;;  %v1708_v26 = vshll.u32 %v1563_v62, 16  ;;  %v1858_v48 = vrot.slane %v1563_v62, 1 }
 0x246   : > { %v3526_v23 = vadd.f32 %v3449_v27, %v3195_v6  ;;  %v4633_v27 = vld [vmem:[%s4737_s12 + $0x9c] sm:$0xe]  ;;  %v1710_v12 = vrot.slane %v1708_v26, 1 }
 0x247   : > { %v3018_v32 = vpop.f32.mrf.mxu2  ;;  %v4634_v36 = vor.u32 %v4633_v27, %v4632_v4 }
 0x248   : > { %v3107_v40 = vpop.f32.mrf.mxu3  ;;  %v3558_v8 = vmax.f32 %v3526_v23, 0.0  ;;  %v3019_v13 = vadd.f32 %v3018_v32, %v5334_v35 }
 0x249   : > { %v3199_v20 = vpop.f32.mrf.mxu0  ;;  %v1857_v19 = vrot.slane %v4634_v36, 1  ;;  %v4635_v36 = vld [vmem:[%s4737_s12 + $0xb4] sm:$0xf0] }
 0x24a   : > { %3590 = vst [vmem:[%s5577_s16 + $0x10] sm:$0xff] %v3558_v8  ;;  %v3108_v47 = vadd.f32 %v3107_v40, %v3019_v13 }
 0x24c   : > { %v3454_v63 = vpop.f32.mrf.mxu1  ;;  %v3197_v53 = vadd.f32 %v3196_v3, %v3108_v47  ;;  %3060 = vmatmul.bf16.gmra.mxu2 %v4452_v46  ;;  %3238 = vmatmul.bf16.gmra.mxu0 %v1856_v11  ;;  %v1859_v47 = vsel %vm895_vm2, %v1857_v19, %v1858_v48  ;;  %v4453_v11 = vld [vmem:[%s4737_s12 + $0xa8] sm:$0xff]   ;;  %v3857_v48 = vld [vmem:[%s4737_s12 + $0xbc] sm:$0x1] }
 0x24d   : > { %3149 = vmatmul.bf16.gmra.mxu3 %v1699_v14  ;;  %v1548_v14 = vunpack.c.l.b16 %v3856_v37 }
 0x24e   : > { %v3527_v35 = vadd.f32 %v3451_v42, %v3197_v53  ;;  %v1706_v42 = vor.u32 %v1705_v7, %v1701_v56 }
 0x24f   : > { %4238 = vmatmul.msk.bf16.gmra.mxu1 %vm3382_vm3, %v4330_v59  ;;  %v3021_v34 = vpop.f32.mrf.mxu2  ;;  %v1564_v27 = vpack.c.b16 %v1548_v14, %v1548_v14 }
 0x250   : > { %v3110_v44 = vpop.f32.mrf.mxu3  ;;  %v3559_v58 = vmax.f32 %v3527_v35, 0.0  ;;  %v3022_v54 = vadd.f32 %v3021_v34, %v5348_v50  ;;  %v1711_v13 = vsel %vm638_vm0, %v1706_v42, %v1710_v12  ;;  %v4521_v35 = vld [vmem:[%s4737_s12 + $0xa8] sm:$0xf0]  ;;  %v4522_v34 = vld [vmem:[%s4737_s12 + $0xa8] sm:$0xe] }
 0x251   : > { %v3201_v3 = vpop.f32.mrf.mxu0  ;;  %v1720_v56 = vshll.u32 %v1564_v27, 16  ;;  %v1861_v19 = vrot.slane %v1564_v27, 1 }
 0x252   : > { %3591 = vst [vmem:[%s5577_s16 + $0x18] sm:$0xff] %v3559_v58  ;;  %v3111_v46 = vadd.f32 %v3110_v44, %v3022_v54  ;;  %v1713_v54 = vshrl.u32 %v4453_v11, 16 }
 0x253   : > { %v1722_v12 = vrot.slane %v1720_v56, 1 }
 0x254   : > { %v3456_v6 = vpop.f32.mrf.mxu1  ;;  %v3200_v41 = vadd.f32 %v3199_v20, %v3111_v46  ;;  %v4331_v20 = vld [vmem:[%s5449_s11 + $0x58] sm:$0xff]  ;;  %v4523_v46 = vor.u32 %v4522_v34, %v4521_v35 }
 0x256   : > { %v3528_v23 = vadd.f32 %v3454_v63, %v3200_v41 }
 0x257   : > { %v3023_v50 = vpop.f32.mrf.mxu2 }
 0x258   : > { %v3112_v32 = vpop.f32.mrf.mxu3  ;;  %v3560_v40 = vmax.f32 %v3528_v23, 0.0  ;;  %v3024_v8 = vadd.f32 %v3023_v50, %v5359_v2  ;;  %v1715_v2 = vshll.u32 %v4453_v11, 16 }
 0x259   : > { %v3204_v29 = vpop.f32.mrf.mxu0 }
 0x25a   : > { %3592 = vst [vmem:[%s5577_s16 + $0x20] sm:$0xff] %v3560_v40  ;;  %v3113_v4 = vadd.f32 %v3112_v32, %v3024_v8 }
 0x25c   : > { %v3459_v59 = vpop.f32.mrf.mxu1  ;;  %v3202_v63 = vadd.f32 %v3201_v3, %v3113_v4  ;;  %3065 = vmatmul.bf16.gmra.mxu2 %v5591_v57  ;;  %3243 = vmatmul.bf16.gmra.mxu0 %v1859_v47  ;;  %v1717_v57 = vrot.slane %v1715_v2, 1  ;;  %v5620_v3 = vld [vmem:[%s4737_s12 + $0xb4] sm:$0xff]   ;;  %v4332_v47 = vld [vmem:[%s5449_s11 + $0x60] sm:$0xff] }
 0x25d   : > { %3154 = vmatmul.bf16.gmra.mxu3 %v1711_v13  ;;  %v1549_v13 = vunpack.c.l.b16 %v3857_v48  ;;  %v1727_v2 = vshll.u32 %v5620_v3, 16  ;;  %v1725_v34 = vshrl.u32 %v5620_v3, 16 }
 0x25e   : > { %v3529_v53 = vadd.f32 %v3456_v6, %v3202_v63  ;;  %v1718_v42 = vor.u32 %v1717_v57, %v1713_v54 }
 0x25f   : > { %4239 = vmatmul.msk.bf16.gmra.mxu1 %vm3382_vm3, %v4331_v20  ;;  %v3026_v10 = vpop.f32.mrf.mxu2  ;;  %v1565_v27 = vpack.c.b16 %v1549_v13, %v1549_v13 }
 0x260   : > { %v3115_v62 = vpop.f32.mrf.mxu3  ;;  %v3561_v44 = vmax.f32 %v3529_v53, 0.0  ;;  %v3027_v58 = vadd.f32 %v3026_v10, %v5364_v33  ;;  %v1860_v33 = vrot.slane %v4523_v46, 1  ;;  %v1723_v8 = vsel %vm638_vm0, %v1718_v42, %v1722_v12  ;;  %v3858_v12 = vld [vmem:[%s4737_s12 + $0xc8] sm:$0x1] }
 0x261   : > { %v3206_v26 = vpop.f32.mrf.mxu0  ;;  %v1864_v42 = vrot.slane %v1565_v27, 1 }
 0x262   : > { %3593 = vst [vmem:[%s5577_s16 + $0x28] sm:$0xff] %v3561_v44  ;;  %v3116_v7 = vadd.f32 %v3115_v62, %v3027_v58  ;;  %v1729_v44 = vrot.slane %v1727_v2, 1  ;;  %v1732_v58 = vshll.u32 %v1565_v27, 16 }
 0x264   : > { %v3461_v6 = vpop.f32.mrf.mxu1  ;;  %v3205_v41 = vadd.f32 %v3204_v29, %v3116_v7  ;;  %v1862_v29 = vsel %vm895_vm2, %v1860_v33, %v1861_v19  ;;  %v1734_v46 = vrot.slane %v1732_v58, 1 }
 0x266   : > { %v3530_v23 = vadd.f32 %v3459_v59, %v3205_v41  ;;  %v4636_v59 = vld [vmem:[%s4737_s12 + $0xb4] sm:$0xe] }
 0x267   : > { %v3028_v37 = vpop.f32.mrf.mxu2  ;;  %v4637_v57 = vor.u32 %v4636_v59, %v4635_v36  ;;  %v4524_v59 = vld [vmem:[%s4737_s12 + $0xc0] sm:$0xf0] }
 0x268   : > { %v3117_v50 = vpop.f32.mrf.mxu3  ;;  %v3562_v32 = vmax.f32 %v3530_v23, 0.0  ;;  %v3029_v40 = vadd.f32 %v3028_v37, %v5380_v9  ;;  %v1550_v37 = vunpack.c.l.b16 %v3858_v12 }
 0x269   : > { %v3209_v4 = vpop.f32.mrf.mxu0  ;;  %v1863_v41 = vrot.slane %v4637_v57, 1 }
 0x26a   : > { %3594 = vst [vmem:[%s5577_s16 + $0x30] sm:$0xff] %v3562_v32  ;;  %v3118_v14 = vadd.f32 %v3117_v50, %v3029_v40  ;;  %v4333_v40 = vld [vmem:[%s5449_s11 + $0x68] sm:$0xff] }
 0x26b   : > { %v1865_v32 = vsel %vm895_vm2, %v1863_v41, %v1864_v42 }
 0x26c   : > { %v3464_v20 = vpop.f32.mrf.mxu1  ;;  %v3207_v63 = vadd.f32 %v3206_v26, %v3118_v14  ;;  %3070 = vmatmul.bf16.gmra.mxu2 %v4453_v11  ;;  %3248 = vmatmul.bf16.gmra.mxu0 %v1862_v29  ;;  %v1730_v26 = vor.u32 %v1729_v44, %v1725_v34  ;;  %v3842_v34 = vld [vmem:[%s4737_s12 + $0xcc] sm:$0xff]  }
 0x26d   : > { %3159 = vmatmul.bf16.gmra.mxu3 %v1723_v8  ;;  %v4454_v8 = vld [vmem:[%s4737_s12 + $0xc0] sm:$0xff]   ;;  %v4638_v44 = vld [vmem:[%s4737_s12 + $0xcc] sm:$0xf0] }
 0x26e   : > { %v3531_v9 = vadd.f32 %v3461_v6, %v3207_v63  ;;  %v1735_v48 = vsel %vm638_vm0, %v1730_v26, %v1734_v46  ;;  %v4525_v63 = vld [vmem:[%s4737_s12 + $0xc0] sm:$0xe]  ;;  %v3859_v26 = vld [vmem:[%s4737_s12 + $0xd4] sm:$0x1] }
 0x26f   : > { %4240 = vmatmul.msk.bf16.gmra.mxu1 %vm3382_vm3, %v4332_v47  ;;  %v3031_v53 = vpop.f32.mrf.mxu2 }
 0x270   : > { %v3120_v10 = vpop.f32.mrf.mxu3  ;;  %v3563_v62 = vmax.f32 %v3531_v9, 0.0  ;;  %v3032_v35 = vadd.f32 %v3031_v53, %v5394_v39  ;;  %v1737_v9 = vshrl.u32 %v4454_v8, 16 }
 0x271   : > { %v3211_v54 = vpop.f32.mrf.mxu0 }
 0x272   : > { %3595 = vst [vmem:[%s5577_s16 + $0x38] sm:$0xff] %v3563_v62  ;;  %v3121_v11 = vadd.f32 %v3120_v10, %v3032_v35  ;;  %v4526_v35 = vor.u32 %v4525_v63, %v4524_v59 }
 0x274   : > { %v3466_v56 = vpop.f32.mrf.mxu1  ;;  %v3210_v7 = vadd.f32 %v3209_v4, %v3121_v11  ;;  %v1566_v4 = vpack.c.b16 %v1550_v37, %v1550_v37 }
 0x276   : > { %v3532_v6 = vadd.f32 %v3464_v20, %v3210_v7  ;;  %v1744_v53 = vshll.u32 %v1566_v4, 16  ;;  %v1866_v7 = vrot.slane %v4526_v35, 1 }
 0x277   : > { %v3033_v39 = vpop.f32.mrf.mxu2 }
 0x278   : > { %v3122_v23 = vpop.f32.mrf.mxu3  ;;  %v3564_v33 = vmax.f32 %v3532_v6, 0.0  ;;  %v3034_v19 = vadd.f32 %v3033_v39, %v5405_v17  ;;  %v1739_v17 = vshll.u32 %v4454_v8, 16  ;;  %v1746_v57 = vrot.slane %v1744_v53, 1 }
 0x279   : > { %v3214_v50 = vpop.f32.mrf.mxu0  ;;  %v1551_v39 = vunpack.c.l.b16 %v3859_v26 }
 0x27a   : > { %3596 = vst [vmem:[%s5577_s16 + $0x40] sm:$0xff] %v3564_v33  ;;  %v3123_v36 = vadd.f32 %v3122_v23, %v3034_v19 }
 0x27c   : > { %v3469_v13 = vpop.f32.mrf.mxu1  ;;  %v3212_v14 = vadd.f32 %v3211_v54, %v3123_v36  ;;  %3075 = vmatmul.bf16.gmra.mxu2 %v5620_v3  ;;  %3253 = vmatmul.bf16.gmra.mxu0 %v1865_v32  ;;  %v1741_v3 = vrot.slane %v1739_v17, 1  ;;  %v4639_v36 = vld [vmem:[%s4737_s12 + $0xcc] sm:$0xe]  ;;  %v1751_v32 = vshll.u32 %v3842_v34, 16 }
 0x27d   : > { %3164 = vmatmul.bf16.gmra.mxu3 %v1735_v48  ;;  %v4334_v48 = vld [vmem:[%s5449_s11 + $0x70] sm:$0xff] }
 0x27e   : > { %v3533_v29 = vadd.f32 %v3466_v56, %v3212_v14  ;;  %v1742_v54 = vor.u32 %v1741_v3, %v1737_v9 }
 0x27f   : > { %4241 = vmatmul.msk.bf16.gmra.mxu1 %vm3382_vm3, %v4333_v40  ;;  %v3036_v47 = vpop.f32.mrf.mxu2  ;;  %v1567_v40 = vpack.c.b16 %v1551_v39, %v1551_v39 }
 0x280   : > { %v3125_v20 = vpop.f32.mrf.mxu3  ;;  %v3565_v2 = vmax.f32 %v3533_v29, 0.0  ;;  %v3037_v27 = vadd.f32 %v3036_v47, %v5410_v1  ;;  %v1867_v1 = vrot.slane %v1566_v4, 1  ;;  %v1747_v12 = vsel %vm638_vm0, %v1742_v54, %v1746_v57 }
 0x281   : > { %v3216_v62 = vpop.f32.mrf.mxu0  ;;  %v1749_v29 = vshrl.u32 %v3842_v34, 16  ;;  %v1753_v47 = vrot.slane %v1751_v32, 1 }
 0x282   : > { %3597 = vst [vmem:[%s5577_s16 + $0x48] sm:$0xff] %v3565_v2  ;;  %v3126_v10 = vadd.f32 %v3125_v20, %v3037_v27  ;;  %v1868_v19 = vsel %vm895_vm2, %v1866_v7, %v1867_v1  ;;  %v1756_v20 = vshll.u32 %v1567_v40, 16  ;;  %v4335_v7 = vld [vmem:[%s5449_s11 + $0x78] sm:$0xff] }
 0x283   : > { %v1754_v9 = vor.u32 %v1753_v47, %v1749_v29 }
 0x284   : > { %v3471_v58 = vpop.f32.mrf.mxu1  ;;  %v3215_v11 = vadd.f32 %v3214_v50, %v3126_v10  ;;  %v1758_v3 = vrot.slane %v1756_v20, 1 }
 0x286   : > { %v3534_v56 = vadd.f32 %v3469_v13, %v3215_v11  ;;  %v1759_v54 = vsel %vm638_vm0, %v1754_v9, %v1758_v3 }
 0x287   : > { %v3038_v46 = vpop.f32.mrf.mxu2 }
 0x288   : > { %v3127_v6 = vpop.f32.mrf.mxu3  ;;  %v3566_v41 = vmax.f32 %v3534_v56, 0.0  ;;  %v3039_v42 = vadd.f32 %v3038_v46, %v5420_v24 }
 0x289   : > { %v3219_v33 = vpop.f32.mrf.mxu0 }
 0x28a   : > { %3598 = vst [vmem:[%s5577_s16 + $0x50] sm:$0xff] %v3566_v41  ;;  %v3128_v23 = vadd.f32 %v3127_v6, %v3039_v42 }
 0x28c   : > { %v3474_v37 = vpop.f32.mrf.mxu1  ;;  %v3217_v50 = vadd.f32 %v3216_v62, %v3128_v23  ;;  %3080 = vmatmul.bf16.gmra.mxu2 %v4454_v8  ;;  %3258 = vmatmul.bf16.gmra.mxu0 %v1868_v19  ;;  %v4640_v8 = vor.u32 %v4639_v36, %v4638_v44  ;;  %v1870_v62 = vrot.slane %v1567_v40, 1 }
 0x28d   : > { %3169 = vmatmul.bf16.gmra.mxu3 %v1747_v12 }
 0x28e   : > { %v3535_v13 = vadd.f32 %v3471_v58, %v3217_v50  ;;  %v1869_v10 = vrot.slane %v4640_v8, 1 }
 0x28f   : > { %4242 = vmatmul.msk.bf16.gmra.mxu1 %vm3382_vm3, %v4334_v48  ;;  %v3041_v24 = vpop.f32.mrf.mxu2 }
 0x290   : > { %v3130_v14 = vpop.f32.mrf.mxu3  ;;  %v3567_v17 = vmax.f32 %v3535_v13, 0.0  ;;  %v3042_v4 = vadd.f32 %v3041_v24, %v5428_v61  ;;  %v1871_v44 = vsel %vm895_vm2, %v1869_v10, %v1870_v62 }
 0x291   : > { %v3221_v63 = vpop.f32.mrf.mxu0 }
 0x292   : > { %3599 = vst [vmem:[%s5577_s16 + $0x58] sm:$0xff] %v3567_v17  ;;  %v3131_v59 = vadd.f32 %v3130_v14, %v3042_v4 }
 0x294   : > { %v3476_v2 = vpop.f32.mrf.mxu1  ;;  %v3220_v27 = vadd.f32 %v3219_v33, %v3131_v59 }
 0x296   : > { %v3536_v53 = vadd.f32 %v3474_v37, %v3220_v27 }
 0x297   : > { %v3043_v35 = vpop.f32.mrf.mxu2 }
 0x298   : > { %v3132_v58 = vpop.f32.mrf.mxu3  ;;  %v3568_v11 = vmax.f32 %v3536_v53, 0.0  ;;  %v3044_v61 = vadd.f32 %v3043_v35, %v5435_v15 }
 0x299   : > { %v3224_v56 = vpop.f32.mrf.mxu0 }
 0x29a   : > { %3600 = vst [vmem:[%s5577_s16 + $0x60] sm:$0xff] %v3568_v11  ;;  %v3133_v57 = vadd.f32 %v3132_v58, %v3044_v61 }
 0x29c   : > { %v3479_v1 = vpop.f32.mrf.mxu1  ;;  %v3222_v26 = vadd.f32 %v3221_v63, %v3133_v57  ;;  %3085 = vmatmul.bf16.gmra.mxu2 %v3842_v34  ;;  %3263 = vmatmul.bf16.gmra.mxu0 %v1871_v44 }
 0x29d   : > { %3174 = vmatmul.bf16.gmra.mxu3 %v1759_v54 }
 0x29e   : > { %v3537_v46 = vadd.f32 %v3476_v2, %v3222_v26 }
 0x29f   : > { %4243 = vmatmul.msk.bf16.gmra.mxu1 %vm3382_vm3, %v4335_v7  ;;  %v3046_v6 = vpop.f32.mrf.mxu2 }
 0x2a0   : > { %v3135_v15 = vpop.f32.mrf.mxu3  ;;  %v3569_v41 = vmax.f32 %v3537_v46, 0.0  ;;  %v3047_v42 = vadd.f32 %v3046_v6, %v5444_v18 }
 0x2a1   : > { %v3226_v39 = vpop.f32.mrf.mxu0 }
 0x2a2   : > { %3601 = vst [vmem:[%s5577_s16 + $0x68] sm:$0xff] %v3569_v41  ;;  %v3136_v12 = vadd.f32 %v3135_v15, %v3047_v42 }
 0x2a4   : > { %v3481_v23 = vpop.f32.mrf.mxu1  ;;  %v3225_v33 = vadd.f32 %v3224_v56, %v3136_v12 }
 0x2a6   : > { %v3538_v19 = vadd.f32 %v3479_v1, %v3225_v33 }
 0x2a7   : > { %v3048_v48 = vpop.f32.mrf.mxu2 }
 0x2a8   : > { %v3137_v34 = vpop.f32.mrf.mxu3  ;;  %v3570_v37 = vmax.f32 %v3538_v19, 0.0  ;;  %v3049_v36 = vadd.f32 %v3048_v48, %v5457_v25 }
 0x2a9   : > { %v3229_v32 = vpop.f32.mrf.mxu0 }
 0x2aa   : > { %3602 = vst [vmem:[%s5577_s16 + $0x70] sm:$0xff] %v3570_v37  ;;  %v3138_v50 = vadd.f32 %v3137_v34, %v3049_v36 }
 0x2ac   : > { %v3484_v40 = vpop.f32.mrf.mxu1  ;;  %v3227_v13 = vadd.f32 %v3226_v39, %v3138_v50 }
 0x2ae   : > { %v3539_v24 = vadd.f32 %v3481_v23, %v3227_v13 }
 0x2af   : > { %v3051_v18 = vpop.f32.mrf.mxu2 }
 0x2b0   : > { %v3140_v14 = vpop.f32.mrf.mxu3  ;;  %v3571_v17 = vmax.f32 %v3539_v24, 0.0  ;;  %v3052_v4 = vadd.f32 %v3051_v18, %v5461_v30 }
 0x2b1   : > { %v3231_v47 = vpop.f32.mrf.mxu0 }
 0x2b2   : > { %3603 = vst [vmem:[%s5577_s16 + $0x78] sm:$0xff] %v3571_v17  ;;  %v3141_v29 = vadd.f32 %v3140_v14, %v3052_v4 }
 0x2b4   : > { %v3486_v20 = vpop.f32.mrf.mxu1  ;;  %v3230_v59 = vadd.f32 %v3229_v32, %v3141_v29 }
 0x2b6   : > { %v3540_v63 = vadd.f32 %v3484_v40, %v3230_v59 }
 0x2b7   : > { %v3053_v25 = vpop.f32.mrf.mxu2 }
 0x2b8   : > { %v3142_v8 = vpop.f32.mrf.mxu3  ;;  %v3572_v2 = vmax.f32 %v3540_v63, 0.0  ;;  %v3054_v27 = vadd.f32 %v3053_v25, %v5469_v28 }
 0x2b9   : > { %v3234_v3 = vpop.f32.mrf.mxu0 }
 0x2ba   : > { %3604 = vst [vmem:[%s5577_s16 + $0x80] sm:$0xff] %v3572_v2  ;;  %v3143_v9 = vadd.f32 %v3142_v8, %v3054_v27 }
 0x2bc   : > { %v3489_v53 = vpop.f32.mrf.mxu1  ;;  %v3232_v10 = vadd.f32 %v3231_v47, %v3143_v9 }
 0x2be   : > { %v3541_v62 = vadd.f32 %v3486_v20, %v3232_v10 }
 0x2bf   : > { %v3056_v30 = vpop.f32.mrf.mxu2 }
 0x2c0   : > { %v3145_v35 = vpop.f32.mrf.mxu3  ;;  %v3573_v58 = vmax.f32 %v3541_v62, 0.0  ;;  %v3057_v11 = vadd.f32 %v3056_v30, %v5477_v52 }
 0x2c1   : > { %v3236_v54 = vpop.f32.mrf.mxu0 }
 0x2c2   : > { %3605 = vst [vmem:[%s5577_s16 + $0x88] sm:$0xff] %v3573_v58  ;;  %v3146_v61 = vadd.f32 %v3145_v35, %v3057_v11 }
 0x2c4   : > { %v3491_v57 = vpop.f32.mrf.mxu1  ;;  %v3235_v56 = vadd.f32 %v3234_v3, %v3146_v61 }
 0x2c6   : > { %v3542_v44 = vadd.f32 %v3489_v53, %v3235_v56 }
 0x2c7   : > { %v3058_v28 = vpop.f32.mrf.mxu2 }
 0x2c8   : > { %v3147_v7 = vpop.f32.mrf.mxu3  ;;  %v3574_v1 = vmax.f32 %v3542_v44, 0.0  ;;  %v3059_v26 = vadd.f32 %v3058_v28, %v5485_v22 }
 0x2c9   : > { %v3239_v6 = vpop.f32.mrf.mxu0 }
 0x2ca   : > { %3606 = vst [vmem:[%s5577_s16 + $0x90] sm:$0xff] %v3574_v1  ;;  %v3148_v46 = vadd.f32 %v3147_v7, %v3059_v26 }
 0x2cc   : > { %v3494_v15 = vpop.f32.mrf.mxu1  ;;  %v3237_v41 = vadd.f32 %v3236_v54, %v3148_v46 }
 0x2ce   : > { %v3543_v42 = vadd.f32 %v3491_v57, %v3237_v41 }
 0x2cf   : > { %v3061_v52 = vpop.f32.mrf.mxu2 }
 0x2d0   : > { %v3150_v12 = vpop.f32.mrf.mxu3  ;;  %v3575_v39 = vmax.f32 %v3543_v42, 0.0  ;;  %v3062_v23 = vadd.f32 %v3061_v52, %v5489_v55 }
 0x2d1   : > { %v3241_v19 = vpop.f32.mrf.mxu0 }
 0x2d2   : > { %3607 = vst [vmem:[%s5577_s16 + $0x98] sm:$0xff] %v3575_v39  ;;  %v3151_v33 = vadd.f32 %v3150_v12, %v3062_v23 }
 0x2d4   : > { %v3496_v48 = vpop.f32.mrf.mxu1  ;;  %v3240_v34 = vadd.f32 %v3239_v6, %v3151_v33 }
 0x2d6   : > { %v3544_v37 = vadd.f32 %v3494_v15, %v3240_v34 }
 0x2d7   : > { %v3063_v22 = vpop.f32.mrf.mxu2 }
 0x2d8   : > { %v3152_v36 = vpop.f32.mrf.mxu3  ;;  %v3576_v50 = vmax.f32 %v3544_v37, 0.0  ;;  %v3064_v32 = vadd.f32 %v3063_v22, %v5497_v49 }
 0x2d9   : > { %v3244_v13 = vpop.f32.mrf.mxu0 }
 0x2da   : > { %3608 = vst [vmem:[%s5577_s16 + $0xa0] sm:$0xff] %v3576_v50  ;;  %v3153_v40 = vadd.f32 %v3152_v36, %v3064_v32 }
 0x2dc   : > { %v3499_v24 = vpop.f32.mrf.mxu1  ;;  %v3242_v18 = vadd.f32 %v3241_v19, %v3153_v40 }
 0x2de   : > { %v3545_v14 = vadd.f32 %v3496_v48, %v3242_v18 }
 0x2df   : > { %v3066_v55 = vpop.f32.mrf.mxu2 }
 0x2e0   : > { %v3155_v17 = vpop.f32.mrf.mxu3  ;;  %v3577_v4 = vmax.f32 %v3545_v14, 0.0  ;;  %v3067_v29 = vadd.f32 %v3066_v55, %v5505_v43 }
 0x2e1   : > { %v3246_v20 = vpop.f32.mrf.mxu0 }
 0x2e2   : > { %3609 = vst [vmem:[%s5577_s16 + $0xa8] sm:$0xff] %v3577_v4  ;;  %v3156_v47 = vadd.f32 %v3155_v17, %v3067_v29 }
 0x2e4   : > { %v3501_v59 = vpop.f32.mrf.mxu1  ;;  %v3245_v63 = vadd.f32 %v3244_v13, %v3156_v47 }
 0x2e6   : > { %v3546_v25 = vadd.f32 %v3499_v24, %v3245_v63 }
 0x2e7   : > { %v3068_v49 = vpop.f32.mrf.mxu2 }
 0x2e8   : > { %v3157_v8 = vpop.f32.mrf.mxu3  ;;  %v3578_v2 = vmax.f32 %v3546_v25, 0.0  ;;  %v3069_v27 = vadd.f32 %v3068_v49, %v5513_v45 }
 0x2e9   : > { %v3249_v3 = vpop.f32.mrf.mxu0 }
 0x2ea   : > { %3610 = vst [vmem:[%s5577_s16 + $0xb0] sm:$0xff] %v3578_v2  ;;  %v3158_v9 = vadd.f32 %v3157_v8, %v3069_v27 }
 0x2ec   : > { %v3504_v53 = vpop.f32.mrf.mxu1  ;;  %v3247_v10 = vadd.f32 %v3246_v20, %v3158_v9 }
 0x2ee   : > { %v3547_v62 = vadd.f32 %v3501_v59, %v3247_v10 }
 0x2ef   : > { %v3071_v43 = vpop.f32.mrf.mxu2 }
 0x2f0   : > { %v3160_v30 = vpop.f32.mrf.mxu3  ;;  %v3579_v35 = vmax.f32 %v3547_v62, 0.0  ;;  %v3072_v58 = vadd.f32 %v3071_v43, %v5517_v51 }
 0x2f1   : > { %v3251_v61 = vpop.f32.mrf.mxu0 }
 0x2f2   : > { %3611 = vst [vmem:[%s5577_s16 + $0xb8] sm:$0xff] %v3579_v35  ;;  %v3161_v11 = vadd.f32 %v3160_v30, %v3072_v58 }
 0x2f4   : > { %v3506_v54 = vpop.f32.mrf.mxu1  ;;  %v3250_v57 = vadd.f32 %v3249_v3, %v3161_v11 }
 0x2f6   : > { %v3548_v56 = vadd.f32 %v3504_v53, %v3250_v57 }
 0x2f7   : > { %v3073_v45 = vpop.f32.mrf.mxu2 }
 0x2f8   : > { %v3162_v44 = vpop.f32.mrf.mxu3  ;;  %v3580_v28 = vmax.f32 %v3548_v56, 0.0  ;;  %v3074_v7 = vadd.f32 %v3073_v45, %v5525_v5 }
 0x2f9   : > { %v3254_v26 = vpop.f32.mrf.mxu0 }
 0x2fa   : > { %3612 = vst [vmem:[%s5577_s16 + $0xc0] sm:$0xff] %v3580_v28  ;;  %v3163_v1 = vadd.f32 %v3162_v44, %v3074_v7 }
 0x2fc   : > { %v3509_v46 = vpop.f32.mrf.mxu1  ;;  %v3252_v6 = vadd.f32 %v3251_v61, %v3163_v1 }
 0x2fe   : > { %v3549_v15 = vadd.f32 %v3506_v54, %v3252_v6 }
 0x2ff   : > { %v3076_v51 = vpop.f32.mrf.mxu2 }
 0x300   : > { %v3165_v41 = vpop.f32.mrf.mxu3  ;;  %v3581_v42 = vmax.f32 %v3549_v15, 0.0  ;;  %v3077_v52 = vadd.f32 %v3076_v51, %v5533_v0 }
 0x301   : > { %v3256_v39 = vpop.f32.mrf.mxu0 }
 0x302   : > { %3613 = vst [vmem:[%s5577_s16 + $0xc8] sm:$0xff] %v3581_v42  ;;  %v3166_v12 = vadd.f32 %v3165_v41, %v3077_v52 }
 0x304   : > { %v3255_v23 = vadd.f32 %v3254_v26, %v3166_v12  ;;  %v3511_v33 = vpop.f32.mrf.mxu1 }
 0x306   : > { %v3550_v19 = vadd.f32 %v3509_v46, %v3255_v23 }
 0x307   : > { %v3078_v5 = vpop.f32.mrf.mxu2 }
 0x308   : > { %v3167_v48 = vpop.f32.mrf.mxu3  ;;  %v3582_v34 = vmax.f32 %v3550_v19, 0.0  ;;  %v3079_v37 = vadd.f32 %v3078_v5, %v5541_v16 }
 0x309   : > { %v3259_v50 = vpop.f32.mrf.mxu0 }
 0x30a   : > { %3614 = vst [vmem:[%s5577_s16 + $0xd0] sm:$0xff] %v3582_v34  ;;  %v3168_v22 = vadd.f32 %v3167_v48, %v3079_v37 }
 0x30c   : > { %v3257_v36 = vadd.f32 %v3256_v39, %v3168_v22  ;;  %v3514_v40 = vpop.f32.mrf.mxu1 }
 0x30e   : > { %v3551_v32 = vadd.f32 %v3511_v33, %v3257_v36 }
 0x30f   : > { %v3081_v0 = vpop.f32.mrf.mxu2 }
 0x310   : > { %v3170_v13 = vpop.f32.mrf.mxu3  ;;  %v3583_v24 = vmax.f32 %v3551_v32, 0.0  ;;  %v3082_v18 = vadd.f32 %v3081_v0, %v5545_v31 }
 0x311   : > { %v3261_v4 = vpop.f32.mrf.mxu0 }
 0x312   : > { %3615 = vst [vmem:[%s5577_s16 + $0xd8] sm:$0xff] %v3583_v24  ;;  %v3171_v14 = vadd.f32 %v3170_v13, %v3082_v18 }
 0x314   : > { %v3260_v55 = vadd.f32 %v3259_v50, %v3171_v14  ;;  %v3516_v59 = vpop.f32.mrf.mxu1 }
 0x316   : > { %v3552_v17 = vadd.f32 %v3514_v40, %v3260_v55 }
 0x317   : > { %v3083_v29 = vpop.f32.mrf.mxu2 }
 0x318   : > { %v3172_v16 = vpop.f32.mrf.mxu3  ;;  %v3584_v47 = vmax.f32 %v3552_v17, 0.0  ;;  %v3084_v20 = vadd.f32 %v3083_v29, %v5553_v60 }
 0x319   : > { %v3264_v9 = vpop.f32.mrf.mxu0 }
 0x31a   : > { %3616 = vst [vmem:[%s5577_s16 + $0xe0] sm:$0xff] %v3584_v47  ;;  %v3173_v63 = vadd.f32 %v3172_v16, %v3084_v20 }
 0x31c   : > { %v3262_v25 = vadd.f32 %v3261_v4, %v3173_v63  ;;  %v3519_v53 = vpop.f32.mrf.mxu1 }
 0x31e   : > { %v3553_v49 = vadd.f32 %v3516_v59, %v3262_v25 }
 0x31f   : > { %v3086_v8 = vpop.f32.mrf.mxu2 }
 0x320   : > { %v3175_v2 = vpop.f32.mrf.mxu3  ;;  %v3585_v31 = vmax.f32 %v3553_v49, 0.0  ;;  %v3087_v27 = vadd.f32 %v3086_v8, %v5561_v38 }
 0x321   : > { %v3266_v11 = vpop.f32.mrf.mxu0 }
 0x322   : > { %3617 = vst [vmem:[%s5577_s16 + $0xe8] sm:$0xff] %v3585_v31  ;;  %v3176_v3 = vadd.f32 %v3175_v2, %v3087_v27 }
 0x324   : > { %v3265_v10 = vadd.f32 %v3264_v9, %v3176_v3  ;;  %v3521_v54 = vpop.f32.mrf.mxu1 }
 0x326   : > { %v3554_v62 = vadd.f32 %v3519_v53, %v3265_v10 }
 0x327   : > { %v3088_v43 = vpop.f32.mrf.mxu2 }
 0x328   : > { %v3586_v60 = vmax.f32 %v3554_v62, 0.0  ;;  %v3089_v30 = vadd.f32 %v3088_v43, %v5569_v21  ;;  %v3177_v35 = vpop.f32.mrf.mxu3 }
 0x32a   : > { %3618 = vst [vmem:[%s5577_s16 + $0xf0] sm:$0xff] %v3586_v60  ;;  %v3178_v58 = vadd.f32 %v3177_v35, %v3089_v30 }
 0x32c   : > { %v3267_v61 = vadd.f32 %v3266_v11, %v3178_v58 }
 0x32e   : > { %v3555_v57 = vadd.f32 %v3521_v54, %v3267_v61 }
 0x330   : > { %v3587_v56 = vmax.f32 %v3555_v57, 0.0 }
 0x332   : > { %3619 = vst [vmem:[%s5577_s16 + $0xf8] sm:$0xff] %v3587_v56 }
 0x333 PF: > { %s15_s20 = sadd.s32 1, %s4663_s20   ;;  %s5726_s18 = smov %s4659_s19 }
 0x334   : > { %p12_p5 = scmp.ge.s32.totalorder %s15_s20, 4   ;;  %s5727_s19 = smov %s5729_s21 }
 0x336   :  { %14 = sbr.rel (!%p12_p5) target bundleno = 2 (0x2), region = 76 }

</bundles_post_ra>
